<compile_context>
chip_gen: v7x
topology: tpu7x:2x2x1
jax: 0.10.0
libtpu: 0.0.40
codegen_flags: <defaults>
</compile_context>

<pallas_src>
import functools

import jax
import jax.numpy as jnp
from jax.experimental import pallas as pl
from jax.experimental.pallas import tpu as pltpu


def cbam_kernel(x_ref, w1_ref, b1_ref, w2_ref, b2_ref, sw_ref, sb_ref, o_ref,
                *, H, W, HW, K, NB, PAD):
    P = K // 2
    HWp = HW + PAD
    C = x_ref.shape[1]
    inv_hw = 1.0 / float(HW)
    inv_c = 1.0 / float(C)
    f32 = jnp.float32

    # Hoisted lane-index constants (1, HWp).
    flat_idx = jax.lax.broadcasted_iota(jnp.int32, (1, HWp), 1)
    lane_valid = (flat_idx < HW) if PAD else None

    # ---------------- channel attention ----------------
    # Spatial pooling, one sample at a time (only one (C, HWp) plane live).
    avg_cols, max_cols = [], []
    for b in range(NB):
        xb = x_ref[b].astype(f32)                              # (C, HWp)
        avg_cols.append(jnp.sum(xb, axis=-1, keepdims=True) * inv_hw)
        xb_m = jnp.where(lane_valid, xb, -jnp.inf) if PAD else xb
        max_cols.append(jnp.max(xb_m, axis=-1, keepdims=True))
    pooled = jnp.concatenate(avg_cols + max_cols, axis=1)      # (C, 2*NB)

    # Shared 1x1-conv MLP batched over all 2*NB pooled columns (MXU).
    h = jnp.dot(w1_ref[...], pooled,
                preferred_element_type=f32) + b1_ref[...]      # (Ch, 2*NB)
    h = jnp.maximum(h, 0.0)
    mlp = jnp.dot(w2_ref[...], h,
                  preferred_element_type=f32) + b2_ref[...]    # (C, 2*NB)
    attn_c = jax.nn.sigmoid(mlp[:, :NB] + mlp[:, NB:])         # (C, NB)

    # ---------------- spatial attention inputs ----------------
    # Channel-pooled rows of the channel-scaled input; the scaled (C, HWp)
    # plane is transient (dies within each iteration).  Channel mean goes to
    # the MXU (idle otherwise), channel max stays on the XLU.
    ones_row = jnp.ones((1, C), f32)
    avg_rows, max_rows = [], []
    for b in range(NB):
        xb = x_ref[b].astype(f32)
        scaled = xb * attn_c[:, b:b + 1]                       # (C, HWp) transient
        avg_rows.append(jnp.dot(ones_row, scaled,
                                preferred_element_type=f32) * inv_c)
        max_rows.append(jnp.max(scaled, axis=0, keepdims=True))
    plane_avg = jnp.concatenate(avg_rows, axis=0)              # (NB, HWp)
    plane_max = jnp.concatenate(max_rows, axis=0)              # (NB, HWp)

    # ---------------- 7x7 spatial conv (flat, roll-based) ----------------
    # Column index along the flattened H*W axis (iota over one row, tiled H
    # times, padded with zeros — pad positions are killed by lane_valid).
    lane_w = jax.lax.broadcasted_iota(jnp.int32, (1, W), 1)
    col_parts = [lane_w] * H
    if PAD:
        col_parts.append(jnp.zeros((1, PAD), jnp.int32))
    col_idx = jnp.concatenate(col_parts, axis=1)               # (1, HWp)

    def _shift(v, s):
        # result[..., f] = v[..., (f + s) % HWp]   (circular, static s)
        sh = (-s) % HWp
        return v if sh == 0 else pltpu.roll(v, sh, v.ndim - 1)

    # Stage 1: horizontal shift + column mask, hoisted out of the dy loop.
    ph_avg, ph_max = [], []
    for dx in range(K):
        sx = dx - P
        pa = _shift(plane_avg, sx)
        pm = _shift(plane_max, sx)
        if sx != 0:
            ok = jnp.logical_and(col_idx + sx >= 0, col_idx + sx < W)
            if PAD:
                ok = jnp.logical_and(ok, lane_valid)
            pa = jnp.where(ok, pa, 0.0)
            pm = jnp.where(ok, pm, 0.0)
        ph_avg.append(pa)
        ph_max.append(pm)

    # Stage 2: vertical roll (multiple of W) + FMA; one row-validity mask per
    # dy (applied to the accumulated dx contributions) kills roll wrap-around.
    acc = jnp.full((NB, HWp), sb_ref[0], dtype=f32)
    for dy in range(K):
        sy = dy - P
        inner = None
        for dx in range(K):
            pa = _shift(ph_avg[dx], sy * W)
            pm = _shift(ph_max[dx], sy * W)
            t = sw_ref[dy * K + dx] * pa + sw_ref[K * K + dy * K + dx] * pm
            inner = t if inner is None else inner + t
        if sy != 0:
            row_ok = jnp.logical_and(flat_idx + sy * W >= 0,
                                     flat_idx + sy * W < HW)
            inner = jnp.where(row_ok, inner, 0.0)
        acc = acc + inner
    attn_s = jax.nn.sigmoid(acc)                               # (NB, HWp)

    # ---------------- fused final scaling + store ----------------
    for b in range(NB):
        xb = x_ref[b].astype(f32)
        o_ref[b] = (xb * attn_c[:, b:b + 1]
                    * attn_s[b:b + 1, :]).astype(o_ref.dtype)


def _vmem_capacity_bytes():
    try:
        cap = getattr(pltpu.get_tpu_info(), "vmem_capacity_bytes", None)
        if cap:
            return int(cap)
    except Exception:
        pass
    return 64 << 20   # conservative default (v7x per-core VMEM)


def _pick_nb(N, C, HWp, itemsize, vmem_cap, max_nb=16):
    """Largest divisor of N whose footprint fits the budget, preferring
    >=4 grid steps and even step counts (megacore / pipeline warmup)."""
    block_budget = min(vmem_cap // 3, 40 << 20)
    per_sample = 4 * C * HWp * itemsize      # in + out blocks, double-buffered
    per_sample += 20 * HWp * 4               # conv planes / shifted copies (f32)
    fixed = 2 * C * HWp * 4                  # transient scaled plane + slack
    cands = [d for d in range(1, min(N, max_nb) + 1) if N % d == 0]
    fitting = [d for d in cands if fixed + d * per_sample <= block_budget] or [1]

    def rank(d):
        steps = N // d
        return (steps >= 4, steps >= 2, steps % 2 == 0, d)

    return max(fitting, key=rank)


def cbam_pallas(x, w1, b1, w2, b2, sw, sb, *, K=7, NB=None):
    N, C, H, W = x.shape
    Ch = w1.shape[0]
    HW = H * W
    HWp = ((HW + 127) // 128) * 128          # lane-dense (multiple of 128)
    PAD = HWp - HW

    itemsize = jnp.dtype(x.dtype).itemsize
    vmem_cap = _vmem_capacity_bytes()
    if NB is None:
        NB = _pick_nb(N, C, HWp, itemsize, vmem_cap)
    assert N % NB == 0

    x2 = x.reshape(N, C, HW)                 # lane-dense I/O layout
    if PAD:
        x2 = jnp.pad(x2, ((0, 0), (0, 0), (0, PAD)))
    b1c = b1.reshape(Ch, 1)
    b2c = b2.reshape(C, 1)

    # Generation-aware VMEM limit: ~48 MiB on v7x (64 MiB/core), ~96 MiB on
    # v5e/v6e (128 MiB).
    vmem_limit = int(min(max(vmem_cap * 3 // 4, 32 << 20), 96 << 20))

    kern = functools.partial(cbam_kernel, H=H, W=W, HW=HW, K=K, NB=NB, PAD=PAD)
    out2 = pl.pallas_call(
        kern,
        out_shape=jax.ShapeDtypeStruct((N, C, HWp), x.dtype),
        grid_spec=pltpu.PrefetchScalarGridSpec(
            num_scalar_prefetch=0,
            grid=(N // NB,),
            in_specs=[
                pl.BlockSpec((NB, C, HWp), lambda n: (n, 0, 0)),
                pl.BlockSpec((Ch, C), lambda n: (0, 0)),
                pl.BlockSpec((Ch, 1), lambda n: (0, 0)),
                pl.BlockSpec((C, Ch), lambda n: (0, 0)),
                pl.BlockSpec((C, 1), lambda n: (0, 0)),
                pl.BlockSpec(memory_space=pltpu.MemorySpace.SMEM),
                pl.BlockSpec(memory_space=pltpu.MemorySpace.SMEM),
            ],
            out_specs=pl.BlockSpec((NB, C, HWp), lambda n: (n, 0, 0)),
        ),
        compiler_params=pltpu.CompilerParams(
            dimension_semantics=("parallel",),
            vmem_limit_bytes=vmem_limit,
        ),
    )(x2, w1, b1c, w2, b2c, sw, sb)
    if PAD:
        out2 = out2[..., :HW]
    return out2.reshape(N, C, H, W)


def cbam_ref(x, w1, b1, w2, b2, sw, sb, *, K=7):
    """Pure-JAX reference matching the PyTorch semantics."""
    N, C, H, W = x.shape
    P = K // 2
    avg_c = jnp.mean(x, axis=(2, 3))                         # (N, C)
    max_c = jnp.max(x, axis=(2, 3))                          # (N, C)

    def fc(v):                                               # (N, C)
        h = jnp.maximum(v @ w1.T + b1, 0.0)
        return h @ w2.T + b2

    attn_c = jax.nn.sigmoid(fc(avg_c) + fc(max_c))[:, :, None, None]
    x_ca = x * attn_c

    avg_s = jnp.mean(x_ca, axis=1, keepdims=True)
    max_s = jnp.max(x_ca, axis=1, keepdims=True)
    stacked = jnp.concatenate([avg_s, max_s], axis=1)        # (N, 2, H, W)
    padded = jnp.pad(stacked, ((0, 0), (0, 0), (P, P), (P, P)))
    wk = sw.reshape(2, K, K)
    acc = jnp.full((N, H, W), sb[0], dtype=x.dtype)
    for k in range(2):
        for dy in range(K):
            for dx in range(K):
                acc = acc + wk[k, dy, dx] * padded[:, k, dy:dy + H, dx:dx + W]
    attn_s = jax.nn.sigmoid(acc)[:, None, :, :]
    return x_ca * attn_s


if __name__ == "__main__":
    def run_case(N, C, H, W, reduction, K):
        Ch = max(C // reduction, 1)
        key = jax.random.PRNGKey(0)
        kx, k1, k2, k3, k4, k5, k6 = jax.random.split(key, 7)
        x = jax.random.normal(kx, (N, C, H, W), dtype=jnp.float32)
        # ChannelAttention.fc: Conv2d(C, Ch, 1) -> ReLU -> Conv2d(Ch, C, 1)
        w1 = jax.random.normal(k1, (Ch, C), jnp.float32) * 0.1
        b1 = jax.random.normal(k2, (Ch,), jnp.float32) * 0.1
        w2 = jax.random.normal(k3, (C, Ch), jnp.float32) * 0.1
        b2 = jax.random.normal(k4, (C,), jnp.float32) * 0.1
        # SpatialAttention.conv: Conv2d(2, 1, K, padding=K//2); weight flat (2*K*K,)
        sw = jax.random.normal(k5, (2 * K * K,), jnp.float32) * 0.05
        sb = jax.random.normal(k6, (1,), jnp.float32) * 0.1

        out = jax.block_until_ready(cbam_pallas(x, w1, b1, w2, b2, sw, sb, K=K))
        ref = cbam_ref(x, w1, b1, w2, b2, sw, sb, K=K)
        assert out.shape == (N, C, H, W)
        err = float(jnp.max(jnp.abs(out - ref)))
        assert jnp.allclose(out, ref, atol=1e-4, rtol=1e-3), err

    # Main case: H*W = 256 (already a multiple of 128 -> no lane padding).
    run_case(N=2, C=32, H=16, W=16, reduction=16, K=7)
    # Padded-lane case: H*W = 100 -> padded to 128 inside the wrapper.
    run_case(N=2, C=32, H=10, W=10, reduction=16, K=7)
    print("KERNEL_OK")
</pallas_src>

<mosaic_0001>
module attributes {stable_mosaic.version = 11 : i64} {
  func.func @cbam_kernel(%arg0: i32, %arg1: memref<1x32x256xf32, #tpu.memory_space<vmem>>, %arg2: memref<2x32xf32, #tpu.memory_space<vmem>>, %arg3: memref<2x1xf32, #tpu.memory_space<vmem>>, %arg4: memref<32x2xf32, #tpu.memory_space<vmem>>, %arg5: memref<32x1xf32, #tpu.memory_space<vmem>>, %arg6: memref<98xf32, #tpu.memory_space<smem>>, %arg7: memref<1xf32, #tpu.memory_space<smem>>, %arg8: memref<1x32x256xf32, #tpu.memory_space<vmem>>) attributes {dimension_semantics = [#tpu.dimension_semantics<parallel>], iteration_bounds = array<i64: 2>, scalar_prefetch = 0 : i64, scratch_operands = 0 : i64, tpu.core_type = #tpu.core_type<tc>, window_params = [{transform_indices = @transform_0, window_bounds = array<i64: 1, 32, 256>}, {pipeline_mode = #tpu.pipeline_mode<synchronous>, transform_indices = @transform_1, window_bounds = array<i64: 2, 32>}, {pipeline_mode = #tpu.pipeline_mode<synchronous>, transform_indices = @transform_2, window_bounds = array<i64: 2, 1>}, {pipeline_mode = #tpu.pipeline_mode<synchronous>, transform_indices = @transform_3, window_bounds = array<i64: 32, 2>}, {pipeline_mode = #tpu.pipeline_mode<synchronous>, transform_indices = @transform_4, window_bounds = array<i64: 32, 1>}, {transform_indices = @transform_5, window_bounds = array<i64: 98>}, {transform_indices = @transform_6, window_bounds = array<i64: 1>}, {transform_indices = @transform_7, window_bounds = array<i64: 1, 32, 256>}]} {
    %0 = tpu.iota {dimensions = array<i32: 1>} : vector<1x256xi32>
    %c0 = arith.constant 0 : index
    %c0_0 = arith.constant 0 : index
    %c0_1 = arith.constant 0 : index
    %1 = vector.load %arg1[%c0, %c0_0, %c0_1] : memref<1x32x256xf32, #tpu.memory_space<vmem>>, vector<1x32x256xf32>
    %2 = vector.shape_cast %1 : vector<1x32x256xf32> to vector<32x256xf32>
    %cst = arith.constant dense<0.000000e+00> : vector<32xf32>
    %3 = vector.multi_reduction <add>, %2, %cst [1] : vector<32x256xf32> to vector<32xf32>
    %4 = vector.shape_cast %3 : vector<32xf32> to vector<32x1xf32>
    %cst_2 = arith.constant 3.906250e-03 : f32
    %5 = vector.broadcast %cst_2 : f32 to vector<32x1xf32>
    %6 = arith.mulf %4, %5 : vector<32x1xf32>
    %cst_3 = arith.constant dense<0xFF800000> : vector<32xf32>
    %7 = vector.multi_reduction <maximumf>, %2, %cst_3 [1] : vector<32x256xf32> to vector<32xf32>
    %8 = vector.shape_cast %7 : vector<32xf32> to vector<32x1xf32>
    %9 = tpu.concatenate %6, %8 in 1 : vector<32x1xf32>, vector<32x1xf32> -> vector<32x2xf32>
    %c0_4 = arith.constant 0 : index
    %c0_5 = arith.constant 0 : index
    %10 = vector.load %arg2[%c0_4, %c0_5] : memref<2x32xf32, #tpu.memory_space<vmem>>, vector<2x32xf32>
    %cst_6 = arith.constant dense<0.000000e+00> : vector<2x2xf32>
    %11 = tpu.matmul %10, %9, %cst_6 {dimension_numbers = #tpu.dot_dimension_numbers<[1], [0], [0], [1], [0, 0, 1, 1], [], []>} : vector<2x32xf32>, vector<32x2xf32>, vector<2x2xf32> -> vector<2x2xf32>
    %c0_7 = arith.constant 0 : index
    %c0_8 = arith.constant 0 : index
    %12 = vector.load %arg3[%c0_7, %c0_8] : memref<2x1xf32, #tpu.memory_space<vmem>>, vector<2x1xf32>
    %13 = vector.broadcast %12 : vector<2x1xf32> to vector<2x2xf32>
    %14 = arith.addf %11, %13 : vector<2x2xf32>
    %cst_9 = arith.constant 0.000000e+00 : f32
    %15 = vector.broadcast %cst_9 : f32 to vector<2x2xf32>
    %16 = arith.maximumf %14, %15 : vector<2x2xf32>
    %c0_10 = arith.constant 0 : index
    %c0_11 = arith.constant 0 : index
    %17 = vector.load %arg4[%c0_10, %c0_11] : memref<32x2xf32, #tpu.memory_space<vmem>>, vector<32x2xf32>
    %cst_12 = arith.constant dense<0.000000e+00> : vector<32x2xf32>
    %18 = tpu.matmul %17, %16, %cst_12 {dimension_numbers = #tpu.dot_dimension_numbers<[1], [0], [0], [1], [0, 0, 1, 1], [], []>} : vector<32x2xf32>, vector<2x2xf32>, vector<32x2xf32> -> vector<32x2xf32>
    %c0_13 = arith.constant 0 : index
    %c0_14 = arith.constant 0 : index
    %19 = vector.load %arg5[%c0_13, %c0_14] : memref<32x1xf32, #tpu.memory_space<vmem>>, vector<32x1xf32>
    %20 = vector.broadcast %19 : vector<32x1xf32> to vector<32x2xf32>
    %21 = arith.addf %18, %20 : vector<32x2xf32>
    %22 = vector.extract_strided_slice %21 {offsets = [0, 0], sizes = [32, 1], strides = [1, 1]} : vector<32x2xf32> to vector<32x1xf32>
    %23 = vector.extract_strided_slice %21 {offsets = [0, 1], sizes = [32, 1], strides = [1, 1]} : vector<32x2xf32> to vector<32x1xf32>
    %24 = arith.addf %22, %23 : vector<32x1xf32>
    %25 = arith.negf %24 : vector<32x1xf32>
    %26 = math.exp %25 : vector<32x1xf32>
    %cst_15 = arith.constant 1.000000e+00 : f32
    %27 = vector.broadcast %cst_15 : f32 to vector<32x1xf32>
    %28 = arith.addf %27, %26 : vector<32x1xf32>
    %29 = arith.divf %27, %28 : vector<32x1xf32>
    %cst_16 = arith.constant 1.000000e+00 : f32
    %30 = vector.broadcast %cst_16 : f32 to vector<1x32xf32>
    %c0_17 = arith.constant 0 : index
    %c0_18 = arith.constant 0 : index
    %c0_19 = arith.constant 0 : index
    %31 = vector.load %arg1[%c0_17, %c0_18, %c0_19] : memref<1x32x256xf32, #tpu.memory_space<vmem>>, vector<1x32x256xf32>
    %32 = vector.shape_cast %31 : vector<1x32x256xf32> to vector<32x256xf32>
    %33 = vector.broadcast %29 : vector<32x1xf32> to vector<32x256xf32>
    %34 = arith.mulf %32, %33 : vector<32x256xf32>
    %cst_20 = arith.constant dense<0.000000e+00> : vector<1x256xf32>
    %35 = tpu.matmul %30, %34, %cst_20 {dimension_numbers = #tpu.dot_dimension_numbers<[1], [0], [0], [1], [0, 0, 1, 1], [], []>} : vector<1x32xf32>, vector<32x256xf32>, vector<1x256xf32> -> vector<1x256xf32>
    %cst_21 = arith.constant 3.125000e-02 : f32
    %36 = vector.broadcast %cst_21 : f32 to vector<1x256xf32>
    %37 = arith.mulf %35, %36 : vector<1x256xf32>
    %cst_22 = arith.constant dense<0xFF800000> : vector<256xf32>
    %38 = vector.multi_reduction <maximumf>, %34, %cst_22 [0] : vector<32x256xf32> to vector<256xf32>
    %39 = vector.shape_cast %38 : vector<256xf32> to vector<1x256xf32>
    %40 = tpu.iota {dimensions = array<i32: 1>} : vector<1x16xi32>
    %41 = tpu.concatenate %40, %40, %40, %40, %40, %40, %40, %40, %40, %40, %40, %40, %40, %40, %40, %40 in 1 : vector<1x16xi32>, vector<1x16xi32>, vector<1x16xi32>, vector<1x16xi32>, vector<1x16xi32>, vector<1x16xi32>, vector<1x16xi32>, vector<1x16xi32>, vector<1x16xi32>, vector<1x16xi32>, vector<1x16xi32>, vector<1x16xi32>, vector<1x16xi32>, vector<1x16xi32>, vector<1x16xi32>, vector<1x16xi32> -> vector<1x256xi32>
    %c3_i32 = arith.constant 3 : i32
    %42 = tpu.dynamic_rotate %37 by %c3_i32 dim 1 : vector<1x256xf32>, i32 -> vector<1x256xf32>
    %c3_i32_23 = arith.constant 3 : i32
    %43 = tpu.dynamic_rotate %39 by %c3_i32_23 dim 1 : vector<1x256xf32>, i32 -> vector<1x256xf32>
    %c-3_i32 = arith.constant -3 : i32
    %44 = vector.broadcast %c-3_i32 : i32 to vector<1x256xi32>
    %45 = arith.addi %41, %44 : vector<1x256xi32>
    %c0_i32 = arith.constant 0 : i32
    %46 = vector.broadcast %c0_i32 : i32 to vector<1x256xi32>
    %47 = arith.cmpi sge, %45, %46 : vector<1x256xi32>
    %c-3_i32_24 = arith.constant -3 : i32
    %48 = vector.broadcast %c-3_i32_24 : i32 to vector<1x256xi32>
    %49 = arith.addi %41, %48 : vector<1x256xi32>
    %c16_i32 = arith.constant 16 : i32
    %50 = vector.broadcast %c16_i32 : i32 to vector<1x256xi32>
    %51 = arith.cmpi slt, %49, %50 : vector<1x256xi32>
    %52 = arith.andi %47, %51 : vector<1x256xi1>
    %cst_25 = arith.constant 0.000000e+00 : f32
    %53 = vector.broadcast %cst_25 : f32 to vector<1x256xf32>
    %54 = arith.select %52, %42, %53 : vector<1x256xi1>, vector<1x256xf32>
    %cst_26 = arith.constant 0.000000e+00 : f32
    %55 = vector.broadcast %cst_26 : f32 to vector<1x256xf32>
    %56 = arith.select %52, %43, %55 : vector<1x256xi1>, vector<1x256xf32>
    %c2_i32 = arith.constant 2 : i32
    %57 = tpu.dynamic_rotate %37 by %c2_i32 dim 1 : vector<1x256xf32>, i32 -> vector<1x256xf32>
    %c2_i32_27 = arith.constant 2 : i32
    %58 = tpu.dynamic_rotate %39 by %c2_i32_27 dim 1 : vector<1x256xf32>, i32 -> vector<1x256xf32>
    %c-2_i32 = arith.constant -2 : i32
    %59 = vector.broadcast %c-2_i32 : i32 to vector<1x256xi32>
    %60 = arith.addi %41, %59 : vector<1x256xi32>
    %c0_i32_28 = arith.constant 0 : i32
    %61 = vector.broadcast %c0_i32_28 : i32 to vector<1x256xi32>
    %62 = arith.cmpi sge, %60, %61 : vector<1x256xi32>
    %c-2_i32_29 = arith.constant -2 : i32
    %63 = vector.broadcast %c-2_i32_29 : i32 to vector<1x256xi32>
    %64 = arith.addi %41, %63 : vector<1x256xi32>
    %c16_i32_30 = arith.constant 16 : i32
    %65 = vector.broadcast %c16_i32_30 : i32 to vector<1x256xi32>
    %66 = arith.cmpi slt, %64, %65 : vector<1x256xi32>
    %67 = arith.andi %62, %66 : vector<1x256xi1>
    %cst_31 = arith.constant 0.000000e+00 : f32
    %68 = vector.broadcast %cst_31 : f32 to vector<1x256xf32>
    %69 = arith.select %67, %57, %68 : vector<1x256xi1>, vector<1x256xf32>
    %cst_32 = arith.constant 0.000000e+00 : f32
    %70 = vector.broadcast %cst_32 : f32 to vector<1x256xf32>
    %71 = arith.select %67, %58, %70 : vector<1x256xi1>, vector<1x256xf32>
    %c1_i32 = arith.constant 1 : i32
    %72 = tpu.dynamic_rotate %37 by %c1_i32 dim 1 : vector<1x256xf32>, i32 -> vector<1x256xf32>
    %c1_i32_33 = arith.constant 1 : i32
    %73 = tpu.dynamic_rotate %39 by %c1_i32_33 dim 1 : vector<1x256xf32>, i32 -> vector<1x256xf32>
    %c-1_i32 = arith.constant -1 : i32
    %74 = vector.broadcast %c-1_i32 : i32 to vector<1x256xi32>
    %75 = arith.addi %41, %74 : vector<1x256xi32>
    %c0_i32_34 = arith.constant 0 : i32
    %76 = vector.broadcast %c0_i32_34 : i32 to vector<1x256xi32>
    %77 = arith.cmpi sge, %75, %76 : vector<1x256xi32>
    %c-1_i32_35 = arith.constant -1 : i32
    %78 = vector.broadcast %c-1_i32_35 : i32 to vector<1x256xi32>
    %79 = arith.addi %41, %78 : vector<1x256xi32>
    %c16_i32_36 = arith.constant 16 : i32
    %80 = vector.broadcast %c16_i32_36 : i32 to vector<1x256xi32>
    %81 = arith.cmpi slt, %79, %80 : vector<1x256xi32>
    %82 = arith.andi %77, %81 : vector<1x256xi1>
    %cst_37 = arith.constant 0.000000e+00 : f32
    %83 = vector.broadcast %cst_37 : f32 to vector<1x256xf32>
    %84 = arith.select %82, %72, %83 : vector<1x256xi1>, vector<1x256xf32>
    %cst_38 = arith.constant 0.000000e+00 : f32
    %85 = vector.broadcast %cst_38 : f32 to vector<1x256xf32>
    %86 = arith.select %82, %73, %85 : vector<1x256xi1>, vector<1x256xf32>
    %c255_i32 = arith.constant 255 : i32
    %87 = tpu.dynamic_rotate %37 by %c255_i32 dim 1 : vector<1x256xf32>, i32 -> vector<1x256xf32>
    %c255_i32_39 = arith.constant 255 : i32
    %88 = tpu.dynamic_rotate %39 by %c255_i32_39 dim 1 : vector<1x256xf32>, i32 -> vector<1x256xf32>
    %c1_i32_40 = arith.constant 1 : i32
    %89 = vector.broadcast %c1_i32_40 : i32 to vector<1x256xi32>
    %90 = arith.addi %41, %89 : vector<1x256xi32>
    %c0_i32_41 = arith.constant 0 : i32
    %91 = vector.broadcast %c0_i32_41 : i32 to vector<1x256xi32>
    %92 = arith.cmpi sge, %90, %91 : vector<1x256xi32>
    %c1_i32_42 = arith.constant 1 : i32
    %93 = vector.broadcast %c1_i32_42 : i32 to vector<1x256xi32>
    %94 = arith.addi %41, %93 : vector<1x256xi32>
    %c16_i32_43 = arith.constant 16 : i32
    %95 = vector.broadcast %c16_i32_43 : i32 to vector<1x256xi32>
    %96 = arith.cmpi slt, %94, %95 : vector<1x256xi32>
    %97 = arith.andi %92, %96 : vector<1x256xi1>
    %cst_44 = arith.constant 0.000000e+00 : f32
    %98 = vector.broadcast %cst_44 : f32 to vector<1x256xf32>
    %99 = arith.select %97, %87, %98 : vector<1x256xi1>, vector<1x256xf32>
    %cst_45 = arith.constant 0.000000e+00 : f32
    %100 = vector.broadcast %cst_45 : f32 to vector<1x256xf32>
    %101 = arith.select %97, %88, %100 : vector<1x256xi1>, vector<1x256xf32>
    %c254_i32 = arith.constant 254 : i32
    %102 = tpu.dynamic_rotate %37 by %c254_i32 dim 1 : vector<1x256xf32>, i32 -> vector<1x256xf32>
    %c254_i32_46 = arith.constant 254 : i32
    %103 = tpu.dynamic_rotate %39 by %c254_i32_46 dim 1 : vector<1x256xf32>, i32 -> vector<1x256xf32>
    %c2_i32_47 = arith.constant 2 : i32
    %104 = vector.broadcast %c2_i32_47 : i32 to vector<1x256xi32>
    %105 = arith.addi %41, %104 : vector<1x256xi32>
    %c0_i32_48 = arith.constant 0 : i32
    %106 = vector.broadcast %c0_i32_48 : i32 to vector<1x256xi32>
    %107 = arith.cmpi sge, %105, %106 : vector<1x256xi32>
    %c2_i32_49 = arith.constant 2 : i32
    %108 = vector.broadcast %c2_i32_49 : i32 to vector<1x256xi32>
    %109 = arith.addi %41, %108 : vector<1x256xi32>
    %c16_i32_50 = arith.constant 16 : i32
    %110 = vector.broadcast %c16_i32_50 : i32 to vector<1x256xi32>
    %111 = arith.cmpi slt, %109, %110 : vector<1x256xi32>
    %112 = arith.andi %107, %111 : vector<1x256xi1>
    %cst_51 = arith.constant 0.000000e+00 : f32
    %113 = vector.broadcast %cst_51 : f32 to vector<1x256xf32>
    %114 = arith.select %112, %102, %113 : vector<1x256xi1>, vector<1x256xf32>
    %cst_52 = arith.constant 0.000000e+00 : f32
    %115 = vector.broadcast %cst_52 : f32 to vector<1x256xf32>
    %116 = arith.select %112, %103, %115 : vector<1x256xi1>, vector<1x256xf32>
    %c253_i32 = arith.constant 253 : i32
    %117 = tpu.dynamic_rotate %37 by %c253_i32 dim 1 : vector<1x256xf32>, i32 -> vector<1x256xf32>
    %c253_i32_53 = arith.constant 253 : i32
    %118 = tpu.dynamic_rotate %39 by %c253_i32_53 dim 1 : vector<1x256xf32>, i32 -> vector<1x256xf32>
    %c3_i32_54 = arith.constant 3 : i32
    %119 = vector.broadcast %c3_i32_54 : i32 to vector<1x256xi32>
    %120 = arith.addi %41, %119 : vector<1x256xi32>
    %c0_i32_55 = arith.constant 0 : i32
    %121 = vector.broadcast %c0_i32_55 : i32 to vector<1x256xi32>
    %122 = arith.cmpi sge, %120, %121 : vector<1x256xi32>
    %c3_i32_56 = arith.constant 3 : i32
    %123 = vector.broadcast %c3_i32_56 : i32 to vector<1x256xi32>
    %124 = arith.addi %41, %123 : vector<1x256xi32>
    %c16_i32_57 = arith.constant 16 : i32
    %125 = vector.broadcast %c16_i32_57 : i32 to vector<1x256xi32>
    %126 = arith.cmpi slt, %124, %125 : vector<1x256xi32>
    %127 = arith.andi %122, %126 : vector<1x256xi1>
    %cst_58 = arith.constant 0.000000e+00 : f32
    %128 = vector.broadcast %cst_58 : f32 to vector<1x256xf32>
    %129 = arith.select %127, %117, %128 : vector<1x256xi1>, vector<1x256xf32>
    %cst_59 = arith.constant 0.000000e+00 : f32
    %130 = vector.broadcast %cst_59 : f32 to vector<1x256xf32>
    %131 = arith.select %127, %118, %130 : vector<1x256xi1>, vector<1x256xf32>
    %c0_60 = arith.constant 0 : index
    %132 = memref.load %arg7[%c0_60] : memref<1xf32, #tpu.memory_space<smem>>
    %133 = vector.broadcast %132 : f32 to vector<1x256xf32>
    %c48_i32 = arith.constant 48 : i32
    %134 = tpu.dynamic_rotate %54 by %c48_i32 dim 1 : vector<1x256xf32>, i32 -> vector<1x256xf32>
    %c48_i32_61 = arith.constant 48 : i32
    %135 = tpu.dynamic_rotate %56 by %c48_i32_61 dim 1 : vector<1x256xf32>, i32 -> vector<1x256xf32>
    %c0_62 = arith.constant 0 : index
    %136 = memref.load %arg6[%c0_62] : memref<98xf32, #tpu.memory_space<smem>>
    %137 = vector.broadcast %136 : f32 to vector<1x256xf32>
    %138 = arith.mulf %137, %134 : vector<1x256xf32>
    %c49 = arith.constant 49 : index
    %139 = memref.load %arg6[%c49] : memref<98xf32, #tpu.memory_space<smem>>
    %140 = vector.broadcast %139 : f32 to vector<1x256xf32>
    %141 = arith.mulf %140, %135 : vector<1x256xf32>
    %142 = arith.addf %138, %141 : vector<1x256xf32>
    %c48_i32_63 = arith.constant 48 : i32
    %143 = tpu.dynamic_rotate %69 by %c48_i32_63 dim 1 : vector<1x256xf32>, i32 -> vector<1x256xf32>
    %c48_i32_64 = arith.constant 48 : i32
    %144 = tpu.dynamic_rotate %71 by %c48_i32_64 dim 1 : vector<1x256xf32>, i32 -> vector<1x256xf32>
    %c1 = arith.constant 1 : index
    %145 = memref.load %arg6[%c1] : memref<98xf32, #tpu.memory_space<smem>>
    %146 = vector.broadcast %145 : f32 to vector<1x256xf32>
    %147 = arith.mulf %146, %143 : vector<1x256xf32>
    %c50 = arith.constant 50 : index
    %148 = memref.load %arg6[%c50] : memref<98xf32, #tpu.memory_space<smem>>
    %149 = vector.broadcast %148 : f32 to vector<1x256xf32>
    %150 = arith.mulf %149, %144 : vector<1x256xf32>
    %151 = arith.addf %147, %150 : vector<1x256xf32>
    %152 = arith.addf %142, %151 : vector<1x256xf32>
    %c48_i32_65 = arith.constant 48 : i32
    %153 = tpu.dynamic_rotate %84 by %c48_i32_65 dim 1 : vector<1x256xf32>, i32 -> vector<1x256xf32>
    %c48_i32_66 = arith.constant 48 : i32
    %154 = tpu.dynamic_rotate %86 by %c48_i32_66 dim 1 : vector<1x256xf32>, i32 -> vector<1x256xf32>
    %c2 = arith.constant 2 : index
    %155 = memref.load %arg6[%c2] : memref<98xf32, #tpu.memory_space<smem>>
    %156 = vector.broadcast %155 : f32 to vector<1x256xf32>
    %157 = arith.mulf %156, %153 : vector<1x256xf32>
    %c51 = arith.constant 51 : index
    %158 = memref.load %arg6[%c51] : memref<98xf32, #tpu.memory_space<smem>>
    %159 = vector.broadcast %158 : f32 to vector<1x256xf32>
    %160 = arith.mulf %159, %154 : vector<1x256xf32>
    %161 = arith.addf %157, %160 : vector<1x256xf32>
    %162 = arith.addf %152, %161 : vector<1x256xf32>
    %c48_i32_67 = arith.constant 48 : i32
    %163 = tpu.dynamic_rotate %37 by %c48_i32_67 dim 1 : vector<1x256xf32>, i32 -> vector<1x256xf32>
    %c48_i32_68 = arith.constant 48 : i32
    %164 = tpu.dynamic_rotate %39 by %c48_i32_68 dim 1 : vector<1x256xf32>, i32 -> vector<1x256xf32>
    %c3 = arith.constant 3 : index
    %165 = memref.load %arg6[%c3] : memref<98xf32, #tpu.memory_space<smem>>
    %166 = vector.broadcast %165 : f32 to vector<1x256xf32>
    %167 = arith.mulf %166, %163 : vector<1x256xf32>
    %c52 = arith.constant 52 : index
    %168 = memref.load %arg6[%c52] : memref<98xf32, #tpu.memory_space<smem>>
    %169 = vector.broadcast %168 : f32 to vector<1x256xf32>
    %170 = arith.mulf %169, %164 : vector<1x256xf32>
    %171 = arith.addf %167, %170 : vector<1x256xf32>
    %172 = arith.addf %162, %171 : vector<1x256xf32>
    %c48_i32_69 = arith.constant 48 : i32
    %173 = tpu.dynamic_rotate %99 by %c48_i32_69 dim 1 : vector<1x256xf32>, i32 -> vector<1x256xf32>
    %c48_i32_70 = arith.constant 48 : i32
    %174 = tpu.dynamic_rotate %101 by %c48_i32_70 dim 1 : vector<1x256xf32>, i32 -> vector<1x256xf32>
    %c4 = arith.constant 4 : index
    %175 = memref.load %arg6[%c4] : memref<98xf32, #tpu.memory_space<smem>>
    %176 = vector.broadcast %175 : f32 to vector<1x256xf32>
    %177 = arith.mulf %176, %173 : vector<1x256xf32>
    %c53 = arith.constant 53 : index
    %178 = memref.load %arg6[%c53] : memref<98xf32, #tpu.memory_space<smem>>
    %179 = vector.broadcast %178 : f32 to vector<1x256xf32>
    %180 = arith.mulf %179, %174 : vector<1x256xf32>
    %181 = arith.addf %177, %180 : vector<1x256xf32>
    %182 = arith.addf %172, %181 : vector<1x256xf32>
    %c48_i32_71 = arith.constant 48 : i32
    %183 = tpu.dynamic_rotate %114 by %c48_i32_71 dim 1 : vector<1x256xf32>, i32 -> vector<1x256xf32>
    %c48_i32_72 = arith.constant 48 : i32
    %184 = tpu.dynamic_rotate %116 by %c48_i32_72 dim 1 : vector<1x256xf32>, i32 -> vector<1x256xf32>
    %c5 = arith.constant 5 : index
    %185 = memref.load %arg6[%c5] : memref<98xf32, #tpu.memory_space<smem>>
    %186 = vector.broadcast %185 : f32 to vector<1x256xf32>
    %187 = arith.mulf %186, %183 : vector<1x256xf32>
    %c54 = arith.constant 54 : index
    %188 = memref.load %arg6[%c54] : memref<98xf32, #tpu.memory_space<smem>>
    %189 = vector.broadcast %188 : f32 to vector<1x256xf32>
    %190 = arith.mulf %189, %184 : vector<1x256xf32>
    %191 = arith.addf %187, %190 : vector<1x256xf32>
    %192 = arith.addf %182, %191 : vector<1x256xf32>
    %c48_i32_73 = arith.constant 48 : i32
    %193 = tpu.dynamic_rotate %129 by %c48_i32_73 dim 1 : vector<1x256xf32>, i32 -> vector<1x256xf32>
    %c48_i32_74 = arith.constant 48 : i32
    %194 = tpu.dynamic_rotate %131 by %c48_i32_74 dim 1 : vector<1x256xf32>, i32 -> vector<1x256xf32>
    %c6 = arith.constant 6 : index
    %195 = memref.load %arg6[%c6] : memref<98xf32, #tpu.memory_space<smem>>
    %196 = vector.broadcast %195 : f32 to vector<1x256xf32>
    %197 = arith.mulf %196, %193 : vector<1x256xf32>
    %c55 = arith.constant 55 : index
    %198 = memref.load %arg6[%c55] : memref<98xf32, #tpu.memory_space<smem>>
    %199 = vector.broadcast %198 : f32 to vector<1x256xf32>
    %200 = arith.mulf %199, %194 : vector<1x256xf32>
    %201 = arith.addf %197, %200 : vector<1x256xf32>
    %202 = arith.addf %192, %201 : vector<1x256xf32>
    %c-48_i32 = arith.constant -48 : i32
    %203 = vector.broadcast %c-48_i32 : i32 to vector<1x256xi32>
    %204 = arith.addi %0, %203 : vector<1x256xi32>
    %c0_i32_75 = arith.constant 0 : i32
    %205 = vector.broadcast %c0_i32_75 : i32 to vector<1x256xi32>
    %206 = arith.cmpi sge, %204, %205 : vector<1x256xi32>
    %c-48_i32_76 = arith.constant -48 : i32
    %207 = vector.broadcast %c-48_i32_76 : i32 to vector<1x256xi32>
    %208 = arith.addi %0, %207 : vector<1x256xi32>
    %c256_i32 = arith.constant 256 : i32
    %209 = vector.broadcast %c256_i32 : i32 to vector<1x256xi32>
    %210 = arith.cmpi slt, %208, %209 : vector<1x256xi32>
    %211 = arith.andi %206, %210 : vector<1x256xi1>
    %cst_77 = arith.constant 0.000000e+00 : f32
    %212 = vector.broadcast %cst_77 : f32 to vector<1x256xf32>
    %213 = arith.select %211, %202, %212 : vector<1x256xi1>, vector<1x256xf32>
    %214 = arith.addf %133, %213 : vector<1x256xf32>
    %c32_i32 = arith.constant 32 : i32
    %215 = tpu.dynamic_rotate %54 by %c32_i32 dim 1 : vector<1x256xf32>, i32 -> vector<1x256xf32>
    %c32_i32_78 = arith.constant 32 : i32
    %216 = tpu.dynamic_rotate %56 by %c32_i32_78 dim 1 : vector<1x256xf32>, i32 -> vector<1x256xf32>
    %c7 = arith.constant 7 : index
    %217 = memref.load %arg6[%c7] : memref<98xf32, #tpu.memory_space<smem>>
    %218 = vector.broadcast %217 : f32 to vector<1x256xf32>
    %219 = arith.mulf %218, %215 : vector<1x256xf32>
    %c56 = arith.constant 56 : index
    %220 = memref.load %arg6[%c56] : memref<98xf32, #tpu.memory_space<smem>>
    %221 = vector.broadcast %220 : f32 to vector<1x256xf32>
    %222 = arith.mulf %221, %216 : vector<1x256xf32>
    %223 = arith.addf %219, %222 : vector<1x256xf32>
    %c32_i32_79 = arith.constant 32 : i32
    %224 = tpu.dynamic_rotate %69 by %c32_i32_79 dim 1 : vector<1x256xf32>, i32 -> vector<1x256xf32>
    %c32_i32_80 = arith.constant 32 : i32
    %225 = tpu.dynamic_rotate %71 by %c32_i32_80 dim 1 : vector<1x256xf32>, i32 -> vector<1x256xf32>
    %c8 = arith.constant 8 : index
    %226 = memref.load %arg6[%c8] : memref<98xf32, #tpu.memory_space<smem>>
    %227 = vector.broadcast %226 : f32 to vector<1x256xf32>
    %228 = arith.mulf %227, %224 : vector<1x256xf32>
    %c57 = arith.constant 57 : index
    %229 = memref.load %arg6[%c57] : memref<98xf32, #tpu.memory_space<smem>>
    %230 = vector.broadcast %229 : f32 to vector<1x256xf32>
    %231 = arith.mulf %230, %225 : vector<1x256xf32>
    %232 = arith.addf %228, %231 : vector<1x256xf32>
    %233 = arith.addf %223, %232 : vector<1x256xf32>
    %c32_i32_81 = arith.constant 32 : i32
    %234 = tpu.dynamic_rotate %84 by %c32_i32_81 dim 1 : vector<1x256xf32>, i32 -> vector<1x256xf32>
    %c32_i32_82 = arith.constant 32 : i32
    %235 = tpu.dynamic_rotate %86 by %c32_i32_82 dim 1 : vector<1x256xf32>, i32 -> vector<1x256xf32>
    %c9 = arith.constant 9 : index
    %236 = memref.load %arg6[%c9] : memref<98xf32, #tpu.memory_space<smem>>
    %237 = vector.broadcast %236 : f32 to vector<1x256xf32>
    %238 = arith.mulf %237, %234 : vector<1x256xf32>
    %c58 = arith.constant 58 : index
    %239 = memref.load %arg6[%c58] : memref<98xf32, #tpu.memory_space<smem>>
    %240 = vector.broadcast %239 : f32 to vector<1x256xf32>
    %241 = arith.mulf %240, %235 : vector<1x256xf32>
    %242 = arith.addf %238, %241 : vector<1x256xf32>
    %243 = arith.addf %233, %242 : vector<1x256xf32>
    %c32_i32_83 = arith.constant 32 : i32
    %244 = tpu.dynamic_rotate %37 by %c32_i32_83 dim 1 : vector<1x256xf32>, i32 -> vector<1x256xf32>
    %c32_i32_84 = arith.constant 32 : i32
    %245 = tpu.dynamic_rotate %39 by %c32_i32_84 dim 1 : vector<1x256xf32>, i32 -> vector<1x256xf32>
    %c10 = arith.constant 10 : index
    %246 = memref.load %arg6[%c10] : memref<98xf32, #tpu.memory_space<smem>>
    %247 = vector.broadcast %246 : f32 to vector<1x256xf32>
    %248 = arith.mulf %247, %244 : vector<1x256xf32>
    %c59 = arith.constant 59 : index
    %249 = memref.load %arg6[%c59] : memref<98xf32, #tpu.memory_space<smem>>
    %250 = vector.broadcast %249 : f32 to vector<1x256xf32>
    %251 = arith.mulf %250, %245 : vector<1x256xf32>
    %252 = arith.addf %248, %251 : vector<1x256xf32>
    %253 = arith.addf %243, %252 : vector<1x256xf32>
    %c32_i32_85 = arith.constant 32 : i32
    %254 = tpu.dynamic_rotate %99 by %c32_i32_85 dim 1 : vector<1x256xf32>, i32 -> vector<1x256xf32>
    %c32_i32_86 = arith.constant 32 : i32
    %255 = tpu.dynamic_rotate %101 by %c32_i32_86 dim 1 : vector<1x256xf32>, i32 -> vector<1x256xf32>
    %c11 = arith.constant 11 : index
    %256 = memref.load %arg6[%c11] : memref<98xf32, #tpu.memory_space<smem>>
    %257 = vector.broadcast %256 : f32 to vector<1x256xf32>
    %258 = arith.mulf %257, %254 : vector<1x256xf32>
    %c60 = arith.constant 60 : index
    %259 = memref.load %arg6[%c60] : memref<98xf32, #tpu.memory_space<smem>>
    %260 = vector.broadcast %259 : f32 to vector<1x256xf32>
    %261 = arith.mulf %260, %255 : vector<1x256xf32>
    %262 = arith.addf %258, %261 : vector<1x256xf32>
    %263 = arith.addf %253, %262 : vector<1x256xf32>
    %c32_i32_87 = arith.constant 32 : i32
    %264 = tpu.dynamic_rotate %114 by %c32_i32_87 dim 1 : vector<1x256xf32>, i32 -> vector<1x256xf32>
    %c32_i32_88 = arith.constant 32 : i32
    %265 = tpu.dynamic_rotate %116 by %c32_i32_88 dim 1 : vector<1x256xf32>, i32 -> vector<1x256xf32>
    %c12 = arith.constant 12 : index
    %266 = memref.load %arg6[%c12] : memref<98xf32, #tpu.memory_space<smem>>
    %267 = vector.broadcast %266 : f32 to vector<1x256xf32>
    %268 = arith.mulf %267, %264 : vector<1x256xf32>
    %c61 = arith.constant 61 : index
    %269 = memref.load %arg6[%c61] : memref<98xf32, #tpu.memory_space<smem>>
    %270 = vector.broadcast %269 : f32 to vector<1x256xf32>
    %271 = arith.mulf %270, %265 : vector<1x256xf32>
    %272 = arith.addf %268, %271 : vector<1x256xf32>
    %273 = arith.addf %263, %272 : vector<1x256xf32>
    %c32_i32_89 = arith.constant 32 : i32
    %274 = tpu.dynamic_rotate %129 by %c32_i32_89 dim 1 : vector<1x256xf32>, i32 -> vector<1x256xf32>
    %c32_i32_90 = arith.constant 32 : i32
    %275 = tpu.dynamic_rotate %131 by %c32_i32_90 dim 1 : vector<1x256xf32>, i32 -> vector<1x256xf32>
    %c13 = arith.constant 13 : index
    %276 = memref.load %arg6[%c13] : memref<98xf32, #tpu.memory_space<smem>>
    %277 = vector.broadcast %276 : f32 to vector<1x256xf32>
    %278 = arith.mulf %277, %274 : vector<1x256xf32>
    %c62 = arith.constant 62 : index
    %279 = memref.load %arg6[%c62] : memref<98xf32, #tpu.memory_space<smem>>
    %280 = vector.broadcast %279 : f32 to vector<1x256xf32>
    %281 = arith.mulf %280, %275 : vector<1x256xf32>
    %282 = arith.addf %278, %281 : vector<1x256xf32>
    %283 = arith.addf %273, %282 : vector<1x256xf32>
    %c-32_i32 = arith.constant -32 : i32
    %284 = vector.broadcast %c-32_i32 : i32 to vector<1x256xi32>
    %285 = arith.addi %0, %284 : vector<1x256xi32>
    %c0_i32_91 = arith.constant 0 : i32
    %286 = vector.broadcast %c0_i32_91 : i32 to vector<1x256xi32>
    %287 = arith.cmpi sge, %285, %286 : vector<1x256xi32>
    %c-32_i32_92 = arith.constant -32 : i32
    %288 = vector.broadcast %c-32_i32_92 : i32 to vector<1x256xi32>
    %289 = arith.addi %0, %288 : vector<1x256xi32>
    %c256_i32_93 = arith.constant 256 : i32
    %290 = vector.broadcast %c256_i32_93 : i32 to vector<1x256xi32>
    %291 = arith.cmpi slt, %289, %290 : vector<1x256xi32>
    %292 = arith.andi %287, %291 : vector<1x256xi1>
    %cst_94 = arith.constant 0.000000e+00 : f32
    %293 = vector.broadcast %cst_94 : f32 to vector<1x256xf32>
    %294 = arith.select %292, %283, %293 : vector<1x256xi1>, vector<1x256xf32>
    %295 = arith.addf %214, %294 : vector<1x256xf32>
    %c16_i32_95 = arith.constant 16 : i32
    %296 = tpu.dynamic_rotate %54 by %c16_i32_95 dim 1 : vector<1x256xf32>, i32 -> vector<1x256xf32>
    %c16_i32_96 = arith.constant 16 : i32
    %297 = tpu.dynamic_rotate %56 by %c16_i32_96 dim 1 : vector<1x256xf32>, i32 -> vector<1x256xf32>
    %c14 = arith.constant 14 : index
    %298 = memref.load %arg6[%c14] : memref<98xf32, #tpu.memory_space<smem>>
    %299 = vector.broadcast %298 : f32 to vector<1x256xf32>
    %300 = arith.mulf %299, %296 : vector<1x256xf32>
    %c63 = arith.constant 63 : index
    %301 = memref.load %arg6[%c63] : memref<98xf32, #tpu.memory_space<smem>>
    %302 = vector.broadcast %301 : f32 to vector<1x256xf32>
    %303 = arith.mulf %302, %297 : vector<1x256xf32>
    %304 = arith.addf %300, %303 : vector<1x256xf32>
    %c16_i32_97 = arith.constant 16 : i32
    %305 = tpu.dynamic_rotate %69 by %c16_i32_97 dim 1 : vector<1x256xf32>, i32 -> vector<1x256xf32>
    %c16_i32_98 = arith.constant 16 : i32
    %306 = tpu.dynamic_rotate %71 by %c16_i32_98 dim 1 : vector<1x256xf32>, i32 -> vector<1x256xf32>
    %c15 = arith.constant 15 : index
    %307 = memref.load %arg6[%c15] : memref<98xf32, #tpu.memory_space<smem>>
    %308 = vector.broadcast %307 : f32 to vector<1x256xf32>
    %309 = arith.mulf %308, %305 : vector<1x256xf32>
    %c64 = arith.constant 64 : index
    %310 = memref.load %arg6[%c64] : memref<98xf32, #tpu.memory_space<smem>>
    %311 = vector.broadcast %310 : f32 to vector<1x256xf32>
    %312 = arith.mulf %311, %306 : vector<1x256xf32>
    %313 = arith.addf %309, %312 : vector<1x256xf32>
    %314 = arith.addf %304, %313 : vector<1x256xf32>
    %c16_i32_99 = arith.constant 16 : i32
    %315 = tpu.dynamic_rotate %84 by %c16_i32_99 dim 1 : vector<1x256xf32>, i32 -> vector<1x256xf32>
    %c16_i32_100 = arith.constant 16 : i32
    %316 = tpu.dynamic_rotate %86 by %c16_i32_100 dim 1 : vector<1x256xf32>, i32 -> vector<1x256xf32>
    %c16 = arith.constant 16 : index
    %317 = memref.load %arg6[%c16] : memref<98xf32, #tpu.memory_space<smem>>
    %318 = vector.broadcast %317 : f32 to vector<1x256xf32>
    %319 = arith.mulf %318, %315 : vector<1x256xf32>
    %c65 = arith.constant 65 : index
    %320 = memref.load %arg6[%c65] : memref<98xf32, #tpu.memory_space<smem>>
    %321 = vector.broadcast %320 : f32 to vector<1x256xf32>
    %322 = arith.mulf %321, %316 : vector<1x256xf32>
    %323 = arith.addf %319, %322 : vector<1x256xf32>
    %324 = arith.addf %314, %323 : vector<1x256xf32>
    %c16_i32_101 = arith.constant 16 : i32
    %325 = tpu.dynamic_rotate %37 by %c16_i32_101 dim 1 : vector<1x256xf32>, i32 -> vector<1x256xf32>
    %c16_i32_102 = arith.constant 16 : i32
    %326 = tpu.dynamic_rotate %39 by %c16_i32_102 dim 1 : vector<1x256xf32>, i32 -> vector<1x256xf32>
    %c17 = arith.constant 17 : index
    %327 = memref.load %arg6[%c17] : memref<98xf32, #tpu.memory_space<smem>>
    %328 = vector.broadcast %327 : f32 to vector<1x256xf32>
    %329 = arith.mulf %328, %325 : vector<1x256xf32>
    %c66 = arith.constant 66 : index
    %330 = memref.load %arg6[%c66] : memref<98xf32, #tpu.memory_space<smem>>
    %331 = vector.broadcast %330 : f32 to vector<1x256xf32>
    %332 = arith.mulf %331, %326 : vector<1x256xf32>
    %333 = arith.addf %329, %332 : vector<1x256xf32>
    %334 = arith.addf %324, %333 : vector<1x256xf32>
    %c16_i32_103 = arith.constant 16 : i32
    %335 = tpu.dynamic_rotate %99 by %c16_i32_103 dim 1 : vector<1x256xf32>, i32 -> vector<1x256xf32>
    %c16_i32_104 = arith.constant 16 : i32
    %336 = tpu.dynamic_rotate %101 by %c16_i32_104 dim 1 : vector<1x256xf32>, i32 -> vector<1x256xf32>
    %c18 = arith.constant 18 : index
    %337 = memref.load %arg6[%c18] : memref<98xf32, #tpu.memory_space<smem>>
    %338 = vector.broadcast %337 : f32 to vector<1x256xf32>
    %339 = arith.mulf %338, %335 : vector<1x256xf32>
    %c67 = arith.constant 67 : index
    %340 = memref.load %arg6[%c67] : memref<98xf32, #tpu.memory_space<smem>>
    %341 = vector.broadcast %340 : f32 to vector<1x256xf32>
    %342 = arith.mulf %341, %336 : vector<1x256xf32>
    %343 = arith.addf %339, %342 : vector<1x256xf32>
    %344 = arith.addf %334, %343 : vector<1x256xf32>
    %c16_i32_105 = arith.constant 16 : i32
    %345 = tpu.dynamic_rotate %114 by %c16_i32_105 dim 1 : vector<1x256xf32>, i32 -> vector<1x256xf32>
    %c16_i32_106 = arith.constant 16 : i32
    %346 = tpu.dynamic_rotate %116 by %c16_i32_106 dim 1 : vector<1x256xf32>, i32 -> vector<1x256xf32>
    %c19 = arith.constant 19 : index
    %347 = memref.load %arg6[%c19] : memref<98xf32, #tpu.memory_space<smem>>
    %348 = vector.broadcast %347 : f32 to vector<1x256xf32>
    %349 = arith.mulf %348, %345 : vector<1x256xf32>
    %c68 = arith.constant 68 : index
    %350 = memref.load %arg6[%c68] : memref<98xf32, #tpu.memory_space<smem>>
    %351 = vector.broadcast %350 : f32 to vector<1x256xf32>
    %352 = arith.mulf %351, %346 : vector<1x256xf32>
    %353 = arith.addf %349, %352 : vector<1x256xf32>
    %354 = arith.addf %344, %353 : vector<1x256xf32>
    %c16_i32_107 = arith.constant 16 : i32
    %355 = tpu.dynamic_rotate %129 by %c16_i32_107 dim 1 : vector<1x256xf32>, i32 -> vector<1x256xf32>
    %c16_i32_108 = arith.constant 16 : i32
    %356 = tpu.dynamic_rotate %131 by %c16_i32_108 dim 1 : vector<1x256xf32>, i32 -> vector<1x256xf32>
    %c20 = arith.constant 20 : index
    %357 = memref.load %arg6[%c20] : memref<98xf32, #tpu.memory_space<smem>>
    %358 = vector.broadcast %357 : f32 to vector<1x256xf32>
    %359 = arith.mulf %358, %355 : vector<1x256xf32>
    %c69 = arith.constant 69 : index
    %360 = memref.load %arg6[%c69] : memref<98xf32, #tpu.memory_space<smem>>
    %361 = vector.broadcast %360 : f32 to vector<1x256xf32>
    %362 = arith.mulf %361, %356 : vector<1x256xf32>
    %363 = arith.addf %359, %362 : vector<1x256xf32>
    %364 = arith.addf %354, %363 : vector<1x256xf32>
    %c-16_i32 = arith.constant -16 : i32
    %365 = vector.broadcast %c-16_i32 : i32 to vector<1x256xi32>
    %366 = arith.addi %0, %365 : vector<1x256xi32>
    %c0_i32_109 = arith.constant 0 : i32
    %367 = vector.broadcast %c0_i32_109 : i32 to vector<1x256xi32>
    %368 = arith.cmpi sge, %366, %367 : vector<1x256xi32>
    %c-16_i32_110 = arith.constant -16 : i32
    %369 = vector.broadcast %c-16_i32_110 : i32 to vector<1x256xi32>
    %370 = arith.addi %0, %369 : vector<1x256xi32>
    %c256_i32_111 = arith.constant 256 : i32
    %371 = vector.broadcast %c256_i32_111 : i32 to vector<1x256xi32>
    %372 = arith.cmpi slt, %370, %371 : vector<1x256xi32>
    %373 = arith.andi %368, %372 : vector<1x256xi1>
    %cst_112 = arith.constant 0.000000e+00 : f32
    %374 = vector.broadcast %cst_112 : f32 to vector<1x256xf32>
    %375 = arith.select %373, %364, %374 : vector<1x256xi1>, vector<1x256xf32>
    %376 = arith.addf %295, %375 : vector<1x256xf32>
    %c21 = arith.constant 21 : index
    %377 = memref.load %arg6[%c21] : memref<98xf32, #tpu.memory_space<smem>>
    %378 = vector.broadcast %377 : f32 to vector<1x256xf32>
    %379 = arith.mulf %378, %54 : vector<1x256xf32>
    %c70 = arith.constant 70 : index
    %380 = memref.load %arg6[%c70] : memref<98xf32, #tpu.memory_space<smem>>
    %381 = vector.broadcast %380 : f32 to vector<1x256xf32>
    %382 = arith.mulf %381, %56 : vector<1x256xf32>
    %383 = arith.addf %379, %382 : vector<1x256xf32>
    %c22 = arith.constant 22 : index
    %384 = memref.load %arg6[%c22] : memref<98xf32, #tpu.memory_space<smem>>
    %385 = vector.broadcast %384 : f32 to vector<1x256xf32>
    %386 = arith.mulf %385, %69 : vector<1x256xf32>
    %c71 = arith.constant 71 : index
    %387 = memref.load %arg6[%c71] : memref<98xf32, #tpu.memory_space<smem>>
    %388 = vector.broadcast %387 : f32 to vector<1x256xf32>
    %389 = arith.mulf %388, %71 : vector<1x256xf32>
    %390 = arith.addf %386, %389 : vector<1x256xf32>
    %391 = arith.addf %383, %390 : vector<1x256xf32>
    %c23 = arith.constant 23 : index
    %392 = memref.load %arg6[%c23] : memref<98xf32, #tpu.memory_space<smem>>
    %393 = vector.broadcast %392 : f32 to vector<1x256xf32>
    %394 = arith.mulf %393, %84 : vector<1x256xf32>
    %c72 = arith.constant 72 : index
    %395 = memref.load %arg6[%c72] : memref<98xf32, #tpu.memory_space<smem>>
    %396 = vector.broadcast %395 : f32 to vector<1x256xf32>
    %397 = arith.mulf %396, %86 : vector<1x256xf32>
    %398 = arith.addf %394, %397 : vector<1x256xf32>
    %399 = arith.addf %391, %398 : vector<1x256xf32>
    %c24 = arith.constant 24 : index
    %400 = memref.load %arg6[%c24] : memref<98xf32, #tpu.memory_space<smem>>
    %401 = vector.broadcast %400 : f32 to vector<1x256xf32>
    %402 = arith.mulf %401, %37 : vector<1x256xf32>
    %c73 = arith.constant 73 : index
    %403 = memref.load %arg6[%c73] : memref<98xf32, #tpu.memory_space<smem>>
    %404 = vector.broadcast %403 : f32 to vector<1x256xf32>
    %405 = arith.mulf %404, %39 : vector<1x256xf32>
    %406 = arith.addf %402, %405 : vector<1x256xf32>
    %407 = arith.addf %399, %406 : vector<1x256xf32>
    %c25 = arith.constant 25 : index
    %408 = memref.load %arg6[%c25] : memref<98xf32, #tpu.memory_space<smem>>
    %409 = vector.broadcast %408 : f32 to vector<1x256xf32>
    %410 = arith.mulf %409, %99 : vector<1x256xf32>
    %c74 = arith.constant 74 : index
    %411 = memref.load %arg6[%c74] : memref<98xf32, #tpu.memory_space<smem>>
    %412 = vector.broadcast %411 : f32 to vector<1x256xf32>
    %413 = arith.mulf %412, %101 : vector<1x256xf32>
    %414 = arith.addf %410, %413 : vector<1x256xf32>
    %415 = arith.addf %407, %414 : vector<1x256xf32>
    %c26 = arith.constant 26 : index
    %416 = memref.load %arg6[%c26] : memref<98xf32, #tpu.memory_space<smem>>
    %417 = vector.broadcast %416 : f32 to vector<1x256xf32>
    %418 = arith.mulf %417, %114 : vector<1x256xf32>
    %c75 = arith.constant 75 : index
    %419 = memref.load %arg6[%c75] : memref<98xf32, #tpu.memory_space<smem>>
    %420 = vector.broadcast %419 : f32 to vector<1x256xf32>
    %421 = arith.mulf %420, %116 : vector<1x256xf32>
    %422 = arith.addf %418, %421 : vector<1x256xf32>
    %423 = arith.addf %415, %422 : vector<1x256xf32>
    %c27 = arith.constant 27 : index
    %424 = memref.load %arg6[%c27] : memref<98xf32, #tpu.memory_space<smem>>
    %425 = vector.broadcast %424 : f32 to vector<1x256xf32>
    %426 = arith.mulf %425, %129 : vector<1x256xf32>
    %c76 = arith.constant 76 : index
    %427 = memref.load %arg6[%c76] : memref<98xf32, #tpu.memory_space<smem>>
    %428 = vector.broadcast %427 : f32 to vector<1x256xf32>
    %429 = arith.mulf %428, %131 : vector<1x256xf32>
    %430 = arith.addf %426, %429 : vector<1x256xf32>
    %431 = arith.addf %423, %430 : vector<1x256xf32>
    %432 = arith.addf %376, %431 : vector<1x256xf32>
    %c240_i32 = arith.constant 240 : i32
    %433 = tpu.dynamic_rotate %54 by %c240_i32 dim 1 : vector<1x256xf32>, i32 -> vector<1x256xf32>
    %c240_i32_113 = arith.constant 240 : i32
    %434 = tpu.dynamic_rotate %56 by %c240_i32_113 dim 1 : vector<1x256xf32>, i32 -> vector<1x256xf32>
    %c28 = arith.constant 28 : index
    %435 = memref.load %arg6[%c28] : memref<98xf32, #tpu.memory_space<smem>>
    %436 = vector.broadcast %435 : f32 to vector<1x256xf32>
    %437 = arith.mulf %436, %433 : vector<1x256xf32>
    %c77 = arith.constant 77 : index
    %438 = memref.load %arg6[%c77] : memref<98xf32, #tpu.memory_space<smem>>
    %439 = vector.broadcast %438 : f32 to vector<1x256xf32>
    %440 = arith.mulf %439, %434 : vector<1x256xf32>
    %441 = arith.addf %437, %440 : vector<1x256xf32>
    %c240_i32_114 = arith.constant 240 : i32
    %442 = tpu.dynamic_rotate %69 by %c240_i32_114 dim 1 : vector<1x256xf32>, i32 -> vector<1x256xf32>
    %c240_i32_115 = arith.constant 240 : i32
    %443 = tpu.dynamic_rotate %71 by %c240_i32_115 dim 1 : vector<1x256xf32>, i32 -> vector<1x256xf32>
    %c29 = arith.constant 29 : index
    %444 = memref.load %arg6[%c29] : memref<98xf32, #tpu.memory_space<smem>>
    %445 = vector.broadcast %444 : f32 to vector<1x256xf32>
    %446 = arith.mulf %445, %442 : vector<1x256xf32>
    %c78 = arith.constant 78 : index
    %447 = memref.load %arg6[%c78] : memref<98xf32, #tpu.memory_space<smem>>
    %448 = vector.broadcast %447 : f32 to vector<1x256xf32>
    %449 = arith.mulf %448, %443 : vector<1x256xf32>
    %450 = arith.addf %446, %449 : vector<1x256xf32>
    %451 = arith.addf %441, %450 : vector<1x256xf32>
    %c240_i32_116 = arith.constant 240 : i32
    %452 = tpu.dynamic_rotate %84 by %c240_i32_116 dim 1 : vector<1x256xf32>, i32 -> vector<1x256xf32>
    %c240_i32_117 = arith.constant 240 : i32
    %453 = tpu.dynamic_rotate %86 by %c240_i32_117 dim 1 : vector<1x256xf32>, i32 -> vector<1x256xf32>
    %c30 = arith.constant 30 : index
    %454 = memref.load %arg6[%c30] : memref<98xf32, #tpu.memory_space<smem>>
    %455 = vector.broadcast %454 : f32 to vector<1x256xf32>
    %456 = arith.mulf %455, %452 : vector<1x256xf32>
    %c79 = arith.constant 79 : index
    %457 = memref.load %arg6[%c79] : memref<98xf32, #tpu.memory_space<smem>>
    %458 = vector.broadcast %457 : f32 to vector<1x256xf32>
    %459 = arith.mulf %458, %453 : vector<1x256xf32>
    %460 = arith.addf %456, %459 : vector<1x256xf32>
    %461 = arith.addf %451, %460 : vector<1x256xf32>
    %c240_i32_118 = arith.constant 240 : i32
    %462 = tpu.dynamic_rotate %37 by %c240_i32_118 dim 1 : vector<1x256xf32>, i32 -> vector<1x256xf32>
    %c240_i32_119 = arith.constant 240 : i32
    %463 = tpu.dynamic_rotate %39 by %c240_i32_119 dim 1 : vector<1x256xf32>, i32 -> vector<1x256xf32>
    %c31 = arith.constant 31 : index
    %464 = memref.load %arg6[%c31] : memref<98xf32, #tpu.memory_space<smem>>
    %465 = vector.broadcast %464 : f32 to vector<1x256xf32>
    %466 = arith.mulf %465, %462 : vector<1x256xf32>
    %c80 = arith.constant 80 : index
    %467 = memref.load %arg6[%c80] : memref<98xf32, #tpu.memory_space<smem>>
    %468 = vector.broadcast %467 : f32 to vector<1x256xf32>
    %469 = arith.mulf %468, %463 : vector<1x256xf32>
    %470 = arith.addf %466, %469 : vector<1x256xf32>
    %471 = arith.addf %461, %470 : vector<1x256xf32>
    %c240_i32_120 = arith.constant 240 : i32
    %472 = tpu.dynamic_rotate %99 by %c240_i32_120 dim 1 : vector<1x256xf32>, i32 -> vector<1x256xf32>
    %c240_i32_121 = arith.constant 240 : i32
    %473 = tpu.dynamic_rotate %101 by %c240_i32_121 dim 1 : vector<1x256xf32>, i32 -> vector<1x256xf32>
    %c32 = arith.constant 32 : index
    %474 = memref.load %arg6[%c32] : memref<98xf32, #tpu.memory_space<smem>>
    %475 = vector.broadcast %474 : f32 to vector<1x256xf32>
    %476 = arith.mulf %475, %472 : vector<1x256xf32>
    %c81 = arith.constant 81 : index
    %477 = memref.load %arg6[%c81] : memref<98xf32, #tpu.memory_space<smem>>
    %478 = vector.broadcast %477 : f32 to vector<1x256xf32>
    %479 = arith.mulf %478, %473 : vector<1x256xf32>
    %480 = arith.addf %476, %479 : vector<1x256xf32>
    %481 = arith.addf %471, %480 : vector<1x256xf32>
    %c240_i32_122 = arith.constant 240 : i32
    %482 = tpu.dynamic_rotate %114 by %c240_i32_122 dim 1 : vector<1x256xf32>, i32 -> vector<1x256xf32>
    %c240_i32_123 = arith.constant 240 : i32
    %483 = tpu.dynamic_rotate %116 by %c240_i32_123 dim 1 : vector<1x256xf32>, i32 -> vector<1x256xf32>
    %c33 = arith.constant 33 : index
    %484 = memref.load %arg6[%c33] : memref<98xf32, #tpu.memory_space<smem>>
    %485 = vector.broadcast %484 : f32 to vector<1x256xf32>
    %486 = arith.mulf %485, %482 : vector<1x256xf32>
    %c82 = arith.constant 82 : index
    %487 = memref.load %arg6[%c82] : memref<98xf32, #tpu.memory_space<smem>>
    %488 = vector.broadcast %487 : f32 to vector<1x256xf32>
    %489 = arith.mulf %488, %483 : vector<1x256xf32>
    %490 = arith.addf %486, %489 : vector<1x256xf32>
    %491 = arith.addf %481, %490 : vector<1x256xf32>
    %c240_i32_124 = arith.constant 240 : i32
    %492 = tpu.dynamic_rotate %129 by %c240_i32_124 dim 1 : vector<1x256xf32>, i32 -> vector<1x256xf32>
    %c240_i32_125 = arith.constant 240 : i32
    %493 = tpu.dynamic_rotate %131 by %c240_i32_125 dim 1 : vector<1x256xf32>, i32 -> vector<1x256xf32>
    %c34 = arith.constant 34 : index
    %494 = memref.load %arg6[%c34] : memref<98xf32, #tpu.memory_space<smem>>
    %495 = vector.broadcast %494 : f32 to vector<1x256xf32>
    %496 = arith.mulf %495, %492 : vector<1x256xf32>
    %c83 = arith.constant 83 : index
    %497 = memref.load %arg6[%c83] : memref<98xf32, #tpu.memory_space<smem>>
    %498 = vector.broadcast %497 : f32 to vector<1x256xf32>
    %499 = arith.mulf %498, %493 : vector<1x256xf32>
    %500 = arith.addf %496, %499 : vector<1x256xf32>
    %501 = arith.addf %491, %500 : vector<1x256xf32>
    %c16_i32_126 = arith.constant 16 : i32
    %502 = vector.broadcast %c16_i32_126 : i32 to vector<1x256xi32>
    %503 = arith.addi %0, %502 : vector<1x256xi32>
    %c0_i32_127 = arith.constant 0 : i32
    %504 = vector.broadcast %c0_i32_127 : i32 to vector<1x256xi32>
    %505 = arith.cmpi sge, %503, %504 : vector<1x256xi32>
    %c16_i32_128 = arith.constant 16 : i32
    %506 = vector.broadcast %c16_i32_128 : i32 to vector<1x256xi32>
    %507 = arith.addi %0, %506 : vector<1x256xi32>
    %c256_i32_129 = arith.constant 256 : i32
    %508 = vector.broadcast %c256_i32_129 : i32 to vector<1x256xi32>
    %509 = arith.cmpi slt, %507, %508 : vector<1x256xi32>
    %510 = arith.andi %505, %509 : vector<1x256xi1>
    %cst_130 = arith.constant 0.000000e+00 : f32
    %511 = vector.broadcast %cst_130 : f32 to vector<1x256xf32>
    %512 = arith.select %510, %501, %511 : vector<1x256xi1>, vector<1x256xf32>
    %513 = arith.addf %432, %512 : vector<1x256xf32>
    %c224_i32 = arith.constant 224 : i32
    %514 = tpu.dynamic_rotate %54 by %c224_i32 dim 1 : vector<1x256xf32>, i32 -> vector<1x256xf32>
    %c224_i32_131 = arith.constant 224 : i32
    %515 = tpu.dynamic_rotate %56 by %c224_i32_131 dim 1 : vector<1x256xf32>, i32 -> vector<1x256xf32>
    %c35 = arith.constant 35 : index
    %516 = memref.load %arg6[%c35] : memref<98xf32, #tpu.memory_space<smem>>
    %517 = vector.broadcast %516 : f32 to vector<1x256xf32>
    %518 = arith.mulf %517, %514 : vector<1x256xf32>
    %c84 = arith.constant 84 : index
    %519 = memref.load %arg6[%c84] : memref<98xf32, #tpu.memory_space<smem>>
    %520 = vector.broadcast %519 : f32 to vector<1x256xf32>
    %521 = arith.mulf %520, %515 : vector<1x256xf32>
    %522 = arith.addf %518, %521 : vector<1x256xf32>
    %c224_i32_132 = arith.constant 224 : i32
    %523 = tpu.dynamic_rotate %69 by %c224_i32_132 dim 1 : vector<1x256xf32>, i32 -> vector<1x256xf32>
    %c224_i32_133 = arith.constant 224 : i32
    %524 = tpu.dynamic_rotate %71 by %c224_i32_133 dim 1 : vector<1x256xf32>, i32 -> vector<1x256xf32>
    %c36 = arith.constant 36 : index
    %525 = memref.load %arg6[%c36] : memref<98xf32, #tpu.memory_space<smem>>
    %526 = vector.broadcast %525 : f32 to vector<1x256xf32>
    %527 = arith.mulf %526, %523 : vector<1x256xf32>
    %c85 = arith.constant 85 : index
    %528 = memref.load %arg6[%c85] : memref<98xf32, #tpu.memory_space<smem>>
    %529 = vector.broadcast %528 : f32 to vector<1x256xf32>
    %530 = arith.mulf %529, %524 : vector<1x256xf32>
    %531 = arith.addf %527, %530 : vector<1x256xf32>
    %532 = arith.addf %522, %531 : vector<1x256xf32>
    %c224_i32_134 = arith.constant 224 : i32
    %533 = tpu.dynamic_rotate %84 by %c224_i32_134 dim 1 : vector<1x256xf32>, i32 -> vector<1x256xf32>
    %c224_i32_135 = arith.constant 224 : i32
    %534 = tpu.dynamic_rotate %86 by %c224_i32_135 dim 1 : vector<1x256xf32>, i32 -> vector<1x256xf32>
    %c37 = arith.constant 37 : index
    %535 = memref.load %arg6[%c37] : memref<98xf32, #tpu.memory_space<smem>>
    %536 = vector.broadcast %535 : f32 to vector<1x256xf32>
    %537 = arith.mulf %536, %533 : vector<1x256xf32>
    %c86 = arith.constant 86 : index
    %538 = memref.load %arg6[%c86] : memref<98xf32, #tpu.memory_space<smem>>
    %539 = vector.broadcast %538 : f32 to vector<1x256xf32>
    %540 = arith.mulf %539, %534 : vector<1x256xf32>
    %541 = arith.addf %537, %540 : vector<1x256xf32>
    %542 = arith.addf %532, %541 : vector<1x256xf32>
    %c224_i32_136 = arith.constant 224 : i32
    %543 = tpu.dynamic_rotate %37 by %c224_i32_136 dim 1 : vector<1x256xf32>, i32 -> vector<1x256xf32>
    %c224_i32_137 = arith.constant 224 : i32
    %544 = tpu.dynamic_rotate %39 by %c224_i32_137 dim 1 : vector<1x256xf32>, i32 -> vector<1x256xf32>
    %c38 = arith.constant 38 : index
    %545 = memref.load %arg6[%c38] : memref<98xf32, #tpu.memory_space<smem>>
    %546 = vector.broadcast %545 : f32 to vector<1x256xf32>
    %547 = arith.mulf %546, %543 : vector<1x256xf32>
    %c87 = arith.constant 87 : index
    %548 = memref.load %arg6[%c87] : memref<98xf32, #tpu.memory_space<smem>>
    %549 = vector.broadcast %548 : f32 to vector<1x256xf32>
    %550 = arith.mulf %549, %544 : vector<1x256xf32>
    %551 = arith.addf %547, %550 : vector<1x256xf32>
    %552 = arith.addf %542, %551 : vector<1x256xf32>
    %c224_i32_138 = arith.constant 224 : i32
    %553 = tpu.dynamic_rotate %99 by %c224_i32_138 dim 1 : vector<1x256xf32>, i32 -> vector<1x256xf32>
    %c224_i32_139 = arith.constant 224 : i32
    %554 = tpu.dynamic_rotate %101 by %c224_i32_139 dim 1 : vector<1x256xf32>, i32 -> vector<1x256xf32>
    %c39 = arith.constant 39 : index
    %555 = memref.load %arg6[%c39] : memref<98xf32, #tpu.memory_space<smem>>
    %556 = vector.broadcast %555 : f32 to vector<1x256xf32>
    %557 = arith.mulf %556, %553 : vector<1x256xf32>
    %c88 = arith.constant 88 : index
    %558 = memref.load %arg6[%c88] : memref<98xf32, #tpu.memory_space<smem>>
    %559 = vector.broadcast %558 : f32 to vector<1x256xf32>
    %560 = arith.mulf %559, %554 : vector<1x256xf32>
    %561 = arith.addf %557, %560 : vector<1x256xf32>
    %562 = arith.addf %552, %561 : vector<1x256xf32>
    %c224_i32_140 = arith.constant 224 : i32
    %563 = tpu.dynamic_rotate %114 by %c224_i32_140 dim 1 : vector<1x256xf32>, i32 -> vector<1x256xf32>
    %c224_i32_141 = arith.constant 224 : i32
    %564 = tpu.dynamic_rotate %116 by %c224_i32_141 dim 1 : vector<1x256xf32>, i32 -> vector<1x256xf32>
    %c40 = arith.constant 40 : index
    %565 = memref.load %arg6[%c40] : memref<98xf32, #tpu.memory_space<smem>>
    %566 = vector.broadcast %565 : f32 to vector<1x256xf32>
    %567 = arith.mulf %566, %563 : vector<1x256xf32>
    %c89 = arith.constant 89 : index
    %568 = memref.load %arg6[%c89] : memref<98xf32, #tpu.memory_space<smem>>
    %569 = vector.broadcast %568 : f32 to vector<1x256xf32>
    %570 = arith.mulf %569, %564 : vector<1x256xf32>
    %571 = arith.addf %567, %570 : vector<1x256xf32>
    %572 = arith.addf %562, %571 : vector<1x256xf32>
    %c224_i32_142 = arith.constant 224 : i32
    %573 = tpu.dynamic_rotate %129 by %c224_i32_142 dim 1 : vector<1x256xf32>, i32 -> vector<1x256xf32>
    %c224_i32_143 = arith.constant 224 : i32
    %574 = tpu.dynamic_rotate %131 by %c224_i32_143 dim 1 : vector<1x256xf32>, i32 -> vector<1x256xf32>
    %c41 = arith.constant 41 : index
    %575 = memref.load %arg6[%c41] : memref<98xf32, #tpu.memory_space<smem>>
    %576 = vector.broadcast %575 : f32 to vector<1x256xf32>
    %577 = arith.mulf %576, %573 : vector<1x256xf32>
    %c90 = arith.constant 90 : index
    %578 = memref.load %arg6[%c90] : memref<98xf32, #tpu.memory_space<smem>>
    %579 = vector.broadcast %578 : f32 to vector<1x256xf32>
    %580 = arith.mulf %579, %574 : vector<1x256xf32>
    %581 = arith.addf %577, %580 : vector<1x256xf32>
    %582 = arith.addf %572, %581 : vector<1x256xf32>
    %c32_i32_144 = arith.constant 32 : i32
    %583 = vector.broadcast %c32_i32_144 : i32 to vector<1x256xi32>
    %584 = arith.addi %0, %583 : vector<1x256xi32>
    %c0_i32_145 = arith.constant 0 : i32
    %585 = vector.broadcast %c0_i32_145 : i32 to vector<1x256xi32>
    %586 = arith.cmpi sge, %584, %585 : vector<1x256xi32>
    %c32_i32_146 = arith.constant 32 : i32
    %587 = vector.broadcast %c32_i32_146 : i32 to vector<1x256xi32>
    %588 = arith.addi %0, %587 : vector<1x256xi32>
    %c256_i32_147 = arith.constant 256 : i32
    %589 = vector.broadcast %c256_i32_147 : i32 to vector<1x256xi32>
    %590 = arith.cmpi slt, %588, %589 : vector<1x256xi32>
    %591 = arith.andi %586, %590 : vector<1x256xi1>
    %cst_148 = arith.constant 0.000000e+00 : f32
    %592 = vector.broadcast %cst_148 : f32 to vector<1x256xf32>
    %593 = arith.select %591, %582, %592 : vector<1x256xi1>, vector<1x256xf32>
    %594 = arith.addf %513, %593 : vector<1x256xf32>
    %c208_i32 = arith.constant 208 : i32
    %595 = tpu.dynamic_rotate %54 by %c208_i32 dim 1 : vector<1x256xf32>, i32 -> vector<1x256xf32>
    %c208_i32_149 = arith.constant 208 : i32
    %596 = tpu.dynamic_rotate %56 by %c208_i32_149 dim 1 : vector<1x256xf32>, i32 -> vector<1x256xf32>
    %c42 = arith.constant 42 : index
    %597 = memref.load %arg6[%c42] : memref<98xf32, #tpu.memory_space<smem>>
    %598 = vector.broadcast %597 : f32 to vector<1x256xf32>
    %599 = arith.mulf %598, %595 : vector<1x256xf32>
    %c91 = arith.constant 91 : index
    %600 = memref.load %arg6[%c91] : memref<98xf32, #tpu.memory_space<smem>>
    %601 = vector.broadcast %600 : f32 to vector<1x256xf32>
    %602 = arith.mulf %601, %596 : vector<1x256xf32>
    %603 = arith.addf %599, %602 : vector<1x256xf32>
    %c208_i32_150 = arith.constant 208 : i32
    %604 = tpu.dynamic_rotate %69 by %c208_i32_150 dim 1 : vector<1x256xf32>, i32 -> vector<1x256xf32>
    %c208_i32_151 = arith.constant 208 : i32
    %605 = tpu.dynamic_rotate %71 by %c208_i32_151 dim 1 : vector<1x256xf32>, i32 -> vector<1x256xf32>
    %c43 = arith.constant 43 : index
    %606 = memref.load %arg6[%c43] : memref<98xf32, #tpu.memory_space<smem>>
    %607 = vector.broadcast %606 : f32 to vector<1x256xf32>
    %608 = arith.mulf %607, %604 : vector<1x256xf32>
    %c92 = arith.constant 92 : index
    %609 = memref.load %arg6[%c92] : memref<98xf32, #tpu.memory_space<smem>>
    %610 = vector.broadcast %609 : f32 to vector<1x256xf32>
    %611 = arith.mulf %610, %605 : vector<1x256xf32>
    %612 = arith.addf %608, %611 : vector<1x256xf32>
    %613 = arith.addf %603, %612 : vector<1x256xf32>
    %c208_i32_152 = arith.constant 208 : i32
    %614 = tpu.dynamic_rotate %84 by %c208_i32_152 dim 1 : vector<1x256xf32>, i32 -> vector<1x256xf32>
    %c208_i32_153 = arith.constant 208 : i32
    %615 = tpu.dynamic_rotate %86 by %c208_i32_153 dim 1 : vector<1x256xf32>, i32 -> vector<1x256xf32>
    %c44 = arith.constant 44 : index
    %616 = memref.load %arg6[%c44] : memref<98xf32, #tpu.memory_space<smem>>
    %617 = vector.broadcast %616 : f32 to vector<1x256xf32>
    %618 = arith.mulf %617, %614 : vector<1x256xf32>
    %c93 = arith.constant 93 : index
    %619 = memref.load %arg6[%c93] : memref<98xf32, #tpu.memory_space<smem>>
    %620 = vector.broadcast %619 : f32 to vector<1x256xf32>
    %621 = arith.mulf %620, %615 : vector<1x256xf32>
    %622 = arith.addf %618, %621 : vector<1x256xf32>
    %623 = arith.addf %613, %622 : vector<1x256xf32>
    %c208_i32_154 = arith.constant 208 : i32
    %624 = tpu.dynamic_rotate %37 by %c208_i32_154 dim 1 : vector<1x256xf32>, i32 -> vector<1x256xf32>
    %c208_i32_155 = arith.constant 208 : i32
    %625 = tpu.dynamic_rotate %39 by %c208_i32_155 dim 1 : vector<1x256xf32>, i32 -> vector<1x256xf32>
    %c45 = arith.constant 45 : index
    %626 = memref.load %arg6[%c45] : memref<98xf32, #tpu.memory_space<smem>>
    %627 = vector.broadcast %626 : f32 to vector<1x256xf32>
    %628 = arith.mulf %627, %624 : vector<1x256xf32>
    %c94 = arith.constant 94 : index
    %629 = memref.load %arg6[%c94] : memref<98xf32, #tpu.memory_space<smem>>
    %630 = vector.broadcast %629 : f32 to vector<1x256xf32>
    %631 = arith.mulf %630, %625 : vector<1x256xf32>
    %632 = arith.addf %628, %631 : vector<1x256xf32>
    %633 = arith.addf %623, %632 : vector<1x256xf32>
    %c208_i32_156 = arith.constant 208 : i32
    %634 = tpu.dynamic_rotate %99 by %c208_i32_156 dim 1 : vector<1x256xf32>, i32 -> vector<1x256xf32>
    %c208_i32_157 = arith.constant 208 : i32
    %635 = tpu.dynamic_rotate %101 by %c208_i32_157 dim 1 : vector<1x256xf32>, i32 -> vector<1x256xf32>
    %c46 = arith.constant 46 : index
    %636 = memref.load %arg6[%c46] : memref<98xf32, #tpu.memory_space<smem>>
    %637 = vector.broadcast %636 : f32 to vector<1x256xf32>
    %638 = arith.mulf %637, %634 : vector<1x256xf32>
    %c95 = arith.constant 95 : index
    %639 = memref.load %arg6[%c95] : memref<98xf32, #tpu.memory_space<smem>>
    %640 = vector.broadcast %639 : f32 to vector<1x256xf32>
    %641 = arith.mulf %640, %635 : vector<1x256xf32>
    %642 = arith.addf %638, %641 : vector<1x256xf32>
    %643 = arith.addf %633, %642 : vector<1x256xf32>
    %c208_i32_158 = arith.constant 208 : i32
    %644 = tpu.dynamic_rotate %114 by %c208_i32_158 dim 1 : vector<1x256xf32>, i32 -> vector<1x256xf32>
    %c208_i32_159 = arith.constant 208 : i32
    %645 = tpu.dynamic_rotate %116 by %c208_i32_159 dim 1 : vector<1x256xf32>, i32 -> vector<1x256xf32>
    %c47 = arith.constant 47 : index
    %646 = memref.load %arg6[%c47] : memref<98xf32, #tpu.memory_space<smem>>
    %647 = vector.broadcast %646 : f32 to vector<1x256xf32>
    %648 = arith.mulf %647, %644 : vector<1x256xf32>
    %c96 = arith.constant 96 : index
    %649 = memref.load %arg6[%c96] : memref<98xf32, #tpu.memory_space<smem>>
    %650 = vector.broadcast %649 : f32 to vector<1x256xf32>
    %651 = arith.mulf %650, %645 : vector<1x256xf32>
    %652 = arith.addf %648, %651 : vector<1x256xf32>
    %653 = arith.addf %643, %652 : vector<1x256xf32>
    %c208_i32_160 = arith.constant 208 : i32
    %654 = tpu.dynamic_rotate %129 by %c208_i32_160 dim 1 : vector<1x256xf32>, i32 -> vector<1x256xf32>
    %c208_i32_161 = arith.constant 208 : i32
    %655 = tpu.dynamic_rotate %131 by %c208_i32_161 dim 1 : vector<1x256xf32>, i32 -> vector<1x256xf32>
    %c48 = arith.constant 48 : index
    %656 = memref.load %arg6[%c48] : memref<98xf32, #tpu.memory_space<smem>>
    %657 = vector.broadcast %656 : f32 to vector<1x256xf32>
    %658 = arith.mulf %657, %654 : vector<1x256xf32>
    %c97 = arith.constant 97 : index
    %659 = memref.load %arg6[%c97] : memref<98xf32, #tpu.memory_space<smem>>
    %660 = vector.broadcast %659 : f32 to vector<1x256xf32>
    %661 = arith.mulf %660, %655 : vector<1x256xf32>
    %662 = arith.addf %658, %661 : vector<1x256xf32>
    %663 = arith.addf %653, %662 : vector<1x256xf32>
    %c48_i32_162 = arith.constant 48 : i32
    %664 = vector.broadcast %c48_i32_162 : i32 to vector<1x256xi32>
    %665 = arith.addi %0, %664 : vector<1x256xi32>
    %c0_i32_163 = arith.constant 0 : i32
    %666 = vector.broadcast %c0_i32_163 : i32 to vector<1x256xi32>
    %667 = arith.cmpi sge, %665, %666 : vector<1x256xi32>
    %c48_i32_164 = arith.constant 48 : i32
    %668 = vector.broadcast %c48_i32_164 : i32 to vector<1x256xi32>
    %669 = arith.addi %0, %668 : vector<1x256xi32>
    %c256_i32_165 = arith.constant 256 : i32
    %670 = vector.broadcast %c256_i32_165 : i32 to vector<1x256xi32>
    %671 = arith.cmpi slt, %669, %670 : vector<1x256xi32>
    %672 = arith.andi %667, %671 : vector<1x256xi1>
    %cst_166 = arith.constant 0.000000e+00 : f32
    %673 = vector.broadcast %cst_166 : f32 to vector<1x256xf32>
    %674 = arith.select %672, %663, %673 : vector<1x256xi1>, vector<1x256xf32>
    %675 = arith.addf %594, %674 : vector<1x256xf32>
    %676 = arith.negf %675 : vector<1x256xf32>
    %677 = math.exp %676 : vector<1x256xf32>
    %cst_167 = arith.constant 1.000000e+00 : f32
    %678 = vector.broadcast %cst_167 : f32 to vector<1x256xf32>
    %679 = arith.addf %678, %677 : vector<1x256xf32>
    %680 = arith.divf %678, %679 : vector<1x256xf32>
    %c0_168 = arith.constant 0 : index
    %c0_169 = arith.constant 0 : index
    %c0_170 = arith.constant 0 : index
    %681 = vector.load %arg1[%c0_168, %c0_169, %c0_170] : memref<1x32x256xf32, #tpu.memory_space<vmem>>, vector<1x32x256xf32>
    %682 = vector.shape_cast %681 : vector<1x32x256xf32> to vector<32x256xf32>
    %683 = vector.broadcast %29 : vector<32x1xf32> to vector<32x256xf32>
    %684 = arith.mulf %682, %683 : vector<32x256xf32>
    %685 = vector.broadcast %680 : vector<1x256xf32> to vector<32x256xf32>
    %686 = arith.mulf %684, %685 : vector<32x256xf32>
    %c0_171 = arith.constant 0 : index
    %c0_172 = arith.constant 0 : index
    %c0_173 = arith.constant 0 : index
    %687 = vector.load %arg8[%c0_171, %c0_172, %c0_173] : memref<1x32x256xf32, #tpu.memory_space<vmem>>, vector<1x32x256xf32>
    %688 = vector.shape_cast %687 : vector<1x32x256xf32> to vector<32x256xf32>
    %689 = vector.shape_cast %686 : vector<32x256xf32> to vector<1x32x256xf32>
    tpu.vector_store %arg8[%c0_171, %c0_172, %c0_173], %689 {strides = array<i32>} : memref<1x32x256xf32, #tpu.memory_space<vmem>>, vector<1x32x256xf32>,
    return
  }
  func.func @transform_0(%arg0: i32) -> (i32, i32, i32) {
    %c0_i32 = arith.constant 0 : i32
    %c0_i32_0 = arith.constant 0 : i32
    %c0_i32_1 = arith.constant 0 : i32
    return %arg0, %c0_i32, %c0_i32_0 : i32, i32, i32
  }
  func.func @transform_1(%arg0: i32) -> (i32, i32) {
    %c0_i32 = arith.constant 0 : i32
    %c0_i32_0 = arith.constant 0 : i32
    %c0_i32_1 = arith.constant 0 : i32
    return %c0_i32, %c0_i32_0 : i32, i32
  }
  func.func @transform_2(%arg0: i32) -> (i32, i32) {
    %c0_i32 = arith.constant 0 : i32
    %c0_i32_0 = arith.constant 0 : i32
    %c0_i32_1 = arith.constant 0 : i32
    return %c0_i32, %c0_i32_0 : i32, i32
  }
  func.func @transform_3(%arg0: i32) -> (i32, i32) {
    %c0_i32 = arith.constant 0 : i32
    %c0_i32_0 = arith.constant 0 : i32
    %c0_i32_1 = arith.constant 0 : i32
    return %c0_i32, %c0_i32_0 : i32, i32
  }
  func.func @transform_4(%arg0: i32) -> (i32, i32) {
    %c0_i32 = arith.constant 0 : i32
    %c0_i32_0 = arith.constant 0 : i32
    %c0_i32_1 = arith.constant 0 : i32
    return %c0_i32, %c0_i32_0 : i32, i32
  }
  func.func @transform_5(%arg0: i32) -> i32 {
    %c0_i32 = arith.constant 0 : i32
    %c0_i32_0 = arith.constant 0 : i32
    return %c0_i32 : i32
  }
  func.func @transform_6(%arg0: i32) -> i32 {
    %c0_i32 = arith.constant 0 : i32
    %c0_i32_0 = arith.constant 0 : i32
    return %c0_i32 : i32
  }
  func.func @transform_7(%arg0: i32) -> (i32, i32, i32) {
    %c0_i32 = arith.constant 0 : i32
    %c0_i32_0 = arith.constant 0 : i32
    %c0_i32_1 = arith.constant 0 : i32
    return %arg0, %c0_i32, %c0_i32_0 : i32, i32, i32
  }
}

</mosaic_0001>

<bundles_post_ra>
// kernel: tpu_custom_call.1
= control target key start
LH: loop header
LB: loop body
LE: loop exit
PB: predicated region body
PF: predicated region fallthrough
CT: control target
= control target key end

     0   :  { %s5056_s0 = inlined_call_operand.hbm [shape: f32[2,32,256], index: 0, kind: input, shape index: {}]   ;;  %s5057_s1 = inlined_call_operand.vmem [shape: f32[2,32], index: 1, kind: input, shape index: {}]   ;;  %s5058_s2 = inlined_call_operand.vmem [shape: f32[2,1], index: 2, kind: input, shape index: {}]   ;;  %s5059_s3 = inlined_call_operand.vmem [shape: f32[32,2], index: 3, kind: input, shape index: {}]   ;;  %s5060_s4 = inlined_call_operand.vmem [shape: f32[32,1], index: 4, kind: input, shape index: {}]   ;;  %s5061_s5 = inlined_call_operand.vmem [shape: f32[98], index: 5, kind: input, shape index: {}]   ;;  %s5062_s6 = inlined_call_operand.<no memory space> [shape: f32[1], index: 6, kind: input, shape index: {}]   ;;  %s5063_s7 = inlined_call_operand.hbm [shape: f32[2,32,256], index: 7, kind: output, shape index: {}]  }
   0x1   :  { %5172 = sst [smem:[#allocation116_spill]] %s5056_s0 }
   0x2   :  { %5173 = sst [smem:[#allocation117_spill]] %s5057_s1 }
   0x3   :  { %5174 = sst [smem:[#allocation118_spill]] %s5058_s2 }
   0x4   :  { %5175 = sst [smem:[#allocation119_spill]] %s5059_s3 }
   0x5   :  { %5176 = sst [smem:[#allocation120_spill]] %s5060_s4 }
   0x6   :  { %5177 = sst [smem:[#allocation121_spill]] %s5061_s5 }
   0x7   :  { %5178 = sst [smem:[#allocation122_spill]] %s5063_s7 }
   0x8   :  { %12 = sst [smem:[#allocation2]] %s5062_s6 }
   0x9   :  { %13 = vsyncpa [#allocation4], 0 }
   0xa   :  { %15 = vsyncpa [#allocation4 + $0x1], 0 }
   0xb   :  { %16 = vsyncpa [#allocation6], 0 }
   0xc   :  { %17 = vsyncpa [#allocation5], 0 }
   0xd   :  { %19 = vsyncpa [#allocation5 + $0x1], 0  ;;  %s2641_s26 = smov 0   ;;  %s2643_s27 = smov 0  }
   0xe   :  { %s2645_s28 = smov 0   ;;  %s2647_s29 = smov 0  }
   0xf LB: > { %5179 = sst [smem:[#allocation12_spill]] %s2560_s26  ;;  %s2662_s6 = sadd.s32 4294967295, %s2572_s29   ;;  %s2572_s29 = sphi %s2647_s29, %s5483_s29   ;;  %s2568_s28 = sphi %s2645_s28, %s5486_s28   ;;  %s2564_s27 = sphi %s2643_s27, %s5485_s27   ;;  %s2560_s26 = sphi %s2641_s26, %s5484_s26  }
  0x10   : > { %5180 = sst [smem:[#allocation13_spill]] %s2564_s27  ;;  %s2182_s30 = sadd.s32 4294967294, %s2572_s29  }
  0x11   : > { %5181 = sst [smem:[#allocation14_spill]] %s2568_s28  ;;  %s2666_s8 = sadd.s32 1, %s2572_s29  }
  0x12   : > { %5182 = sst [smem:[#allocation15_spill]] %s2572_s29  ;;  %s32_s9 = sadd.s32 1, %s2568_s28 }
  0x13   : > { %5183 = sst [smem:[#allocation16_spill]] %s2662_s6  ;;  %s29_s10 = ssub.s32 %s2572_s29, %s2666_s8 }
  0x14   : > { %5184 = sst [smem:[#allocation17_spill]] %s2666_s8  ;;  %p39_p0 = scmp.ne.s32.totalorder %s2568_s28, %s2564_s27 }
  0x15   : > { %p30_p1 = scmp.eq.s32.totalorder %s29_s10, 0  ;;  %p40_p2 = scmp.eq.s32.totalorder %s2572_s29, 0 }
  0x16   : > { %p45_p3 = scmp.ne.s32.totalorder %s2564_s27, %s2560_s26  ;;  %p5065_p4 = scmp.eq.s32.totalorder %s2662_s6, 0 }
  0x17   : > { %s2678_s11 = scalar_select %p30_p1, %s2568_s28, %s32_s9  }
  0x18   : > { %p2680_p5 = por %p40_p2, %p39_p0  ;;  %p2686_p6 = por %p5065_p4, %p45_p3 }
  0x19   : > { %5185 = sst [smem:[#allocation18_spill]] %s2678_s11  ;;  %p195_p7 = scmp.eq.s32.totalorder %s2662_s6, 1 }
  0x1a   : > { %s5187_s13 = scalar_select %p2686_p6, 1, 0 }
  0x1b   : > { %p201_p8 = scmp.eq.s32.totalorder %s2182_s30, 1  ;;  %p2183_p9 = scmp.ge.s32.totalorder %s2572_s29, 1 }
  0x1c   : > { %p208_p10 = scmp.lt.s32.totalorder %s2572_s29, 3  ;;  %p2693_p11 = por %p195_p7, %p39_p0 }
  0x1d   : > { %p2697_p12 = por %p201_p8, %p45_p3  ;;  %s5193_s5 = sld [smem:[#allocation121_spill]] }
  0x1e   : > { %s5188_s14 = scalar_select %p2693_p11, 1, 0 }
  0x1f   : > { %s5190_s15 = scalar_select %p2697_p12, 1, 0 }
  0x20   : > { %5189 = sst [smem:[#allocation19_spill]] %s5188_s14  ;;  %p2701_p13 = pnand %p2183_p9, %p208_p10 }
  0x21   : > { %5191 = sst [smem:[#allocation20_spill]] %s5190_s15  ;;  %p2374_p2 = scmp.lt.s32.totalorder %s2572_s29, 2 }
  0x22   : > { %p2361_p1 = pneg %p2701_p13  ;;  %s247_s21 = sand.u32 1, %s2568_s28  }
  0x23   : > { %s233_s19 = sshll.u32 %s5193_s5, 4  ;;  %p2721_p3 = pnand %p2374_p2, %p2680_p5  ;;  %s234_s19 = int_to_ptr.vmem [resolvable:$true] %s233_s19 }
  0x24   : > { %p2714_p7 = pnand %p2361_p1, %p5065_p4  ;;  %s2186_s23 = sshll.u32 %s247_s21, 6 }
  0x25   : > { %s2457_s24 = scalar_lea.vmem %s234_s19, 16  ;;  %p2465_p12 = scmp.lt.s32.totalorder %s234_s19, %s234_s19 }
  0x26   : > { %p2458_p8 = scmp.ne.s32.totalorder %s234_s19, %s2457_s24  ;;  %p2459_p9 = pneg %p2714_p7 }
  0x27   : > { %p2466_p11 = scmp.lt.s32.totalorder %s2457_s24, %s2457_s24 }
  0x28   : > { %p2460_p10 = pnand %p2459_p9, %p2458_p8 }
  0x29   : > { %p2467_p1 = por %p2466_p11, %p2465_p12 }
  0x2a   : > { %p2461_p0 = pneg %p2460_p10 }
  0x2c   : > { %p2468_p4 = pnand %p2467_p1, %p2461_p0 }
  0x2e   : > { %2471 = shalt.err (!%p2468_p4)
}
  0x2f   : > { %s2574_s25 = smov [#allocation7]   ;;  %s2308_s30 = sshll.u32 %s2572_s29, 10 }
  0x30   : > { %2364 = dma.vmem_to_smem (!%p2714_p7), %s234_s19, 16, %s2574_s25, [#allocation6]  }
  0x31   : > { %s251_s9 = scalar_lea.vmem [#allocation3], %s2186_s23  ;;  %s5196_s0 = sld [smem:[#allocation116_spill]] }
  0x32   : > { %s258_s10 = sshll.u32 %s251_s9, 4  ;;  %s2737_s24 = scalar_lea.sflag [#allocation4], %s247_s21  ;;  %s2735_s10 = int_to_ptr.vmem [resolvable:$true] %s258_s10 }
  0x33   : > { %p2474_p5 = pneg %p2721_p3 }
  0x37   : > { %s2733_s18 = scalar_lea.hbm %s5196_s0, %s2308_s30  ;;  %s2477_s25 = scalar_lea.hbm %s5196_s0, 2048 }
  0x38   : > { %s2472_s20 = scalar_lea.hbm %s2733_s18, 1024  ;;  %p2478_p0 = scmp.lt.u32.totalorder %s2733_s18, %s5196_s0 }
  0x39   : > { %p2473_p4 = scmp.ne.s32.totalorder %s2733_s18, %s2472_s20  ;;  %p2479_p2 = scmp.lt.u32.totalorder %s2477_s25, %s2472_s20 }
  0x3a   : > { %p2481_p8 = scmp.lt.u32.totalorder %s2472_s20, %s2733_s18 }
  0x3b   : > { %p2475_p11 = pnand %p2474_p5, %p2473_p4  ;;  %p2480_p7 = por %p2479_p2, %p2478_p0 }
  0x3d   : > { %p2476_p12 = pneg %p2475_p11  ;;  %p2482_p9 = por %p2481_p8, %p2480_p7 }
  0x3f   : > { %p2483_p10 = pnand %p2482_p9, %p2476_p12 }
  0x41   : > { %2486 = shalt.err (!%p2483_p10)
}
  0x42   : > { %s2487_s21 = scalar_lea.vmem %s2735_s10, 1024  ;;  %s2575_s12 = smov [#allocation3]  }
  0x43   : > { %p2488_p1 = scmp.ne.s32.totalorder %s2735_s10, %s2487_s21  ;;  %s2492_s17 = sshll.u32 %s2575_s12, 4  ;;  %s2493_s17 = int_to_ptr.vmem [resolvable:$false] %s2492_s17 }
  0x44   : > { %s2494_s19 = scalar_lea.vmem %s2493_s17, 2048  ;;  %p2495_p6 = scmp.lt.s32.totalorder %s2735_s10, %s2493_s17 }
  0x45   : > { %p2490_p4 = pnand %p2488_p1, %p2474_p5  ;;  %p2496_p0 = scmp.lt.s32.totalorder %s2494_s19, %s2487_s21 }
  0x47   : > { %p2491_p11 = pneg %p2490_p4  ;;  %p2497_p2 = por %p2496_p0, %p2495_p6 }
  0x49   : > { %p2498_p7 = pnand %p2497_p2, %p2491_p11 }
  0x4b   : > { %2501 = shalt.err (!%p2498_p7)
}
  0x4c   : > { %s2576_s20 = smov 256   ;;  %s2577_s23 = smov 16  }
  0x4d   : > { %2368 = dma.hbm_to_vmem [thread:$0]  (!%p2721_p3), %s2733_s18, 1024, %s2735_s10, %s2737_s24, %s2576_s20, %s2576_s20, %s2577_s23  }
  0x4e   : > { %270 = sbr.rel (%p2701_p13) target bundleno = 1689 (0x699), region = 48 }
  0x55   : > { %s2768_s25 = sand.u32 1, %s2564_s27   ;;  %p5198_p6 = scmp.ne.s32.totalorder %s5187_s13, 0 }
  0x56   : > { %5197 = sst [smem:[#allocation21_spill]] %s2768_s25  ;;  %s5133_s30 = sshll.u32 %s2768_s25, 6 }
  0x57   : > { %s273_s9 = scalar_lea.sflag [#allocation4], %s2768_s25  ;;  %s276_s21 = scalar_lea.vmem [#allocation3], %s5133_s30 }
  0x58   : > { %2547 = dma.done.wait (%p5198_p6), %s273_s9, 1024  }
  0x59   : > { %2549 = vsyncadd (%p5198_p6), %s273_s9, 4294966272  ;;  %p5199_p3 = scmp.eq.s32.totalorder %s2662_s6, 0 }
  0x5b   : > { %2551 = dma.done.wait (%p5199_p3), [#allocation6], 16   ;;  %p5200_p13 = pmov %p5199_p3 }
  0x5d   : > { %2553 = vsyncadd (%p5200_p13), [#allocation6], 4294967280 }
  0x5e   : > { %285 = sfence }
  0x5f   : > { %v2782_v0 = vld [vmem:[%s276_s21] sm:$0xff]  ;;  %v2784_v1 = vld [vmem:[%s276_s21 + $0x8] sm:$0xff]  ;;  %v2786_v2 = vld [vmem:[%s276_s21 + $0x10] sm:$0xff]  ;;  %v2578_v16 = vmov 0.0|0.0   ;;  %vm2579_vm0 = vmmov 0   ;;  %v2580_v17 = vmov 0.0   ;;  %v5067_v55 = vlaneseq }
  0x60   : > { %v339_v3 = vmax.f32 %v2782_v0, %v2784_v1  ;;  %v323_v4 = vadd.f32 %v2784_v1, %v2782_v0  ;;  %v2792_v5 = vld [vmem:[%s276_s21 + $0x18] sm:$0xff]  ;;  %v2798_v8 = vld [vmem:[%s276_s21 + $0x30] sm:$0xff]  ;;  %v2802_v10 = vld [vmem:[%s276_s21 + $0x20] sm:$0xff]  ;;  %2339 = vmatprep.subr.bf16.mxu0 %v2578_v16  ;;  %2328 = vmatprep.mubr.msk.f32.mxu0 %vm2579_vm0, %v2580_v17  ;;  %s5201_s2 = sld [smem:[#allocation118_spill]]  ;;  %v2581_v19 = vmov 0   ;;  %vm351_vm1 = vcmask 7168  }
  0x61   : > { %v342_v6 = vmax.f32 %v2786_v2, %v2792_v5  ;;  %v326_v7 = vadd.f32 %v2792_v5, %v2786_v2  ;;  %v2800_v9 = vld [vmem:[%s276_s21 + $0x38] sm:$0xff]  ;;  %v2804_v11 = vld [vmem:[%s276_s21 + $0x28] sm:$0xff]  ;;  %2431 = vset.pattern.permute.xlu0 %v2581_v19  ;;  %2432 = vset.pattern.permute.xlu1 %v2581_v19  ;;  %s5202_s1 = sld [smem:[#allocation117_spill]]  ;;  %vm363_vm2 = vcmask 261120   ;;  %s5203_s3 = sld [smem:[#allocation119_spill]]  ;;  %vm466_vm3 = vcmask 15360  }
  0x62   : > { %340 = vmax.xlane.f32.xlu1 %v339_v3  ;;  %324 = vadd.xlane.f32.xlu0 %v323_v4  ;;  %v332_v12 = vadd.f32 %v2800_v9, %v2798_v8  ;;  %v329_v13 = vadd.f32 %v2804_v11, %v2802_v10  ;;  %v348_v14 = vmax.f32 %v2798_v8, %v2800_v9  ;;  %s5204_s4 = sld [smem:[#allocation120_spill]]  ;;  %vm479_vm4 = vcmask 1041408   ;;  %s2582_s17 = smov 127  }
  0x63   : > { %v345_v15 = vmax.f32 %v2802_v10, %v2804_v11  ;;  %v2850_v58 = vand.u32 127, %v5067_v55  ;;  %s5132_s19 = smov 16   ;;  %s2584_s20 = smov 48   ;;  %vm748_vm5 = vcmask 130048   ;;  %vm751_vm6 = vcmask 392192  }
  0x64   : > { %s5134_s23 = smov 80   ;;  %s2586_s9 = smov 112   ;;  %vm753_vm7 = vcmask 523264   ;;  %vm755_vm8 = vcmask 654336   ;;  %vm757_vm9 = vcmask 785408   ;;  %vm759_vm10 = vcmask 916480  }
  0x65   : > { %s2587_s21 = smov 32   ;;  %s2588_s13 = smov 64   ;;  %vm765_vm13 = vcmp.lt.s32.totalorder %v2850_v58, 3 }
  0x66   : > { %343 = vmax.xlane.f32.xlu1 %v342_v6  ;;  %327 = vadd.xlane.f32.xlu0 %v326_v7  ;;  %v357_v18 = vld [vmem:[%s5201_s2] sm:$0x3]  ;;  %s5136_s16 = smov 96   ;;  %s2591_s22 = smov 3  }
  0x67   : > { %v356_v38 = vld [vmem:[%s5202_s1] sm:$0x3]  ;;  %v439_v49 = vld [vmem:[%s5203_s3 + $0x8] sm:$0xff]  ;;  %v440_v50 = vld [vmem:[%s5203_s3 + $0x10] sm:$0xff]  ;;  %s2592_s10 = smov 2   ;;  %s2593_s18 = smov 1  }
  0x68   : > { %v438_v39 = vld [vmem:[%s5203_s3] sm:$0xff]  ;;  %v443_v41 = vld [vmem:[%s5204_s4 + $0x8] sm:$0xff]  ;;  %v444_v42 = vld [vmem:[%s5204_s4 + $0x10] sm:$0xff]  ;;  %s2594_s24 = smov 126   ;;  %s2595_s12 = smov 125  }
  0x69   : > { %2333 = vmatprep.mubr.msk.f32.mxu1 %vm466_vm3, %v438_v39  ;;  %v442_v40 = vld [vmem:[%s5204_s4] sm:$0xff]  ;;  %v445_v43 = vld [vmem:[%s5204_s4 + $0x18] sm:$0xff]  ;;  %s3668_s30 = sld [smem:[#allocation7 + $0x50]]  ;;  %s3676_s0 = sld [smem:[#allocation7 + $0x32]] }
  0x6a   : > { %333 = vadd.xlane.f32.xlu1 %v332_v12  ;;  %330 = vadd.xlane.f32.xlu0 %v329_v13  ;;  %v441_v51 = vld [vmem:[%s5203_s3 + $0x18] sm:$0xff]  ;;  %s3680_s1 = sld [smem:[#allocation7 + $0x33]]  ;;  %s3682_s2 = sld [smem:[#allocation7 + $0x35]] }
  0x6b   : > { %s3684_s3 = sld [smem:[#allocation7 + $0x36]]  ;;  %s3686_s4 = sld [smem:[#allocation7 + $0x37]] }
  0x6c   : > { %s3690_s5 = sld [smem:[#allocation7 + $0x38]]  ;;  %s3692_s11 = sld [smem:[#allocation7 + $0x39]] }
  0x6d   : > { %s3702_s28 = sld [smem:[#allocation7 + $0x3a]]  ;;  %s5300_s27 = smov 96  }
  0x6e   : > { %349 = vmax.xlane.f32.xlu1 %v348_v14  ;;  %346 = vmax.xlane.f32.xlu0 %v345_v15  ;;  %s3793_s8 = sld [smem:[#allocation7 + $0x4f]]  ;;  %s3807_s29 = sld [smem:[#allocation7 + $0x51]] }
  0x6f   : > { %s3817_s15 = sld [smem:[#allocation7 + $0x52]]  ;;  %s3819_s26 = sld [smem:[#allocation7 + $0x53]] }
  0x70   : > { %s3855_s14 = sld [smem:[#allocation7]]  ;;  %s5308_s7 = smov 80  }
  0x71   : > { %s3874_s25 = sld [smem:[#allocation7 + $0x15]]  ;;  %s3878_s6 = sld [smem:[#allocation7 + $0x1]] }
  0x75   : > { %5303 = sst [smem:[#allocation107_spill]] %s3819_s26 }
  0x76   : > { %s3934_s26 = sld [smem:[#allocation7 + $0x2]] }
  0x7f   : > { %448 = vperm.xlu1 %2432, %v442_v40  }
  0x83   : > { %453 = vperm.xlu1 %2432, %v443_v41  }
  0x84   : > { %360 = vperm.xlu0 %2431, %v357_v18  }
  0x87   : > { %458 = vperm.xlu1 %2432, %v444_v42  }
  0x88   : > { %734 = vrot.lane.b32.xlu0 %v2850_v58, %s5132_s19 }
  0x8b   : > { %463 = vperm.xlu1 %2432, %v445_v43  }
  0x8c   : > { %738 = vrot.lane.b32.xlu0 %v2850_v58, %s2584_s20 }
  0x90   : > { %742 = vrot.lane.b32.xlu0 %v2850_v58, %s5134_s23 }
  0x94   : > { %746 = vrot.lane.b32.xlu0 %v2850_v58, %s2586_s9 }
  0xef   : > { %v341_v20 = vpop.xlane.xlu1 %340  ;;  %v325_v21 = vpop.xlane.xlu0 %324 }
  0xf0   : > { %v335_v22 = vmul.f32 0.00390625, %v325_v21 }
  0xf2   : > { %v352_v26 = vsel %vm351_vm1, %v335_v22, %v341_v20 }
  0xf3   : > { %v344_v23 = vpop.xlane.xlu1 %343  ;;  %v328_v24 = vpop.xlane.xlu0 %327 }
  0xf4   : > { %v336_v25 = vmul.f32 0.00390625, %v328_v24 }
  0xf6   : > { %v353_v27 = vsel %vm351_vm1, %v336_v25, %v344_v23 }
  0xf7   : > { %v334_v28 = vpop.xlane.xlu1 %333  ;;  %v331_v29 = vpop.xlane.xlu0 %330  ;;  %v2340_v30 = vpack.c.bf16 %v353_v27, %v352_v26 }
  0xf8   : > { %v338_v31 = vmul.f32 0.00390625, %v334_v28  ;;  %v337_v32 = vmul.f32 0.00390625, %v331_v29 }
  0xf9   : > { %2341 = vmatpush3.bf16.msra.mxu0 %v2340_v30 }
  0xfa   : > { %2342 = vmatprep.subr.bf16.mxu0 %v2578_v16 }
  0xfb   : > { %v350_v33 = vpop.xlane.xlu1 %349  ;;  %v347_v34 = vpop.xlane.xlu0 %346 }
  0xfc   : > { %v355_v35 = vsel %vm351_vm1, %v338_v31, %v350_v33  ;;  %v354_v36 = vsel %vm351_vm1, %v337_v32, %v347_v34  ;;  %vm786_vm1 = vcmp.lt.s32.totalorder %v2850_v58, 2 }
  0xfd   : > { %v2343_v37 = vpack.c.bf16 %v355_v35, %v354_v36 }
  0xff   : > { %2344 = vmatpush3.bf16.msra.mxu0 %v2343_v37  ;;  %v449_v52 = vpop.permute.xlu1 %448 }
 0x102   : > { %2329 = vmatmul.mubr.msk.f32.vlgmr.msra.gmra.mrb[0].mxu0 %vm363_vm2, %v356_v38 }
 0x103   : > { %v361_v44 = vpop.permute.xlu0 %360  ;;  %v454_v53 = vpop.permute.xlu1 %453 }
 0x107   : > { %v459_v62 = vpop.permute.xlu1 %458  ;;  %v2869_v34 = vpop.permute.xlu0 %734 }
 0x10b   : > { %v464_v3 = vpop.permute.xlu1 %463  ;;  %v2873_v36 = vpop.permute.xlu0 %738 }
 0x10f   : > { %v2877_v38 = vpop.permute.xlu0 %742 }
 0x113   : > { %v2881_v40 = vpop.permute.xlu0 %746 }
 0x1d5   : > { %v433_v45 = vpop.f32.mrb[0].mxu0 }
 0x1d6   : > { %v434_v46 = vadd.f32 %v433_v45, %v361_v44  ;;  %v2330_v47 = vpop.f32.mrb[1].mxu0 }
 0x1d8   : > { %v437_v48 = vmax.f32 %v434_v46, 0.0 }
 0x1da   : > { %2331 = vmatprep.subr.msk.mxu1 %vm479_vm4, %v437_v48 }
 0x1db   : > { %2332 = vmatpush3.msk.msra.mxu1 %vm479_vm4, %v437_v48 }
 0x1dc   : > { %2334 = vmatmul.mubr.msk.f32.vlgmr.msra.gmra.mrb[0].mxu1 %vm466_vm3, %v439_v49 }
 0x1dd   : > { %2336 = vmatprep.mubr.msk.f32.mxu1 %vm466_vm3, %v440_v50 }
 0x1e0   : > { %2337 = vmatmul.mubr.msk.f32.gmra.mrb[2].mxu1 %vm466_vm3, %v441_v51 }
 0x1e1   : > { %707 = vmatprep.mubr.f32.mxu1 %v2580_v17 }
 0x2af   : > { %v2335_v54 = vpop.f32.mrb[0].mxu1 }
 0x2b0   : > { %v555_v56 = vadd.f32 %v2335_v54, %v454_v53  ;;  %v549_v57 = vpop.f32.mrb[1].mxu1 }
 0x2b1   : > { %v550_v60 = vadd.f32 %v549_v57, %v449_v52 }
 0x2b2   : > { %574 = vrot.lane.b32.xlu1 %v555_v56, %s2582_s17 }
 0x2b3   : > { %v2338_v59 = vpop.f32.mrb[2].mxu1 }
 0x2b4   : > { %v559_v61 = vpop.f32.mrb[3].mxu1  ;;  %v565_v4 = vadd.f32 %v2338_v59, %v464_v3 }
 0x2b5   : > { %v560_v63 = vadd.f32 %v559_v61, %v459_v62  ;;  %v2590_v61 = vmov 1.0  }
 0x2b6   : > { %572 = vrot.lane.b32.xlu1 %v550_v60, %s2582_s17 }
 0x2ba   : > { %576 = vrot.lane.b32.xlu1 %v560_v63, %s2582_s17 }
 0x2be   : > { %578 = vrot.lane.b32.xlu1 %v565_v4, %s2582_s17 }
 0x2c2   : > { %736 = vrot.lane.b32.xlu1 %v2850_v58, %s2587_s21 }
 0x2c6   : > { %740 = vrot.lane.b32.xlu1 %v2850_v58, %s2588_s13  ;;  %s3650_s13 = sld [smem:[#allocation7 + $0x48]] }
 0x2ca   : > { %744 = vrot.lane.b32.xlu1 %v2850_v58, %s5136_s16 }
 0x324   : > { %v575_v6 = vpop.permute.xlu1 %574 }
 0x325   : > { %v585_v7 = vadd.f32 %v575_v6, %v555_v56 }
 0x327   : > { %v2200_v12 = vmul.f32 -1.442695, %v585_v7 }
 0x328   : > { %v573_v13 = vpop.permute.xlu1 %572 }
 0x329   : > { %2433 = vpow2.f32 %v2200_v12  ;;  %v584_v14 = vadd.f32 %v573_v13, %v550_v60 }
 0x32b   : > { %v2199_v15 = vmul.f32 -1.442695, %v584_v14  ;;  %v749_v14 = vsel %vm748_vm5, %v2850_v58, %v2869_v34  ;;  %vm807_vm5 = vcmp.lt.s32.totalorder %v2850_v58, 1 }
 0x32c   : > { %v577_v16 = vpop.permute.xlu1 %576 }
 0x32d   : > { %2435 = vpow2.f32 %v2199_v15  ;;  %v586_v17 = vadd.f32 %v577_v16, %v560_v63 }
 0x32f   : > { %v2201_v18 = vmul.f32 -1.442695, %v586_v17 }
 0x330   : > { %v579_v19 = vpop.permute.xlu1 %578 }
 0x331   : > { %2437 = vpow2.f32 %v2201_v18  ;;  %v587_v20 = vadd.f32 %v579_v19, %v565_v4 }
 0x333   : > { %v2434_v21 = vpop.eup %2433  ;;  %v2202_v22 = vmul.f32 -1.442695, %v587_v20 }
 0x334   : > { %v601_v23 = vadd.f32 1.0, %v2434_v21  ;;  %v2871_v35 = vpop.permute.xlu1 %736 }
 0x335   : > { %2439 = vpow2.f32 %v2202_v22  ;;  %v750_v15 = vsel %vm363_vm2, %v749_v14, %v2871_v35 }
 0x336   : > { %2441 = vrcp.f32 %v601_v23  ;;  %v752_v16 = vsel %vm751_vm6, %v750_v15, %v2873_v36 }
 0x337   : > { %v2436_v24 = vpop.eup %2435 }
 0x338   : > { %v600_v25 = vadd.f32 1.0, %v2436_v24  ;;  %v2875_v37 = vpop.permute.xlu1 %740 }
 0x339   : > { %v754_v17 = vsel %vm753_vm7, %v752_v16, %v2875_v37 }
 0x33a   : > { %2443 = vrcp.f32 %v600_v25  ;;  %v756_v18 = vsel %vm755_vm8, %v754_v17, %v2877_v38 }
 0x33b   : > { %v2438_v26 = vpop.eup %2437 }
 0x33c   : > { %v602_v27 = vadd.f32 1.0, %v2438_v26  ;;  %v2879_v39 = vpop.permute.xlu1 %744 }
 0x33d   : > { %v758_v19 = vsel %vm757_vm9, %v756_v18, %v2879_v39  ;;  %vm828_vm9 = vcmp.lt.s32.totalorder %v2850_v58, 127 }
 0x33e   : > { %2445 = vrcp.f32 %v602_v27  ;;  %v760_v20 = vsel %vm759_vm10, %v758_v19, %v2881_v40 }
 0x33f   : > { %v2440_v28 = vpop.eup %2439  ;;  %v774_v21 = vadd.s32 4294967293, %v760_v20  ;;  %v795_v22 = vadd.s32 4294967294, %v760_v20  ;;  %v816_v25 = vadd.s32 4294967295, %v760_v20 }
 0x340   : > { %v2442_v29 = vpop.eup %2441  ;;  %v603_v30 = vadd.f32 1.0, %v2440_v28 }
 0x341   : > { %619 = vperm.xlu1 %2432, %v2442_v29   ;;  %vm775_vm11 = vcmp.ge.s32.totalorder %v774_v21, 0  ;;  %vm776_vm12 = vcmp.lt.s32.totalorder %v774_v21, 16  ;;  %vm796_vm15 = vcmp.ge.s32.totalorder %v795_v22, 0  ;;  %vm797_vm0 = vcmp.lt.s32.totalorder %v795_v22, 16 }
 0x342   : > { %2447 = vrcp.f32 %v603_v30  ;;  %vm2986_vm14 = vmand %vm775_vm11, %vm776_vm12  ;;  %vm817_vm3 = vcmp.ge.s32.totalorder %v816_v25, 0  ;;  %vm818_vm4 = vcmp.lt.s32.totalorder %v816_v25, 16 }
 0x343   : > { %vm3028_vm6 = vmand %vm817_vm3, %vm818_vm4 }
 0x344   : > { %v2444_v31 = vpop.eup %2443 }
 0x345   : > { %614 = vperm.xlu0 %2431, %v2444_v31  }
 0x348   : > { %v2446_v32 = vpop.eup %2445 }
 0x349   : > { %624 = vperm.xlu0 %2431, %v2446_v32  }
 0x34c   : > { %v2448_v33 = vpop.eup %2447 }
 0x34d   : > { %629 = vperm.xlu1 %2432, %v2448_v33   ;;  %v837_v33 = vadd.s32 1, %v760_v20 }
 0x34f   : > { %vm838_vm7 = vcmp.ge.s32.totalorder %v837_v33, 0  ;;  %vm839_vm8 = vcmp.lt.s32.totalorder %v837_v33, 16 }
 0x350   : > { %vm3049_vm10 = vmand %vm838_vm7, %vm839_vm8  ;;  %vm870_vm7 = vcmp.lt.s32.totalorder %v2850_v58, 125 }
 0x3c0   : > { %v620_v41 = vpop.permute.xlu1 %619 }
 0x3c1   : > { %v2884_v43 = vmul.f32 %v620_v41, %v2786_v2  ;;  %v2887_v44 = vmul.f32 %v620_v41, %v2792_v5  ;;  %v858_v41 = vadd.s32 2, %v760_v20 }
 0x3c3   : > { %5205 = vst [vmem:[#allocation22_spill] sm:$0xff] %v2884_v43  ;;  %5206 = vst [vmem:[#allocation23_spill] sm:$0xff] %v2887_v44  ;;  %vm859_vm11 = vcmp.ge.s32.totalorder %v858_v41, 0  ;;  %vm860_vm12 = vcmp.lt.s32.totalorder %v858_v41, 16 }
 0x3c4   : > { %v615_v42 = vpop.permute.xlu0 %614 }
 0x3c5   : > { %v2890_v45 = vmul.f32 %v615_v42, %v2782_v0  ;;  %v2893_v46 = vmul.f32 %v615_v42, %v2784_v1 }
 0x3c7   : > { %5207 = vst [vmem:[#allocation24_spill] sm:$0xff] %v2890_v45  ;;  %5208 = vst [vmem:[#allocation25_spill] sm:$0xff] %v2893_v46  ;;  %v2345_v47 = vpack.c.bf16 %v2887_v44, %v2893_v46  ;;  %v2347_v48 = vpack.c.bf16 %v2884_v43, %v2890_v45 }
 0x3c8   : > { %v625_v49 = vpop.permute.xlu0 %624 }
 0x3c9   : > { %2346 = vmatprep.subr.bf16.mxu1 %v2345_v47  ;;  %v2900_v2 = vmul.f32 %v625_v49, %v2802_v10  ;;  %v2903_v5 = vmul.f32 %v625_v49, %v2804_v11 }
 0x3ca   : > { %2348 = vmatpush1.bf16.msra.mxu1 %v2347_v48 }
 0x3cb   : > { %5209 = vst [vmem:[#allocation26_spill] sm:$0xff] %v2900_v2  ;;  %5210 = vst [vmem:[#allocation27_spill] sm:$0xff] %v2903_v5  ;;  %v716_v51 = vmax.f32 %v2890_v45, %v2900_v2  ;;  %v725_v52 = vmax.f32 %v2893_v46, %v2903_v5 }
 0x3cc   : > { %v630_v0 = vpop.permute.xlu1 %629 }
 0x3cd   : > { %v2906_v50 = vmul.f32 %v630_v0, %v2798_v8  ;;  %v2909_v1 = vmul.f32 %v630_v0, %v2800_v9 }
 0x3cf   : > { %5211 = vst [vmem:[#allocation28_spill] sm:$0xff] %v2906_v50  ;;  %5212 = vst [vmem:[#allocation29_spill] sm:$0xff] %v2909_v1  ;;  %v717_v10 = vmax.f32 %v2884_v43, %v2906_v50  ;;  %v726_v11 = vmax.f32 %v2887_v44, %v2909_v1  ;;  %v2349_v53 = vpack.c.bf16 %v2909_v1, %v2903_v5 }
 0x3d0   : > { %v2351_v8 = vpack.c.bf16 %v2906_v50, %v2900_v2 }
 0x3d1   : > { %v718_v9 = vmax.f32 %v716_v51, %v717_v10  ;;  %v727_v54 = vmax.f32 %v725_v52, %v726_v11  ;;  %2350 = vmatprep.subr.bf16.mxu1 %v2349_v53  ;;  %v879_v10 = vadd.s32 3, %v760_v20 }
 0x3d2   : > { %2352 = vmatpush1.bf16.msra.mxu1 %v2351_v8 }
 0x3d3   : > { %v719_v56 = vrot.slane %v718_v9, 4  ;;  %v728_v57 = vrot.slane %v727_v54, 4  ;;  %vm880_vm3 = vcmp.ge.s32.totalorder %v879_v10, 0  ;;  %vm881_vm4 = vcmp.lt.s32.totalorder %v879_v10, 16 }
 0x3d4   : > { %vm3091_vm8 = vmand %vm880_vm3, %vm881_vm4 }
 0x3d5   : > { %v720_v59 = vmax.f32 %v718_v9, %v719_v56  ;;  %v729_v60 = vmax.f32 %v727_v54, %v728_v57  ;;  %2203 = vmatmul.mubr.msk.f32.vlgmr.msra.gmra.mrb[4].mxu1 %vm363_vm2, %v2590_v61  ;;  %vm3007_vm2 = vmand %vm796_vm15, %vm797_vm0  ;;  %vm849_vm15 = vcmp.lt.s32.totalorder %v2850_v58, 126 }
 0x3d6   : > { %vm3070_vm0 = vmand %vm859_vm11, %vm860_vm12  ;;  %vm1872_vm11 = vcmp.lt.s32.totalorder %v2850_v58, 80 }
 0x3d7   : > { %v721_v62 = vrot.slane %v720_v59, 2  ;;  %v730_v63 = vrot.slane %v729_v60, 2 }
 0x3d9   : > { %v722_v3 = vmax.f32 %v720_v59, %v721_v62  ;;  %v731_v4 = vmax.f32 %v729_v60, %v730_v63 }
 0x3db   : > { %v723_v6 = vrot.slane %v722_v3, 1  ;;  %v732_v7 = vrot.slane %v731_v4, 1 }
 0x3dd   : > { %v2924_v12 = vmax.f32 %v722_v3, %v723_v6  ;;  %v2926_v13 = vmax.f32 %v731_v4, %v732_v7 }
 0x3df   : > { %770 = vrot.lane.b32.xlu0 %v2926_v13, %s2591_s22  ;;  %768 = vrot.lane.b32.xlu1 %v2924_v12, %s2591_s22 }
 0x3e3   : > { %791 = vrot.lane.b32.xlu0 %v2926_v13, %s2592_s10  ;;  %789 = vrot.lane.b32.xlu1 %v2924_v12, %s2592_s10 }
 0x3e7   : > { %812 = vrot.lane.b32.xlu0 %v2926_v13, %s2593_s18  ;;  %810 = vrot.lane.b32.xlu1 %v2924_v12, %s2593_s18 }
 0x3eb   : > { %833 = vrot.lane.b32.xlu0 %v2926_v13, %s2582_s17  ;;  %831 = vrot.lane.b32.xlu1 %v2924_v12, %s2582_s17 }
 0x3ef   : > { %854 = vrot.lane.b32.xlu0 %v2926_v13, %s2594_s24  ;;  %852 = vrot.lane.b32.xlu1 %v2924_v12, %s2594_s24 }
 0x3f3   : > { %875 = vrot.lane.b32.xlu0 %v2926_v13, %s2595_s12  ;;  %873 = vrot.lane.b32.xlu1 %v2924_v12, %s2595_s12 }
 0x3f7   : > { %968 = vrot.lane.b32.xlu0 %v2926_v13, %s2584_s20  ;;  %966 = vrot.lane.b32.xlu1 %v2924_v12, %s2584_s20 }
 0x3fb   : > { %1147 = vrot.lane.b32.xlu0 %v2926_v13, %s2587_s21  ;;  %1145 = vrot.lane.b32.xlu1 %v2924_v12, %s2587_s21 }
 0x3ff   : > { %1326 = vrot.lane.b32.xlu0 %v2926_v13, %s5132_s19  ;;  %1324 = vrot.lane.b32.xlu1 %v2924_v12, %s5132_s19 }
 0x403   : > { %1589 = vrot.lane.b32.xlu0 %v2926_v13, %s2586_s9  ;;  %1587 = vrot.lane.b32.xlu1 %v2924_v12, %s2586_s9 }
 0x407   : > { %1768 = vrot.lane.b32.xlu0 %v2926_v13, %s5136_s16  ;;  %1766 = vrot.lane.b32.xlu1 %v2924_v12, %s5136_s16 }
 0x40b   : > { %1947 = vrot.lane.b32.xlu0 %v2926_v13, %s5134_s23  ;;  %1945 = vrot.lane.b32.xlu1 %v2924_v12, %s5134_s23 }
 0x451   : > { %v771_v23 = vpop.permute.xlu0 %770  ;;  %v769_v24 = vpop.permute.xlu1 %768 }
 0x452   : > { %v772_v27 = vsel %vm765_vm13, %v769_v24, %v771_v23  ;;  %v773_v28 = vsel %vm765_vm13, %v771_v23, %v769_v24 }
 0x453   : > { %v2996_v29 = vsel %vm2986_vm14, %v773_v28, 0.0  ;;  %v3000_v30 = vsel %vm2986_vm14, %v772_v27, 0.0 }
 0x454   : > { %896 = vrot.lane.b32.xlu1 %v2996_v29, %s2584_s20  ;;  %898 = vrot.lane.b32.xlu0 %v3000_v30, %s2584_s20 }
 0x455   : > { %v792_v31 = vpop.permute.xlu0 %791  ;;  %v790_v32 = vpop.permute.xlu1 %789 }
 0x456   : > { %v793_v35 = vsel %vm786_vm1, %v790_v32, %v792_v31  ;;  %v794_v36 = vsel %vm786_vm1, %v792_v31, %v790_v32 }
 0x457   : > { %v3017_v37 = vsel %vm3007_vm2, %v794_v36, 0.0  ;;  %v3021_v38 = vsel %vm3007_vm2, %v793_v35, 0.0 }
 0x458   : > { %918 = vrot.lane.b32.xlu1 %v3017_v37, %s2584_s20  ;;  %920 = vrot.lane.b32.xlu0 %v3021_v38, %s2584_s20 }
 0x459   : > { %v813_v39 = vpop.permute.xlu0 %812  ;;  %v811_v40 = vpop.permute.xlu1 %810 }
 0x45a   : > { %v814_v47 = vsel %vm807_vm5, %v811_v40, %v813_v39  ;;  %v815_v48 = vsel %vm807_vm5, %v813_v39, %v811_v40 }
 0x45b   : > { %v3038_v49 = vsel %vm3028_vm6, %v815_v48, 0.0  ;;  %v3042_v0 = vsel %vm3028_vm6, %v814_v47, 0.0 }
 0x45c   : > { %942 = vrot.lane.b32.xlu1 %v3038_v49, %s2584_s20  ;;  %944 = vrot.lane.b32.xlu0 %v3042_v0, %s2584_s20 }
 0x45d   : > { %v834_v51 = vpop.permute.xlu0 %833  ;;  %v832_v52 = vpop.permute.xlu1 %831 }
 0x45e   : > { %v835_v53 = vsel %vm828_vm9, %v832_v52, %v834_v51  ;;  %v836_v8 = vsel %vm828_vm9, %v834_v51, %v832_v52 }
 0x45f   : > { %v3059_v9 = vsel %vm3049_vm10, %v835_v53, 0.0  ;;  %v3063_v54 = vsel %vm3049_vm10, %v836_v8, 0.0 }
 0x460   : > { %990 = vrot.lane.b32.xlu1 %v3059_v9, %s2584_s20  ;;  %992 = vrot.lane.b32.xlu0 %v3063_v54, %s2584_s20 }
 0x461   : > { %v855_v56 = vpop.permute.xlu0 %854  ;;  %v853_v57 = vpop.permute.xlu1 %852 }
 0x462   : > { %v856_v60 = vsel %vm849_vm15, %v853_v57, %v855_v56  ;;  %v857_v61 = vsel %vm849_vm15, %v855_v56, %v853_v57 }
 0x463   : > { %v3080_v62 = vsel %vm3070_vm0, %v856_v60, 0.0  ;;  %v3084_v63 = vsel %vm3070_vm0, %v857_v61, 0.0 }
 0x464   : > { %1014 = vrot.lane.b32.xlu1 %v3080_v62, %s2584_s20  ;;  %1016 = vrot.lane.b32.xlu0 %v3084_v63, %s2584_s20 }
 0x465   : > { %v876_v3 = vpop.permute.xlu0 %875  ;;  %v874_v4 = vpop.permute.xlu1 %873 }
 0x466   : > { %v877_v7 = vsel %vm870_vm7, %v874_v4, %v876_v3  ;;  %v878_v14 = vsel %vm870_vm7, %v876_v3, %v874_v4 }
 0x467   : > { %v3101_v15 = vsel %vm3091_vm8, %v877_v7, 0.0  ;;  %v3105_v16 = vsel %vm3091_vm8, %v878_v14, 0.0 }
 0x468   : > { %1038 = vrot.lane.b32.xlu1 %v3101_v15, %s2584_s20  ;;  %1040 = vrot.lane.b32.xlu0 %v3105_v16, %s2584_s20 }
 0x469   : > { %v3167_v17 = vpop.permute.xlu0 %968  ;;  %v3169_v18 = vpop.permute.xlu1 %966 }
 0x46c   : > { %1075 = vrot.lane.b32.xlu1 %v2996_v29, %s2587_s21  ;;  %1077 = vrot.lane.b32.xlu0 %v3000_v30, %s2587_s21 }
 0x46d   : > { %v3179_v21 = vpop.permute.xlu0 %1147  ;;  %v3181_v22 = vpop.permute.xlu1 %1145 }
 0x470   : > { %1097 = vrot.lane.b32.xlu1 %v3017_v37, %s2587_s21  ;;  %1099 = vrot.lane.b32.xlu0 %v3021_v38, %s2587_s21 }
 0x471   : > { %v3187_v23 = vpop.permute.xlu0 %1326  ;;  %v3189_v24 = vpop.permute.xlu1 %1324 }
 0x474   : > { %1121 = vrot.lane.b32.xlu1 %v3038_v49, %s2587_s21  ;;  %1123 = vrot.lane.b32.xlu0 %v3042_v0, %s2587_s21 }
 0x475   : > { %v3199_v25 = vpop.permute.xlu0 %1589  ;;  %v3201_v27 = vpop.permute.xlu1 %1587 }
 0x478   : > { %1169 = vrot.lane.b32.xlu1 %v3059_v9, %s2587_s21  ;;  %1171 = vrot.lane.b32.xlu0 %v3063_v54, %s2587_s21 }
 0x479   : > { %v3207_v28 = vpop.permute.xlu0 %1768  ;;  %v3209_v31 = vpop.permute.xlu1 %1766 }
 0x47a   : > { %5225 = vst [vmem:[#allocation30_spill] sm:$0xff] %v3207_v28  ;;  %5226 = vst [vmem:[#allocation31_spill] sm:$0xff] %v3209_v31 }
 0x47c   : > { %1193 = vrot.lane.b32.xlu1 %v3080_v62, %s2587_s21  ;;  %1195 = vrot.lane.b32.xlu0 %v3084_v63, %s2587_s21 }
 0x47d   : > { %v3219_v32 = vpop.permute.xlu0 %1947  ;;  %v3221_v33 = vpop.permute.xlu1 %1945 }
 0x47e   : > { %5227 = vst [vmem:[#allocation32_spill] sm:$0xff] %v3219_v32  ;;  %5228 = vst [vmem:[#allocation33_spill] sm:$0xff] %v3221_v33 }
 0x480   : > { %1217 = vrot.lane.b32.xlu1 %v3101_v15, %s2587_s21  ;;  %1219 = vrot.lane.b32.xlu0 %v3105_v16, %s2587_s21 }
 0x484   : > { %1254 = vrot.lane.b32.xlu1 %v2996_v29, %s5132_s19  ;;  %1256 = vrot.lane.b32.xlu0 %v3000_v30, %s5132_s19 }
 0x488   : > { %1276 = vrot.lane.b32.xlu1 %v3017_v37, %s5132_s19  ;;  %1278 = vrot.lane.b32.xlu0 %v3021_v38, %s5132_s19 }
 0x48c   : > { %1300 = vrot.lane.b32.xlu1 %v3038_v49, %s5132_s19  ;;  %1302 = vrot.lane.b32.xlu0 %v3042_v0, %s5132_s19 }
 0x490   : > { %1348 = vrot.lane.b32.xlu1 %v3059_v9, %s5132_s19  ;;  %1350 = vrot.lane.b32.xlu0 %v3063_v54, %s5132_s19 }
 0x494   : > { %1372 = vrot.lane.b32.xlu1 %v3080_v62, %s5132_s19  ;;  %1374 = vrot.lane.b32.xlu0 %v3084_v63, %s5132_s19 }
 0x498   : > { %1396 = vrot.lane.b32.xlu1 %v3101_v15, %s5132_s19  ;;  %1398 = vrot.lane.b32.xlu0 %v3105_v16, %s5132_s19 }
 0x49c   : > { %1517 = vrot.lane.b32.xlu1 %v2996_v29, %s2586_s9  ;;  %1519 = vrot.lane.b32.xlu0 %v3000_v30, %s2586_s9 }
 0x4a0   : > { %1539 = vrot.lane.b32.xlu1 %v3017_v37, %s2586_s9  ;;  %1541 = vrot.lane.b32.xlu0 %v3021_v38, %s2586_s9 }
 0x4a4   : > { %1563 = vrot.lane.b32.xlu1 %v3038_v49, %s2586_s9  ;;  %1565 = vrot.lane.b32.xlu0 %v3042_v0, %s2586_s9 }
 0x4a8   : > { %v709_v19 = vpop.f32.mrb[4].mxu1  ;;  %1611 = vrot.lane.b32.xlu1 %v3059_v9, %s2586_s9  ;;  %1613 = vrot.lane.b32.xlu0 %v3063_v54, %s2586_s9 }
 0x4a9   : > { %v711_v20 = vpop.f32.mrb[5].mxu1  ;;  %v3275_v56 = vmul.f32 0.03125, %v709_v19 }
 0x4aa   : > { %v3277_v57 = vmul.f32 0.03125, %v711_v20 }
 0x4ac   : > { %1635 = vrot.lane.b32.xlu1 %v3080_v62, %s2586_s9  ;;  %1637 = vrot.lane.b32.xlu0 %v3084_v63, %s2586_s9 }
 0x4b0   : > { %1659 = vrot.lane.b32.xlu1 %v3101_v15, %s2586_s9  ;;  %1661 = vrot.lane.b32.xlu0 %v3105_v16, %s2586_s9 }
 0x4b4   : > { %1696 = vrot.lane.b32.xlu1 %v2996_v29, %s5136_s16  ;;  %1698 = vrot.lane.b32.xlu0 %v3000_v30, %s5136_s16 }
 0x4b8   : > { %1718 = vrot.lane.b32.xlu1 %v3017_v37, %s5136_s16  ;;  %1720 = vrot.lane.b32.xlu0 %v3021_v38, %s5136_s16 }
 0x4bc   : > { %1742 = vrot.lane.b32.xlu1 %v3038_v49, %s5136_s16  ;;  %1744 = vrot.lane.b32.xlu0 %v3042_v0, %s5136_s16 }
 0x4c0   : > { %1875 = vrot.lane.b32.xlu1 %v2996_v29, %s5134_s23  ;;  %1877 = vrot.lane.b32.xlu0 %v3000_v30, %s5134_s23 }
 0x4c4   : > { %1897 = vrot.lane.b32.xlu1 %v3017_v37, %s5134_s23  ;;  %1899 = vrot.lane.b32.xlu0 %v3021_v38, %s5134_s23 }
 0x4c6   : > { %v3227_v35 = vpop.permute.xlu1 %896  ;;  %v3229_v36 = vpop.permute.xlu0 %898 }
 0x4c8   : > { %1921 = vrot.lane.b32.xlu1 %v3038_v49, %s5134_s23  ;;  %1923 = vrot.lane.b32.xlu0 %v3042_v0, %s5134_s23 }
 0x4ca   : > { %v3235_v39 = vpop.permute.xlu1 %918  ;;  %v3237_v40 = vpop.permute.xlu0 %920 }
 0x4cc   : > { %1790 = vrot.lane.b32.xlu1 %v3059_v9, %s5136_s16  ;;  %1792 = vrot.lane.b32.xlu0 %v3063_v54, %s5136_s16 }
 0x4ce   : > { %v3243_v41 = vpop.permute.xlu1 %942  ;;  %v3245_v47 = vpop.permute.xlu0 %944 }
 0x4d0   : > { %1814 = vrot.lane.b32.xlu1 %v3080_v62, %s5136_s16  ;;  %1816 = vrot.lane.b32.xlu0 %v3084_v63, %s5136_s16 }
 0x4d2   : > { %v3251_v48 = vpop.permute.xlu1 %990  ;;  %v3253_v51 = vpop.permute.xlu0 %992 }
 0x4d4   : > { %1969 = vrot.lane.b32.xlu1 %v3059_v9, %s5134_s23  ;;  %1971 = vrot.lane.b32.xlu0 %v3063_v54, %s5134_s23 }
 0x4d6   : > { %v3259_v52 = vpop.permute.xlu1 %1014  ;;  %v3261_v10 = vpop.permute.xlu0 %1016 }
 0x4d8   : > { %1838 = vrot.lane.b32.xlu1 %v3101_v15, %s5136_s16  ;;  %1840 = vrot.lane.b32.xlu0 %v3105_v16, %s5136_s16 }
 0x4da   : > { %v3267_v53 = vpop.permute.xlu1 %1038  ;;  %v3269_v8 = vpop.permute.xlu0 %1040 }
 0x4dc   : > { %1993 = vrot.lane.b32.xlu1 %v3080_v62, %s5134_s23  ;;  %1995 = vrot.lane.b32.xlu0 %v3084_v63, %s5134_s23 }
 0x4de   : > { %v3279_v60 = vpop.permute.xlu1 %1075  ;;  %v3281_v61 = vpop.permute.xlu0 %1077 }
 0x4e0   : > { %761 = vrot.lane.b32.xlu1 %v3275_v56, %s2591_s22  ;;  %763 = vrot.lane.b32.xlu0 %v3277_v57, %s2591_s22  ;;  %s3654_s22 = sld [smem:[#allocation7 + $0x4a]] }
 0x4e2   : > { %v3287_v3 = vpop.permute.xlu1 %1097  ;;  %v3289_v4 = vpop.permute.xlu0 %1099 }
 0x4e3   : > { %5229 = vst [vmem:[#allocation34_spill] sm:$0xff] %v3287_v3  ;;  %5230 = vst [vmem:[#allocation35_spill] sm:$0xff] %v3289_v4  ;;  %v1049_v3 = vstv %s3686_s4  ;;  %s4032_s4 = sld [smem:[#allocation7 + $0x5]] }
 0x4e4   : > { %782 = vrot.lane.b32.xlu1 %v3275_v56, %s2592_s10  ;;  %784 = vrot.lane.b32.xlu0 %v3277_v57, %s2592_s10  ;;  %s3656_s10 = sld [smem:[#allocation7 + $0x4b]] }
 0x4e6   : > { %v3295_v7 = vpop.permute.xlu1 %1121  ;;  %v3297_v14 = vpop.permute.xlu0 %1123 }
 0x4e7   : > { %5231 = vst [vmem:[#allocation36_spill] sm:$0xff] %v3295_v7  ;;  %5232 = vst [vmem:[#allocation37_spill] sm:$0xff] %v3297_v14 }
 0x4e8   : > { %803 = vrot.lane.b32.xlu1 %v3275_v56, %s2593_s18  ;;  %805 = vrot.lane.b32.xlu0 %v3277_v57, %s2593_s18  ;;  %s3660_s18 = sld [smem:[#allocation7 + $0x34]] }
 0x4ea   : > { %v3303_v19 = vpop.permute.xlu1 %1169  ;;  %v3305_v20 = vpop.permute.xlu0 %1171 }
 0x4eb   : > { %5233 = vst [vmem:[#allocation38_spill] sm:$0xff] %v3303_v19  ;;  %5234 = vst [vmem:[#allocation39_spill] sm:$0xff] %v3305_v20 }
 0x4ec   : > { %824 = vrot.lane.b32.xlu1 %v3275_v56, %s2582_s17  ;;  %826 = vrot.lane.b32.xlu0 %v3277_v57, %s2582_s17  ;;  %s3644_s17 = sld [smem:[#allocation7 + $0x46]] }
 0x4ee   : > { %v3311_v55 = vpop.permute.xlu1 %1193  ;;  %v3313_v1 = vpop.permute.xlu0 %1195 }
 0x4ef   : > { %5235 = vst [vmem:[#allocation40_spill] sm:$0xff] %v3311_v55  ;;  %5236 = vst [vmem:[#allocation41_spill] sm:$0xff] %v3313_v1 }
 0x4f0   : > { %845 = vrot.lane.b32.xlu1 %v3275_v56, %s2594_s24  ;;  %847 = vrot.lane.b32.xlu0 %v3277_v57, %s2594_s24  ;;  %s3662_s24 = sld [smem:[#allocation7 + $0x4c]] }
 0x4f2   : > { %v3319_v5 = vpop.permute.xlu1 %1217  ;;  %v3321_v44 = vpop.permute.xlu0 %1219 }
 0x4f3   : > { %5237 = vst [vmem:[#allocation42_spill] sm:$0xff] %v3319_v5  ;;  %5238 = vst [vmem:[#allocation43_spill] sm:$0xff] %v3321_v44 }
 0x4f4   : > { %866 = vrot.lane.b32.xlu1 %v3275_v56, %s2595_s12  ;;  %868 = vrot.lane.b32.xlu0 %v3277_v57, %s2595_s12  ;;  %s3664_s12 = sld [smem:[#allocation7 + $0x3b]] }
 0x4f6   : > { %v3327_v46 = vpop.permute.xlu1 %1254  ;;  %v3329_v50 = vpop.permute.xlu0 %1256  ;;  %v1501_v14 = vstv %s3662_s24  ;;  %s3772_s24 = sld [smem:[#allocation7 + $0x4d]] }
 0x4f7   : > { %5239 = vst [vmem:[#allocation44_spill] sm:$0xff] %v3327_v46  ;;  %5240 = vst [vmem:[#allocation45_spill] sm:$0xff] %v3329_v50 }
 0x4f8   : > { %960 = vrot.lane.b32.xlu1 %v3275_v56, %s2584_s20  ;;  %962 = vrot.lane.b32.xlu0 %v3277_v57, %s2584_s20 }
 0x4fa   : > { %v3335_v2 = vpop.permute.xlu1 %1276  ;;  %v3337_v43 = vpop.permute.xlu0 %1278 }
 0x4fb   : > { %5241 = vst [vmem:[#allocation46_spill] sm:$0xff] %v3335_v2  ;;  %5242 = vst [vmem:[#allocation47_spill] sm:$0xff] %v3337_v43 }
 0x4fc   : > { %1139 = vrot.lane.b32.xlu1 %v3275_v56, %s2587_s21  ;;  %1141 = vrot.lane.b32.xlu0 %v3277_v57, %s2587_s21 }
 0x4fe   : > { %v3343_v45 = vpop.permute.xlu1 %1300  ;;  %v3345_v33 = vpop.permute.xlu0 %1302 }
 0x4ff   : > { %5243 = vst [vmem:[#allocation48_spill] sm:$0xff] %v3343_v45  ;;  %5244 = vst [vmem:[#allocation49_spill] sm:$0xff] %v3345_v33 }
 0x500   : > { %1318 = vrot.lane.b32.xlu1 %v3275_v56, %s5132_s19  ;;  %1320 = vrot.lane.b32.xlu0 %v3277_v57, %s5132_s19 }
 0x502   : > { %v3351_v32 = vpop.permute.xlu1 %1348  ;;  %v3353_v31 = vpop.permute.xlu0 %1350 }
 0x503   : > { %5245 = vst [vmem:[#allocation50_spill] sm:$0xff] %v3351_v32  ;;  %5246 = vst [vmem:[#allocation51_spill] sm:$0xff] %v3353_v31 }
 0x504   : > { %1581 = vrot.lane.b32.xlu1 %v3275_v56, %s2586_s9  ;;  %1583 = vrot.lane.b32.xlu0 %v3277_v57, %s2586_s9 }
 0x506   : > { %v3359_v28 = vpop.permute.xlu1 %1372  ;;  %v3361_v45 = vpop.permute.xlu0 %1374 }
 0x507   : > { %5247 = vst [vmem:[#allocation52_spill] sm:$0xff] %v3359_v28  ;;  %5248 = vst [vmem:[#allocation53_spill] sm:$0xff] %v3361_v45 }
 0x508   : > { %1760 = vrot.lane.b32.xlu1 %v3275_v56, %s5136_s16  ;;  %1762 = vrot.lane.b32.xlu0 %v3277_v57, %s5136_s16  ;;  %s3674_s16 = sld [smem:[#allocation7 + $0x31]] }
 0x50a   : > { %v3367_v33 = vpop.permute.xlu1 %1396  ;;  %v3369_v32 = vpop.permute.xlu0 %1398 }
 0x50b   : > { %5249 = vst [vmem:[#allocation54_spill] sm:$0xff] %v3367_v33  ;;  %5250 = vst [vmem:[#allocation55_spill] sm:$0xff] %v3369_v32 }
 0x50c   : > { %1939 = vrot.lane.b32.xlu1 %v3275_v56, %s5134_s23  ;;  %1941 = vrot.lane.b32.xlu0 %v3277_v57, %s5134_s23  ;;  %s3672_s23 = sld [smem:[#allocation7 + $0x18]] }
 0x50e   : > { %v3375_v31 = vpop.permute.xlu1 %1517  ;;  %v3377_v28 = vpop.permute.xlu0 %1519 }
 0x50f   : > { %5251 = vst [vmem:[#allocation56_spill] sm:$0xff] %v3375_v31  ;;  %5252 = vst [vmem:[#allocation57_spill] sm:$0xff] %v3377_v28 }
 0x512   : > { %v3379_v45 = vpop.permute.xlu1 %1539  ;;  %v3381_v43 = vpop.permute.xlu0 %1541 }
 0x513   : > { %5253 = vst [vmem:[#allocation58_spill] sm:$0xff] %v3379_v45  ;;  %5254 = vst [vmem:[#allocation59_spill] sm:$0xff] %v3381_v43 }
 0x516   : > { %v3383_v2 = vpop.permute.xlu1 %1563  ;;  %v3385_v50 = vpop.permute.xlu0 %1565 }
 0x517   : > { %5255 = vst [vmem:[#allocation60_spill] sm:$0xff] %v3383_v2  ;;  %5256 = vst [vmem:[#allocation61_spill] sm:$0xff] %v3385_v50 }
 0x51a   : > { %v3387_v33 = vpop.permute.xlu1 %1611  ;;  %v3389_v32 = vpop.permute.xlu0 %1613 }
 0x51b   : > { %5257 = vst [vmem:[#allocation62_spill] sm:$0xff] %v3387_v33  ;;  %5258 = vst [vmem:[#allocation63_spill] sm:$0xff] %v3389_v32 }
 0x51e   : > { %v3391_v46 = vpop.permute.xlu1 %1635  ;;  %v3393_v44 = vpop.permute.xlu0 %1637 }
 0x51f   : > { %5259 = vst [vmem:[#allocation64_spill] sm:$0xff] %v3391_v46  ;;  %5260 = vst [vmem:[#allocation65_spill] sm:$0xff] %v3393_v44 }
 0x522   : > { %v3395_v5 = vpop.permute.xlu1 %1659  ;;  %v3397_v31 = vpop.permute.xlu0 %1661 }
 0x523   : > { %5261 = vst [vmem:[#allocation66_spill] sm:$0xff] %v3395_v5  ;;  %5262 = vst [vmem:[#allocation67_spill] sm:$0xff] %v3397_v31 }
 0x526   : > { %v3399_v28 = vpop.permute.xlu1 %1696  ;;  %v3401_v45 = vpop.permute.xlu0 %1698 }
 0x527   : > { %5263 = vst [vmem:[#allocation68_spill] sm:$0xff] %v3399_v28  ;;  %5264 = vst [vmem:[#allocation69_spill] sm:$0xff] %v3401_v45 }
 0x52a   : > { %v3403_v43 = vpop.permute.xlu1 %1718  ;;  %v3405_v2 = vpop.permute.xlu0 %1720 }
 0x52b   : > { %5265 = vst [vmem:[#allocation70_spill] sm:$0xff] %v3403_v43  ;;  %5266 = vst [vmem:[#allocation71_spill] sm:$0xff] %v3405_v2 }
 0x52e   : > { %v3407_v50 = vpop.permute.xlu1 %1742  ;;  %v3409_v33 = vpop.permute.xlu0 %1744 }
 0x52f   : > { %5267 = vst [vmem:[#allocation72_spill] sm:$0xff] %v3407_v50  ;;  %5268 = vst [vmem:[#allocation73_spill] sm:$0xff] %v3409_v33 }
 0x532   : > { %v3411_v32 = vpop.permute.xlu1 %1875  ;;  %v3413_v46 = vpop.permute.xlu0 %1877 }
 0x533   : > { %5269 = vst [vmem:[#allocation74_spill] sm:$0xff] %v3411_v32  ;;  %5270 = vst [vmem:[#allocation75_spill] sm:$0xff] %v3413_v46 }
 0x536   : > { %v3415_v44 = vpop.permute.xlu1 %1897  ;;  %v3417_v5 = vpop.permute.xlu0 %1899 }
 0x537   : > { %5271 = vst [vmem:[#allocation76_spill] sm:$0xff] %v3415_v44  ;;  %5272 = vst [vmem:[#allocation77_spill] sm:$0xff] %v3417_v5 }
 0x53a   : > { %v3419_v31 = vpop.permute.xlu1 %1921  ;;  %v3421_v28 = vpop.permute.xlu0 %1923 }
 0x53b   : > { %5273 = vst [vmem:[#allocation78_spill] sm:$0xff] %v3419_v31  ;;  %5274 = vst [vmem:[#allocation79_spill] sm:$0xff] %v3421_v28 }
 0x53e   : > { %v3423_v45 = vpop.permute.xlu1 %1790  ;;  %v3425_v43 = vpop.permute.xlu0 %1792 }
 0x53f   : > { %5275 = vst [vmem:[#allocation80_spill] sm:$0xff] %v3423_v45  ;;  %5276 = vst [vmem:[#allocation81_spill] sm:$0xff] %v3425_v43 }
 0x542   : > { %v3427_v2 = vpop.permute.xlu1 %1814  ;;  %v3429_v50 = vpop.permute.xlu0 %1816 }
 0x543   : > { %5277 = vst [vmem:[#allocation82_spill] sm:$0xff] %v3427_v2  ;;  %5278 = vst [vmem:[#allocation83_spill] sm:$0xff] %v3429_v50 }
 0x546   : > { %v3431_v33 = vpop.permute.xlu1 %1969  ;;  %v3433_v32 = vpop.permute.xlu0 %1971 }
 0x547   : > { %5279 = vst [vmem:[#allocation84_spill] sm:$0xff] %v3431_v33  ;;  %5280 = vst [vmem:[#allocation85_spill] sm:$0xff] %v3433_v32 }
 0x54a   : > { %v3435_v46 = vpop.permute.xlu1 %1838  ;;  %v3437_v44 = vpop.permute.xlu0 %1840 }
 0x54b   : > { %5281 = vst [vmem:[#allocation86_spill] sm:$0xff] %v3435_v46  ;;  %5282 = vst [vmem:[#allocation87_spill] sm:$0xff] %v3437_v44 }
 0x54e   : > { %v3439_v5 = vpop.permute.xlu1 %1993  ;;  %v3441_v31 = vpop.permute.xlu0 %1995 }
 0x54f   : > { %5283 = vst [vmem:[#allocation88_spill] sm:$0xff] %v3439_v5  ;;  %5284 = vst [vmem:[#allocation89_spill] sm:$0xff] %v3441_v31 }
 0x552   : > { %v762_v28 = vpop.permute.xlu1 %761  ;;  %v764_v45 = vpop.permute.xlu0 %763 }
 0x553   : > { %v766_v43 = vsel %vm765_vm13, %v762_v28, %v764_v45  ;;  %v767_v2 = vsel %vm765_vm13, %v764_v45, %v762_v28  ;;  %vm893_vm13 = vcmp.lt.s32.totalorder %v2850_v58, 48 }
 0x554   : > { %v3449_v33 = vsel %vm2986_vm14, %v767_v2, 0.0  ;;  %v3453_v46 = vsel %vm2986_vm14, %v766_v43, 0.0  ;;  %vm1072_vm14 = vcmp.lt.s32.totalorder %v2850_v58, 32 }
 0x555   : > { %889 = vrot.lane.b32.xlu1 %v3449_v33, %s2584_s20  ;;  %891 = vrot.lane.b32.xlu0 %v3453_v46, %s2584_s20 }
 0x556   : > { %v783_v5 = vpop.permute.xlu1 %782  ;;  %v785_v31 = vpop.permute.xlu0 %784 }
 0x557   : > { %v787_v44 = vsel %vm786_vm1, %v783_v5, %v785_v31  ;;  %v788_v45 = vsel %vm786_vm1, %v785_v31, %v783_v5  ;;  %vm1251_vm1 = vcmp.lt.s32.totalorder %v2850_v58, 16 }
 0x558   : > { %v3465_v2 = vsel %vm3007_vm2, %v788_v45, 0.0  ;;  %v3469_v43 = vsel %vm3007_vm2, %v787_v44, 0.0  ;;  %vm1514_vm2 = vcmp.lt.s32.totalorder %v2850_v58, 112 }
 0x559   : > { %912 = vrot.lane.b32.xlu1 %v3465_v2, %s2584_s20  ;;  %914 = vrot.lane.b32.xlu0 %v3469_v43, %s2584_s20 }
 0x55a   : > { %v804_v26 = vpop.permute.xlu1 %803  ;;  %v806_v28 = vpop.permute.xlu0 %805 }
 0x55b   : > { %v808_v32 = vsel %vm807_vm5, %v804_v26, %v806_v28  ;;  %v809_v5 = vsel %vm807_vm5, %v806_v28, %v804_v26  ;;  %vm1693_vm5 = vcmp.lt.s32.totalorder %v2850_v58, 96 }
 0x55c   : > { %v3481_v31 = vsel %vm3028_vm6, %v809_v5, 0.0  ;;  %v3485_v44 = vsel %vm3028_vm6, %v808_v32, 0.0 }
 0x55d   : > { %936 = vrot.lane.b32.xlu1 %v3481_v31, %s2584_s20  ;;  %938 = vrot.lane.b32.xlu0 %v3485_v44, %s2584_s20 }
 0x55e   : > { %v825_v34 = vpop.permute.xlu1 %824  ;;  %v827_v45 = vpop.permute.xlu0 %826 }
 0x55f   : > { %v829_v50 = vsel %vm828_vm9, %v825_v34, %v827_v45  ;;  %v830_v26 = vsel %vm828_vm9, %v827_v45, %v825_v34 }
 0x560   : > { %v3497_v28 = vsel %vm3049_vm10, %v829_v50, 0.0  ;;  %v3501_v42 = vsel %vm3049_vm10, %v830_v26, 0.0 }
 0x561   : > { %5285 = vst [vmem:[#allocation90_spill] sm:$0xff] %v3501_v42  ;;  %984 = vrot.lane.b32.xlu1 %v3497_v28, %s2584_s20  ;;  %986 = vrot.lane.b32.xlu0 %v3501_v42, %s2584_s20 }
 0x562   : > { %v846_v32 = vpop.permute.xlu1 %845  ;;  %v848_v5 = vpop.permute.xlu0 %847 }
 0x563   : > { %v850_v55 = vsel %vm849_vm15, %v846_v32, %v848_v5  ;;  %v851_v34 = vsel %vm849_vm15, %v848_v5, %v846_v32 }
 0x564   : > { %v3513_v50 = vsel %vm3070_vm0, %v850_v55, 0.0  ;;  %v3517_v11 = vsel %vm3070_vm0, %v851_v34, 0.0 }
 0x565   : > { %5286 = vst [vmem:[#allocation91_spill] sm:$0xff] %v3513_v50  ;;  %5287 = vst [vmem:[#allocation92_spill] sm:$0xff] %v3517_v11  ;;  %1008 = vrot.lane.b32.xlu1 %v3513_v50, %s2584_s20  ;;  %1010 = vrot.lane.b32.xlu0 %v3517_v11, %s2584_s20 }
 0x566   : > { %v867_v45 = vpop.permute.xlu1 %866  ;;  %v869_v26 = vpop.permute.xlu0 %868 }
 0x567   : > { %v871_v1 = vsel %vm870_vm7, %v867_v45, %v869_v26  ;;  %v872_v32 = vsel %vm870_vm7, %v869_v26, %v867_v45 }
 0x568   : > { %v3529_v55 = vsel %vm3091_vm8, %v871_v1, 0.0  ;;  %v3533_v59 = vsel %vm3091_vm8, %v872_v32, 0.0 }
 0x569   : > { %5288 = vst [vmem:[#allocation93_spill] sm:$0xff] %v3529_v55  ;;  %5289 = vst [vmem:[#allocation94_spill] sm:$0xff] %v3533_v59  ;;  %1032 = vrot.lane.b32.xlu1 %v3529_v55, %s2584_s20  ;;  %1034 = vrot.lane.b32.xlu0 %v3533_v59, %s2584_s20  ;;  %s3646_s20 = sld [smem:[#allocation7 + $0x49]] }
 0x56a   : > { %v961_v5 = vpop.permute.xlu1 %960  ;;  %v963_v34 = vpop.permute.xlu0 %962 }
 0x56b   : > { %v3542_v45 = vsel %vm893_vm13, %v961_v5, %v963_v34  ;;  %v3546_v1 = vsel %vm893_vm13, %v963_v34, %v961_v5 }
 0x56c   : > { %5290 = vst [vmem:[#allocation95_spill] sm:$0xff] %v3542_v45  ;;  %5291 = vst [vmem:[#allocation96_spill] sm:$0xff] %v3546_v1  ;;  %v907_v1 = vstv %s3674_s16  ;;  %s4135_s16 = sld [smem:[#allocation7 + $0x8]] }
 0x56d   : > { %1068 = vrot.lane.b32.xlu1 %v3449_v33, %s2587_s21  ;;  %1070 = vrot.lane.b32.xlu0 %v3453_v46, %s2587_s21 }
 0x56e   : > { %v1140_v6 = vpop.permute.xlu1 %1139  ;;  %v1142_v26 = vpop.permute.xlu0 %1141 }
 0x56f   : > { %v3555_v32 = vsel %vm1072_vm14, %v1140_v6, %v1142_v26  ;;  %v3559_v20 = vsel %vm1072_vm14, %v1142_v26, %v1140_v6 }
 0x570   : > { %5292 = vst [vmem:[#allocation97_spill] sm:$0xff] %v3555_v32  ;;  %5293 = vst [vmem:[#allocation98_spill] sm:$0xff] %v3559_v20 }
 0x571   : > { %1091 = vrot.lane.b32.xlu1 %v3465_v2, %s2587_s21  ;;  %1093 = vrot.lane.b32.xlu0 %v3469_v43, %s2587_s21 }
 0x572   : > { %v1319_v5 = vpop.permute.xlu1 %1318  ;;  %v1321_v34 = vpop.permute.xlu0 %1320 }
 0x573   : > { %v3568_v19 = vsel %vm1251_vm1, %v1319_v5, %v1321_v34  ;;  %v3572_v32 = vsel %vm1251_vm1, %v1321_v34, %v1319_v5 }
 0x574   : > { %5294 = vst [vmem:[#allocation99_spill] sm:$0xff] %v3568_v19  ;;  %5295 = vst [vmem:[#allocation100_spill] sm:$0xff] %v3572_v32 }
 0x575   : > { %1115 = vrot.lane.b32.xlu1 %v3481_v31, %s2587_s21  ;;  %1117 = vrot.lane.b32.xlu0 %v3485_v44, %s2587_s21 }
 0x576   : > { %v1582_v6 = vpop.permute.xlu1 %1581  ;;  %v1584_v26 = vpop.permute.xlu0 %1583 }
 0x577   : > { %v3581_v20 = vsel %vm1514_vm2, %v1582_v6, %v1584_v26  ;;  %v3585_v19 = vsel %vm1514_vm2, %v1584_v26, %v1582_v6  ;;  %v1465_v6 = vstv %s3646_s20  ;;  %v1431_v26 = vstv %s3644_s17  ;;  %s3716_s17 = sld [smem:[#allocation7 + $0x3d]]  ;;  %s3728_s20 = sld [smem:[#allocation7 + $0x3e]] }
 0x578   : > { %5296 = vst [vmem:[#allocation101_spill] sm:$0xff] %v3581_v20  ;;  %5297 = vst [vmem:[#allocation102_spill] sm:$0xff] %v3585_v19  ;;  %v977_v19 = vstv %s3660_s18  ;;  %v3722_v45 = vmul.f32 %v1465_v6, %v2924_v12  ;;  %s3770_s18 = sld [smem:[#allocation7 + $0x45]] }
 0x579   : > { %1163 = vrot.lane.b32.xlu1 %v3497_v28, %s2587_s21  ;;  %1165 = vrot.lane.b32.xlu0 %v3501_v42, %s2587_s21 }
 0x57a   : > { %v1761_v5 = vpop.permute.xlu1 %1760  ;;  %v1763_v34 = vpop.permute.xlu0 %1762 }
 0x57b   : > { %v3594_v32 = vsel %vm1693_vm5, %v1761_v5, %v1763_v34  ;;  %v3598_v20 = vsel %vm1693_vm5, %v1763_v34, %v1761_v5  ;;  %v1453_v34 = vstv %s3650_s13  ;;  %s3744_s13 = sld [smem:[#allocation7 + $0x41]] }
 0x57c   : > { %5298 = vst [vmem:[#allocation103_spill] sm:$0xff] %v3594_v32  ;;  %5299 = vst [vmem:[#allocation104_spill] sm:$0xff] %v3598_v20  ;;  %v1477_v20 = vstv %s3654_s22  ;;  %v1489_v32 = vstv %s3656_s10  ;;  %s3756_s22 = sld [smem:[#allocation7 + $0x43]]  ;;  %s3758_s10 = sld [smem:[#allocation7 + $0x44]] }
 0x57d   : > { %1187 = vrot.lane.b32.xlu1 %v3513_v50, %s2587_s21  ;;  %1189 = vrot.lane.b32.xlu0 %v3517_v11, %s2587_s21 }
 0x581   : > { %1211 = vrot.lane.b32.xlu1 %v3529_v55, %s2587_s21  ;;  %1213 = vrot.lane.b32.xlu0 %v3533_v59, %s2587_s21  ;;  %s3648_s21 = sld [smem:[#allocation7 + $0x47]] }
 0x585   : > { %1247 = vrot.lane.b32.xlu1 %v3449_v33, %s5132_s19  ;;  %1249 = vrot.lane.b32.xlu0 %v3453_v46, %s5132_s19 }
 0x587   : > { %v1441_v5 = vstv %s3648_s21  ;;  %s3742_s21 = sld [smem:[#allocation7 + $0x40]] }
 0x588   : > { %v3739_v12 = vmul.f32 %v1441_v5, %v3017_v37  ;;  %v3747_v4 = vmul.f32 %v1441_v5, %v3021_v38  ;;  %v3766_v37 = vmul.f32 %v1477_v20, %v3063_v54  ;;  %v971_v54 = vsel %vm893_vm13, %v3167_v17, %v3169_v18 }
 0x589   : > { %1270 = vrot.lane.b32.xlu1 %v3465_v2, %s5132_s19  ;;  %1272 = vrot.lane.b32.xlu0 %v3469_v43, %s5132_s19 }
 0x58d   : > { %1294 = vrot.lane.b32.xlu1 %v3481_v31, %s5132_s19  ;;  %1296 = vrot.lane.b32.xlu0 %v3485_v44, %s5132_s19 }
 0x591   : > { %1342 = vrot.lane.b32.xlu1 %v3497_v28, %s5132_s19  ;;  %1344 = vrot.lane.b32.xlu0 %v3501_v42, %s5132_s19 }
 0x595   : > { %1366 = vrot.lane.b32.xlu1 %v3513_v50, %s5132_s19  ;;  %1368 = vrot.lane.b32.xlu0 %v3517_v11, %s5132_s19 }
 0x599   : > { %1390 = vrot.lane.b32.xlu1 %v3529_v55, %s5132_s19  ;;  %1392 = vrot.lane.b32.xlu0 %v3533_v59, %s5132_s19  ;;  %s3666_s19 = sld [smem:[#allocation7 + $0x42]] }
 0x59d   : > { %1510 = vrot.lane.b32.xlu1 %v3449_v33, %s2586_s9  ;;  %1512 = vrot.lane.b32.xlu0 %v3453_v46, %s2586_s9 }
 0x59f   : > { %v1335_v7 = vstv %s3666_s19  ;;  %s3730_s19 = sld [smem:[#allocation7 + $0x3f]] }
 0x5a1   : > { %1533 = vrot.lane.b32.xlu1 %v3465_v2, %s2586_s9  ;;  %1535 = vrot.lane.b32.xlu0 %v3469_v43, %s2586_s9 }
 0x5a5   : > { %1557 = vrot.lane.b32.xlu1 %v3481_v31, %s2586_s9  ;;  %1559 = vrot.lane.b32.xlu0 %v3485_v44, %s2586_s9 }
 0x5a9   : > { %1605 = vrot.lane.b32.xlu1 %v3497_v28, %s2586_s9  ;;  %1607 = vrot.lane.b32.xlu0 %v3501_v42, %s2586_s9  ;;  %v3736_v42 = vmul.f32 %v1431_v26, %v3000_v30  ;;  %v3763_v30 = vmul.f32 %v1477_v20, %v3059_v9  ;;  %v970_v9 = vsel %vm893_vm13, %v3169_v18, %v3167_v17 }
 0x5aa   : > { %v1150_v20 = vsel %vm1072_vm14, %v3179_v21, %v3181_v22  ;;  %v1329_v17 = vsel %vm1251_vm1, %v3187_v23, %v3189_v24 }
 0x5ad   : > { %1629 = vrot.lane.b32.xlu1 %v3513_v50, %s2586_s9  ;;  %1631 = vrot.lane.b32.xlu0 %v3517_v11, %s2586_s9  ;;  %v1461_v50 = vstv %s3672_s23  ;;  %v3733_v11 = vmul.f32 %v1431_v26, %v2996_v29  ;;  %v3753_v29 = vmul.f32 %v1453_v34, %v3042_v0  ;;  %v3777_v0 = vmul.f32 %v1489_v32, %v3080_v62  ;;  %s3908_s23 = sld [smem:[#allocation7 + $0x3]] }
 0x5ae   : > { %v3796_v62 = vmul.f32 %v1489_v32, %v3084_v63  ;;  %v1149_v26 = vsel %vm1072_vm14, %v3181_v22, %v3179_v21  ;;  %v1328_v63 = vsel %vm1251_vm1, %v3189_v24, %v3187_v23  ;;  %v1591_v32 = vsel %vm1514_vm2, %v3201_v27, %v3199_v25 }
 0x5af   : > { %5301 = vst [vmem:[#allocation105_spill] sm:$0xff] %v3777_v0  ;;  %v3824_v21 = vmul.f32 %v1501_v14, %v3105_v16  ;;  %v3827_v22 = vmul.f32 %v1501_v14, %v3101_v15  ;;  %v3829_v23 = vmul.f32 %v977_v19, %v971_v54  ;;  %v3831_v24 = vmul.f32 %v977_v19, %v970_v9 }
 0x5b0   : > { %5302 = vst [vmem:[#allocation106_spill] sm:$0xff] %v3796_v62  ;;  %v3840_v14 = vmul.f32 %v1335_v7, %v1329_v17  ;;  %v1592_v19 = vsel %vm1514_vm2, %v3199_v25, %v3201_v27  ;;  %v3847_v54 = vmul.f32 %v1335_v7, %v1328_v63  ;;  %v1463_v25 = vmul.f32 %v1461_v50, %v3277_v57 }
 0x5b1   : > { %1653 = vrot.lane.b32.xlu1 %v3529_v55, %s2586_s9  ;;  %1655 = vrot.lane.b32.xlu0 %v3533_v59, %s2586_s9  ;;  %v1156_v55 = vstv %s3664_s12  ;;  %v3709_v59 = vmul.f32 %v1465_v6, %v2926_v13  ;;  %s3714_s9 = sld [smem:[#allocation7 + $0x3c]]  ;;  %v1025_v6 = vstv %s3684_s3  ;;  %v3750_v13 = vmul.f32 %v1453_v34, %v3038_v49  ;;  %s3791_s12 = sld [smem:[#allocation7 + $0x4e]]  ;;  %5304 = vst [vmem:[#allocation108_spill] sm:$0xff] %v3824_v21 }
 0x5b2   : > { %5305 = vst [vmem:[#allocation109_spill] sm:$0xff] %v3827_v22  ;;  %v3833_v5 = vmul.f32 %v1156_v55, %v1150_v20  ;;  %v3838_v18 = vmul.f32 %v1156_v55, %v1149_v26  ;;  %v5306_v20 = vstv %s3668_s30  ;;  %v1462_v27 = vmul.f32 %v1461_v50, %v3275_v56  ;;  %s3904_s30 = sld [smem:[#allocation7 + $0x16]]  ;;  %s4030_s3 = sld [smem:[#allocation7 + $0x1a]] }
 0x5b3   : > { %v3851_v34 = vmul.f32 %v5306_v20, %v1591_v32  ;;  %v5309_v7 = vmov %v5306_v20  ;;  %v901_v56 = vsel %vm893_vm13, %v3229_v36, %v3227_v35  ;;  %v3889_v20 = vpop.permute.xlu0 %1941  ;;  %v900_v32 = vsel %vm893_vm13, %v3227_v35, %v3229_v36 }
 0x5b4   : > { %v3869_v17 = vmul.f32 %v5309_v7, %v1592_v19  ;;  %v3887_v7 = vpop.permute.xlu1 %1939  ;;  %5312 = vst [vmem:[#allocation113_spill] sm:$0xff] %v3889_v20  ;;  %v922_v63 = vsel %vm893_vm13, %v3235_v39, %v3237_v40  ;;  %v923_v19 = vsel %vm893_vm13, %v3237_v40, %v3235_v39  ;;  %v3913_v35 = vadd.f32 %v3709_v59, %v1463_v25  ;;  %v5326_v20 = vld [vmem:[#allocation91_spill] sm:$0xff] }
 0x5b5   : > { %1689 = vrot.lane.b32.xlu1 %v3449_v33, %s5300_s27  ;;  %1691 = vrot.lane.b32.xlu0 %v3453_v46, %s5300_s27  ;;  %5307 = vst [vmem:[#allocation110_spill] sm:$0xff] %v3851_v34  ;;  %5311 = vst [vmem:[#allocation112_spill] sm:$0xff] %v3887_v7  ;;  %v3916_v36 = vadd.f32 %v3722_v45, %v1462_v27  ;;  %v908_v39 = vmul.f32 %v907_v1, %v901_v56  ;;  %v5315_v25 = vstv %s3676_s0  ;;  %s3982_s0 = sld [smem:[#allocation7 + $0x17]] }
 0x5b6   : > { %5310 = vst [vmem:[#allocation111_spill] sm:$0xff] %v3869_v17  ;;  %5313 = vst [vmem:[#allocation114_spill] sm:$0xff] %v3913_v35  ;;  %v946_v40 = vsel %vm893_vm13, %v3243_v41, %v3245_v47  ;;  %v947_v26 = vsel %vm893_vm13, %v3245_v47, %v3243_v41  ;;  %v995_v59 = vsel %vm893_vm13, %v3253_v51, %v3251_v48  ;;  %v5316_v56 = vmov %v5315_v25 }
 0x5b7   : > { %5314 = vst [vmem:[#allocation115_spill] sm:$0xff] %v3916_v36  ;;  %v909_v45 = vmul.f32 %v907_v1, %v900_v32  ;;  %v930_v27 = vmul.f32 %v5315_v25, %v923_v19  ;;  %v931_v50 = vmul.f32 %v5316_v56, %v922_v63  ;;  %v994_v41 = vsel %vm893_vm13, %v3251_v48, %v3253_v51 }
 0x5b8   : > { %v1019_v55 = vsel %vm893_vm13, %v3261_v10, %v3259_v52  ;;  %v903_v1 = vstv %s3855_s14  ;;  %v5317_v19 = vstv %s3680_s1  ;;  %v5319_v56 = vstv %s3682_s2  ;;  %s3995_s1 = sld [smem:[#allocation7 + $0x19]]  ;;  %s3997_s2 = sld [smem:[#allocation7 + $0x4]] }
 0x5b9   : > { %1712 = vrot.lane.b32.xlu1 %v3465_v2, %s5300_s27  ;;  %1714 = vrot.lane.b32.xlu0 %v3469_v43, %s5300_s27  ;;  %v3957_v25 = vmul.f32 %v5317_v19, %v947_v26  ;;  %v5318_v48 = vmov %v5317_v19  ;;  %v3965_v38 = vmul.f32 %v5319_v56, %v995_v59  ;;  %v1018_v49 = vsel %vm893_vm13, %v3259_v52, %v3261_v10  ;;  %s4132_s14 = sld [smem:[#allocation7 + $0x11]] }
 0x5ba   : > { %v3961_v51 = vmul.f32 %v5318_v48, %v946_v40  ;;  %v5320_v9 = vmov %v5319_v56  ;;  %v1043_v26 = vsel %vm893_vm13, %v3269_v8, %v3267_v53  ;;  %v925_v52 = vstv %s3878_s6  ;;  %s4069_s6 = sld [smem:[#allocation7 + $0x6]] }
 0x5bb   : > { %v3989_v10 = vmul.f32 %v1025_v6, %v1019_v55  ;;  %v4001_v48 = vmul.f32 %v1025_v6, %v1018_v49  ;;  %v1079_v6 = vsel %vm1072_vm14, %v3279_v60, %v3281_v61  ;;  %v1080_v49 = vsel %vm1072_vm14, %v3281_v61, %v3279_v60  ;;  %v5323_v55 = vld [vmem:[#allocation34_spill] sm:$0xff] }
 0x5bc   : > { %v1104_v21 = vstv %s4135_s16  ;;  %s4646_s16 = sld [smem:[#allocation7 + $0x5a]] }
 0x5bd   : > { %1736 = vrot.lane.b32.xlu1 %v3481_v31, %s5300_s27  ;;  %1738 = vrot.lane.b32.xlu0 %v3485_v44, %s5300_s27 }
 0x5c1   : > { %1868 = vrot.lane.b32.xlu1 %v3449_v33, %s5308_s7  ;;  %1870 = vrot.lane.b32.xlu0 %v3453_v46, %s5308_s7 }
 0x5c5   : > { %1891 = vrot.lane.b32.xlu1 %v3465_v2, %s5308_s7  ;;  %1893 = vrot.lane.b32.xlu0 %v3469_v43, %s5308_s7 }
 0x5c7   : > { %v890_v47 = vpop.permute.xlu1 %889  ;;  %v892_v57 = vpop.permute.xlu0 %891 }
 0x5c8   : > { %v894_v32 = vsel %vm893_vm13, %v890_v47, %v892_v57  ;;  %v895_v63 = vsel %vm893_vm13, %v892_v57, %v890_v47  ;;  %v3975_v57 = vmul.f32 %v5320_v9, %v994_v41  ;;  %v1042_v9 = vsel %vm893_vm13, %v3267_v53, %v3269_v8 }
 0x5c9   : > { %1915 = vrot.lane.b32.xlu1 %v3481_v31, %s5308_s7  ;;  %1917 = vrot.lane.b32.xlu0 %v3485_v44, %s5308_s7  ;;  %v904_v59 = vmul.f32 %v903_v1, %v895_v63  ;;  %v905_v41 = vmul.f32 %v903_v1, %v894_v32  ;;  %v4010_v8 = vmul.f32 %v1049_v3, %v1043_v26  ;;  %v973_v63 = vstv %s3908_s23  ;;  %v5321_v26 = vld [vmem:[#allocation90_spill] sm:$0xff]  ;;  %s4506_s23 = sld [smem:[#allocation7 + $0x1e]] }
 0x5ca   : > { %v4017_v40 = vmul.f32 %v1049_v3, %v1042_v9 }
 0x5cb   : > { %v913_v47 = vpop.permute.xlu1 %912  ;;  %v915_v19 = vpop.permute.xlu0 %914  ;;  %v911_v3 = vadd.f32 %v909_v45, %v905_v41 }
 0x5cc   : > { %v916_v56 = vsel %vm893_vm13, %v913_v47, %v915_v19  ;;  %v917_v53 = vsel %vm893_vm13, %v915_v19, %v913_v47  ;;  %v910_v47 = vadd.f32 %v908_v39, %v904_v59  ;;  %v5324_v39 = vld [vmem:[#allocation96_spill] sm:$0xff] }
 0x5cd   : > { %v926_v1 = vmul.f32 %v925_v52, %v917_v53  ;;  %v927_v32 = vmul.f32 %v925_v52, %v916_v56  ;;  %1784 = vrot.lane.b32.xlu1 %v3497_v28, %s5300_s27  ;;  %1786 = vrot.lane.b32.xlu0 %v5321_v26, %s5300_s27  ;;  %v949_v52 = vstv %s3934_s26  ;;  %v5322_v53 = vld [vmem:[#allocation35_spill] sm:$0xff]  ;;  %v974_v45 = vmul.f32 %v973_v63, %v5324_v39  ;;  %s4066_s26 = sld [smem:[#allocation7 + $0x1b]] }
 0x5ce   : > { %v1101_v60 = vsel %vm1072_vm14, %v5323_v55, %v5322_v53  ;;  %v1102_v61 = vsel %vm1072_vm14, %v5322_v53, %v5323_v55  ;;  %v5327_v55 = vstv %s3690_s5  ;;  %s4100_s5 = sld [smem:[#allocation7 + $0xa]] }
 0x5cf   : > { %v932_v9 = vadd.f32 %v930_v27, %v926_v1  ;;  %v933_v19 = vadd.f32 %v931_v50, %v927_v32  ;;  %v937_v56 = vpop.permute.xlu1 %936  ;;  %v5325_v27 = vld [vmem:[#allocation95_spill] sm:$0xff]  ;;  %v939_v59 = vpop.permute.xlu0 %938  ;;  %v4052_v53 = vmul.f32 %v5327_v55, %v1080_v49 }
 0x5d0   : > { %v975_v50 = vmul.f32 %v973_v63, %v5325_v27  ;;  %v940_v32 = vsel %vm893_vm13, %v937_v56, %v939_v59  ;;  %v941_v7 = vsel %vm893_vm13, %v939_v59, %v937_v56  ;;  %v5328_v27 = vld [vmem:[#allocation92_spill] sm:$0xff]  ;;  %v997_v59 = vstv %s3997_s2  ;;  %s4619_s2 = sld [smem:[#allocation7 + $0x55]] }
 0x5d1   : > { %v934_v41 = vadd.f32 %v932_v9, %v910_v47  ;;  %v935_v1 = vadd.f32 %v933_v19, %v911_v3  ;;  %1808 = vrot.lane.b32.xlu1 %v5326_v20, %s5300_s27  ;;  %v950_v17 = vmul.f32 %v949_v52, %v941_v7  ;;  %v951_v63 = vmul.f32 %v949_v52, %v940_v32  ;;  %v5332_v7 = vld [vmem:[#allocation36_spill] sm:$0xff]  ;;  %v5333_v52 = vld [vmem:[#allocation37_spill] sm:$0xff] }
 0x5d2   : > { %1810 = vrot.lane.b32.xlu0 %v5328_v27, %s5300_s27  ;;  %v5329_v47 = vmov %v5327_v55  ;;  %v5330_v9 = vstv %s3692_s11  ;;  %v1126_v32 = vsel %vm1072_vm14, %v5333_v52, %v5332_v7  ;;  %v981_v34 = vadd.f32 %v3831_v24, %v975_v50  ;;  %v5334_v24 = vld [vmem:[#allocation38_spill] sm:$0xff]  ;;  %s4119_s11 = sld [smem:[#allocation7 + $0x7]] }
 0x5d3   : > { %v4059_v3 = vmul.f32 %v5329_v47, %v1079_v6  ;;  %v4063_v19 = vmul.f32 %v5330_v9, %v1102_v61  ;;  %v985_v56 = vpop.permute.xlu1 %984  ;;  %v5331_v49 = vmov %v5330_v9  ;;  %v956_v6 = vadd.f32 %v3957_v25, %v950_v17  ;;  %v987_v47 = vpop.permute.xlu0 %986 }
 0x5d4   : > { %v4073_v55 = vmul.f32 %v5331_v49, %v1101_v60  ;;  %v957_v61 = vadd.f32 %v3961_v51, %v951_v63  ;;  %v980_v9 = vadd.f32 %v3829_v23, %v974_v45  ;;  %v988_v60 = vsel %vm893_vm13, %v985_v56, %v987_v47  ;;  %v5335_v45 = vld [vmem:[#allocation39_spill] sm:$0xff] }
 0x5d5   : > { %v989_v49 = vsel %vm893_vm13, %v987_v47, %v985_v56  ;;  %1963 = vrot.lane.b32.xlu1 %v3497_v28, %s5308_s7  ;;  %v958_v39 = vadd.f32 %v956_v6, %v934_v41  ;;  %v999_v51 = vmul.f32 %v997_v59, %v988_v60  ;;  %v1125_v23 = vsel %vm1072_vm14, %v5332_v7, %v5333_v52 }
 0x5d6   : > { %v959_v17 = vadd.f32 %v957_v61, %v935_v1  ;;  %v998_v25 = vmul.f32 %v997_v59, %v989_v49  ;;  %1965 = vrot.lane.b32.xlu0 %v5321_v26, %s5308_s7  ;;  %v1174_v50 = vsel %vm1072_vm14, %v5335_v45, %v5334_v24  ;;  %v1021_v1 = vstv %s4032_s4  ;;  %s4625_s4 = sld [smem:[#allocation7 + $0x5b]] }
 0x5d7   : > { %v1009_v41 = vpop.permute.xlu1 %1008  ;;  %v982_v56 = vadd.f32 %v980_v9, %v958_v39  ;;  %v1005_v61 = vadd.f32 %v3975_v57, %v999_v51  ;;  %v1011_v7 = vpop.permute.xlu0 %1010  ;;  %v5336_v52 = vstv %s3702_s28  ;;  %v1173_v60 = vsel %vm1072_vm14, %v5334_v24, %v5335_v45  ;;  %s4178_s28 = sld [smem:[#allocation7 + $0x9]] }
 0x5d8   : > { %v983_v59 = vadd.f32 %v981_v34, %v959_v17  ;;  %v1004_v6 = vadd.f32 %v3965_v38, %v998_v25  ;;  %v4107_v47 = vmul.f32 %v5336_v52, %v1126_v32  ;;  %v1012_v39 = vsel %vm893_vm13, %v1009_v41, %v1011_v7  ;;  %v5337_v38 = vld [vmem:[#allocation93_spill] sm:$0xff]  ;;  %v5338_v17 = vld [vmem:[#allocation94_spill] sm:$0xff] }
 0x5d9   : > { %v1013_v34 = vsel %vm893_vm13, %v1011_v7, %v1009_v41  ;;  %1832 = vrot.lane.b32.xlu1 %v5337_v38, %s5300_s27  ;;  %v1023_v49 = vmul.f32 %v1021_v1, %v1012_v39  ;;  %v5339_v25 = vmov %v5336_v52  ;;  %v5340_v24 = vstv %s3714_s9  ;;  %s4225_s9 = sld [smem:[#allocation7 + $0xb]] }
 0x5da   : > { %v1006_v57 = vadd.f32 %v1004_v6, %v982_v56  ;;  %v1007_v32 = vadd.f32 %v1005_v61, %v983_v59  ;;  %v1022_v9 = vmul.f32 %v1021_v1, %v1013_v34  ;;  %1834 = vrot.lane.b32.xlu0 %v5338_v17, %s5300_s27  ;;  %v4125_v51 = vmul.f32 %v5339_v25, %v1125_v23  ;;  %v5341_v56 = vld [vmem:[#allocation41_spill] sm:$0xff]  ;;  %v5342_v59 = vld [vmem:[#allocation40_spill] sm:$0xff]  ;;  %v5344_v25 = vld [vmem:[#allocation42_spill] sm:$0xff]  ;;  %s4155_s27 = sld [smem:[#allocation7 + $0x1f]] }
 0x5db   : > { %v4129_v45 = vmul.f32 %v5340_v24, %v1174_v50  ;;  %v1033_v7 = vpop.permute.xlu1 %1032  ;;  %v1045_v52 = vstv %s4069_s6  ;;  %v1197_v1 = vsel %vm1072_vm14, %v5342_v59, %v5341_v56  ;;  %v1198_v23 = vsel %vm1072_vm14, %v5341_v56, %v5342_v59  ;;  %v1035_v61 = vpop.permute.xlu0 %1034  ;;  %s4634_s6 = sld [smem:[#allocation7 + $0x5d]] }
 0x5dc   : > { %v1028_v50 = vadd.f32 %v3989_v10, %v1022_v9  ;;  %v1029_v6 = vadd.f32 %v4001_v48, %v1023_v49  ;;  %v5343_v39 = vmov %v5340_v24  ;;  %v5345_v24 = vld [vmem:[#allocation43_spill] sm:$0xff]  ;;  %v1036_v56 = vsel %vm893_vm13, %v1033_v7, %v1035_v61 }
 0x5dd   : > { %v4149_v34 = vmul.f32 %v5343_v39, %v1173_v60  ;;  %v1222_v41 = vsel %vm1072_vm14, %v5345_v24, %v5344_v25  ;;  %v1037_v10 = vsel %vm893_vm13, %v1035_v61, %v1033_v7  ;;  %1987 = vrot.lane.b32.xlu1 %v5326_v20, %s5308_s7  ;;  %v1047_v49 = vmul.f32 %v1045_v52, %v1036_v56 }
 0x5de   : > { %v1030_v48 = vadd.f32 %v1028_v50, %v1006_v57  ;;  %v1031_v60 = vadd.f32 %v1029_v6, %v1007_v32  ;;  %v1046_v9 = vmul.f32 %v1045_v52, %v1037_v10  ;;  %1989 = vrot.lane.b32.xlu0 %v5328_v27, %s5308_s7  ;;  %v5346_v59 = vstv %s3716_s17  ;;  %v5349_v6 = vld [vmem:[#allocation44_spill] sm:$0xff]  ;;  %s4269_s17 = sld [smem:[#allocation7 + $0xc]] }
 0x5df   : > { %v4167_v39 = vmul.f32 %v5346_v59, %v1198_v23  ;;  %v5347_v63 = vmov %v5346_v59  ;;  %v1221_v7 = vsel %vm1072_vm14, %v5344_v25, %v5345_v24  ;;  %v1152_v57 = vstv %s4100_s5  ;;  %v1069_v32 = vpop.permute.xlu1 %1068  ;;  %v5350_v23 = vld [vmem:[#allocation45_spill] sm:$0xff]  ;;  %v1071_v25 = vpop.permute.xlu0 %1070  ;;  %s4636_s5 = sld [smem:[#allocation7 + $0x58]] }
 0x5e0   : > { %v4171_v22 = vmul.f32 %v5347_v63, %v1197_v1  ;;  %v5348_v52 = vstv %s3728_s20  ;;  %v1259_v61 = vsel %vm1251_vm1, %v5350_v23, %v5349_v6  ;;  %v1052_v63 = vadd.f32 %v4010_v8, %v1046_v9  ;;  %v5352_v9 = vld [vmem:[#allocation46_spill] sm:$0xff]  ;;  %s4324_s20 = sld [smem:[#allocation2]] }
 0x5e1   : > { %v4182_v50 = vmul.f32 %v5348_v52, %v1222_v41  ;;  %v1053_v1 = vadd.f32 %v4017_v40, %v1047_v49  ;;  %v1258_v24 = vsel %vm1251_vm1, %v5349_v6, %v5350_v23  ;;  %v1082_v41 = vstv %s4119_s11  ;;  %2011 = vrot.lane.b32.xlu1 %v5337_v38, %s5308_s7  ;;  %v5353_v49 = vld [vmem:[#allocation47_spill] sm:$0xff]  ;;  %s4640_s11 = sld [smem:[#allocation7 + $0x59]] }
 0x5e2   : > { %v1073_v56 = vsel %vm1072_vm14, %v1069_v32, %v1071_v25  ;;  %v1074_v10 = vsel %vm1072_vm14, %v1071_v25, %v1069_v32  ;;  %v5351_v8 = vmov %v5348_v52  ;;  %v1281_v59 = vsel %vm1251_vm1, %v5353_v49, %v5352_v9  ;;  %2013 = vrot.lane.b32.xlu0 %v5338_v17, %s5308_s7 }
 0x5e3   : > { %v4203_v40 = vmul.f32 %v5351_v8, %v1221_v7  ;;  %v4209_v52 = vadd.f32 %v1052_v63, %v1030_v48  ;;  %v4211_v6 = vadd.f32 %v1053_v1, %v1031_v60  ;;  %v5354_v32 = vstv %s3730_s19  ;;  %v1092_v8 = vpop.permute.xlu1 %1091  ;;  %v5356_v63 = vld [vmem:[#allocation48_spill] sm:$0xff]  ;;  %v5357_v1 = vld [vmem:[#allocation49_spill] sm:$0xff]  ;;  %v1094_v17 = vpop.permute.xlu0 %1093  ;;  %s4338_s19 = sld [smem:[#allocation7 + $0xe]] }
 0x5e4   : > { %v4217_v23 = vmul.f32 %v5354_v32, %v1259_v61  ;;  %v1280_v7 = vsel %vm1251_vm1, %v5352_v9, %v5353_v49  ;;  %v5355_v48 = vmov %v5354_v32  ;;  %v1305_v61 = vsel %vm1251_vm1, %v5357_v1, %v5356_v63 }
 0x5e5   : > { %v4229_v60 = vmul.f32 %v5355_v48, %v1258_v24  ;;  %v1083_v32 = vmul.f32 %v1082_v41, %v1074_v10  ;;  %v1084_v0 = vmul.f32 %v1082_v41, %v1073_v56  ;;  %v5358_v38 = vstv %s3742_s21  ;;  %2017 = vrot.lane.b32.xlu1 %v3101_v15, %s5308_s7  ;;  %s4355_s21 = sld [smem:[#allocation7 + $0xf]] }
 0x5e6   : > { %v4237_v9 = vmul.f32 %v5358_v38, %v1281_v59  ;;  %v1095_v25 = vsel %vm1072_vm14, %v1092_v8, %v1094_v17  ;;  %v1096_v24 = vsel %vm1072_vm14, %v1094_v17, %v1092_v8  ;;  %v5359_v48 = vmov %v5358_v38  ;;  %2019 = vrot.lane.b32.xlu0 %v3105_v16, %s5308_s7  ;;  %v5361_v17 = vld [vmem:[#allocation51_spill] sm:$0xff]  ;;  %v5362_v8 = vld [vmem:[#allocation50_spill] sm:$0xff]  ;;  %s4294_s7 = sld [smem:[#allocation7 + $0xd]] }
 0x5e7   : > { %v4248_v36 = vmul.f32 %v5359_v48, %v1280_v7  ;;  %v1304_v41 = vsel %vm1251_vm1, %v5356_v63, %v5357_v1  ;;  %v1105_v38 = vmul.f32 %v1104_v21, %v1096_v24  ;;  %v1106_v56 = vmul.f32 %v1104_v21, %v1095_v25  ;;  %v1116_v48 = vpop.permute.xlu1 %1115  ;;  %v5363_v24 = vld [vmem:[#allocation98_spill] sm:$0xff] }
 0x5e8   : > { %v5360_v10 = vstv %s3744_s13  ;;  %v1352_v15 = vsel %vm1251_vm1, %v5362_v8, %v5361_v17  ;;  %v1353_v7 = vsel %vm1251_vm1, %v5361_v17, %v5362_v8  ;;  %v1128_v63 = vstv %s4178_s28  ;;  %v5364_v17 = vld [vmem:[#allocation97_spill] sm:$0xff]  ;;  %s4661_s28 = sld [smem:[#allocation7 + $0x26]] }
 0x5e9   : > { %v4258_v59 = vmul.f32 %v5360_v10, %v1305_v61  ;;  %v1089_v16 = vadd.f32 %v4052_v53, %v1083_v32  ;;  %v1090_v21 = vadd.f32 %v4059_v3, %v1084_v0  ;;  %v1111_v25 = vadd.f32 %v4063_v19, %v1105_v38  ;;  %v1118_v61 = vpop.permute.xlu0 %1117 }
 0x5ea   : > { %v1112_v1 = vadd.f32 %v4073_v55, %v1106_v56  ;;  %v1153_v10 = vmul.f32 %v1152_v57, %v5363_v24  ;;  %v1154_v8 = vmul.f32 %v1152_v57, %v5364_v17  ;;  %v1119_v49 = vsel %vm1072_vm14, %v1116_v48, %v1118_v61  ;;  %v5368_v17 = vld [vmem:[#allocation53_spill] sm:$0xff] }
 0x5eb   : > { %v1120_v35 = vsel %vm1072_vm14, %v1118_v61, %v1116_v48  ;;  %v1113_v62 = vadd.f32 %v1111_v25, %v1089_v16  ;;  %v1130_v0 = vmul.f32 %v1128_v63, %v1119_v49  ;;  %v5365_v3 = vstv %s3744_s13  ;;  %v1164_v57 = vpop.permute.xlu1 %1163  ;;  %v5369_v48 = vld [vmem:[#allocation52_spill] sm:$0xff]  ;;  %s4389_s13 = sld [smem:[#allocation7 + $0x10]] }
 0x5ec   : > { %v1114_v53 = vadd.f32 %v1112_v1, %v1090_v21  ;;  %v1129_v32 = vmul.f32 %v1128_v63, %v1120_v35  ;;  %v4283_v20 = vmul.f32 %v5365_v3, %v1304_v41  ;;  %v5366_v19 = vstv %s3756_s22  ;;  %s4429_s22 = sld [smem:[#allocation7 + $0x13]] }
 0x5ed   : > { %v4287_v55 = vmul.f32 %v5366_v19, %v1353_v7  ;;  %v5367_v38 = vmov %v5366_v19  ;;  %v1176_v24 = vstv %s4225_s9  ;;  %v1376_v35 = vsel %vm1251_vm1, %v5369_v48, %v5368_v17  ;;  %v1166_v7 = vpop.permute.xlu0 %1165  ;;  %s4663_s9 = sld [smem:[#allocation7 + $0x2d]] }
 0x5ee   : > { %v4291_v56 = vmul.f32 %v5367_v38, %v1352_v15  ;;  %v1377_v49 = vsel %vm1251_vm1, %v5368_v17, %v5369_v48  ;;  %v1135_v41 = vadd.f32 %v4107_v47, %v1129_v32  ;;  %v1136_v15 = vadd.f32 %v4125_v51, %v1130_v0  ;;  %v5371_v51 = vld [vmem:[#allocation55_spill] sm:$0xff]  ;;  %v5372_v0 = vld [vmem:[#allocation54_spill] sm:$0xff] }
 0x5ef   : > { %v1159_v63 = vadd.f32 %v3833_v5, %v1153_v10  ;;  %v1160_v16 = vadd.f32 %v3838_v18, %v1154_v8  ;;  %v1167_v21 = vsel %vm1072_vm14, %v1164_v57, %v1166_v7  ;;  %v1168_v25 = vsel %vm1072_vm14, %v1166_v7, %v1164_v57  ;;  %v1188_v10 = vpop.permute.xlu1 %1187 }
 0x5f0   : > { %v1137_v1 = vadd.f32 %v1135_v41, %v1113_v62  ;;  %v1138_v61 = vadd.f32 %v1136_v15, %v1114_v53  ;;  %v1177_v3 = vmul.f32 %v1176_v24, %v1168_v25  ;;  %v1178_v19 = vmul.f32 %v1176_v24, %v1167_v21 }
 0x5f1   : > { %v5370_v47 = vstv %s3758_s10  ;;  %v1400_v5 = vsel %vm1251_vm1, %v5372_v0, %v5371_v51  ;;  %v1401_v18 = vsel %vm1251_vm1, %v5371_v51, %v5372_v0  ;;  %v1200_v62 = vstv %s4269_s17  ;;  %v1190_v24 = vpop.permute.xlu0 %1189  ;;  %v5378_v0 = vld [vmem:[#allocation59_spill] sm:$0xff]  ;;  %s4450_s10 = sld [smem:[#allocation7 + $0x14]] }
 0x5f2   : > { %v4314_v32 = vmul.f32 %v5370_v47, %v1377_v49  ;;  %v1161_v8 = vadd.f32 %v1159_v63, %v1137_v1  ;;  %v1162_v53 = vadd.f32 %v1160_v16, %v1138_v61  ;;  %v1183_v38 = vadd.f32 %v4129_v45, %v1177_v3  ;;  %v5376_v1 = vld [vmem:[#allocation57_spill] sm:$0xff]  ;;  %v5377_v61 = vld [vmem:[#allocation56_spill] sm:$0xff]  ;;  %s4712_s17 = sld [smem:[#allocation7 + $0x24]] }
 0x5f3   : > { %v1184_v57 = vadd.f32 %v4149_v34, %v1178_v19  ;;  %v5373_v17 = vmov %v5370_v47  ;;  %v1056_v49 = vadd.s32 4294967248, %v2850_v58  ;;  %v1191_v41 = vsel %vm1072_vm14, %v1188_v10, %v1190_v24  ;;  %v1212_v19 = vpop.permute.xlu1 %1211 }
 0x5f4   : > { %v4331_v48 = vmul.f32 %v5373_v17, %v1376_v35  ;;  %v1192_v15 = vsel %vm1072_vm14, %v1190_v24, %v1188_v10  ;;  %v1185_v7 = vadd.f32 %v1183_v38, %v1161_v8  ;;  %v1202_v16 = vmul.f32 %v1200_v62, %v1191_v41 }
 0x5f5   : > { %v1186_v63 = vadd.f32 %v1184_v57, %v1162_v53  ;;  %v1201_v45 = vmul.f32 %v1200_v62, %v1192_v15  ;;  %v5374_v21 = vstv %s3770_s18  ;;  %v4352_v3 = vsel %vm1514_vm2, %v5377_v61, %v5376_v1  ;;  %v1214_v8 = vpop.permute.xlu0 %1213  ;;  %s4478_s18 = sld [smem:[#allocation7 + $0x1c]] }
 0x5f6   : > { %v4342_v34 = vmul.f32 %v5374_v21, %v1401_v18  ;;  %v5375_v25 = vmov %v5374_v21  ;;  %v1224_v47 = vstv %s4294_s7  ;;  %v4361_v51 = vsel %vm1514_vm2, %v5376_v1, %v5377_v61  ;;  %s4732_s7 = sld [smem:[#allocation7 + $0x23]] }
 0x5f7   : > { %v4346_v35 = vmul.f32 %v5375_v25, %v1400_v5  ;;  %v5379_v5 = vld [vmem:[#allocation58_spill] sm:$0xff]  ;;  %v1207_v10 = vadd.f32 %v4167_v39, %v1201_v45  ;;  %v1208_v62 = vadd.f32 %v4171_v22, %v1202_v16  ;;  %vm1058_vm6 = vcmp.ge.s32.totalorder %v1056_v49, 0  ;;  %v1248_v25 = vpop.permute.xlu1 %1247 }
 0x5f8   : > { %v4367_v18 = vsel %vm1514_vm2, %v5379_v5, %v5378_v0  ;;  %v1235_v53 = vadd.s32 4294967264, %v2850_v58  ;;  %v1215_v38 = vsel %vm1072_vm14, %v1212_v19, %v1214_v8  ;;  %v1216_v57 = vsel %vm1072_vm14, %v1214_v8, %v1212_v19 }
 0x5f9   : > { %v1209_v24 = vadd.f32 %v1207_v10, %v1185_v7  ;;  %v1210_v17 = vadd.f32 %v1208_v62, %v1186_v63  ;;  %v1225_v41 = vmul.f32 %v1224_v47, %v1216_v57  ;;  %v1226_v15 = vmul.f32 %v1224_v47, %v1215_v38  ;;  %v1250_v47 = vpop.permute.xlu0 %1249 }
 0x5fa   : > { %v4380_v22 = vsel %vm1514_vm2, %v5378_v0, %v5379_v5  ;;  %v5380_v39 = vstv %s3874_s25  ;;  %v5381_v45 = vstv %s3904_s30  ;;  %v888_v21 = vstv %s4324_s20  ;;  %s4411_s25 = sld [smem:[#allocation7 + $0x12]]  ;;  %s4483_s30 = sld [smem:[#allocation7 + $0x1d]] }
 0x5fb   : > { %v1428_v49 = vmul.f32 %v5380_v39, %v3449_v33  ;;  %v1438_v16 = vmul.f32 %v5381_v45, %v3465_v2  ;;  %v5382_v7 = vmov %v5380_v39  ;;  %v1064_v1 = vsel %vm1058_vm6, %v4209_v52, 0.0  ;;  %v1271_v38 = vpop.permute.xlu1 %1270  ;;  %s4734_s20 = sld [smem:[#allocation7 + $0x25]] }
 0x5fc   : > { %v1429_v63 = vmul.f32 %v5382_v7, %v3453_v46  ;;  %v1231_v61 = vadd.f32 %v4182_v50, %v1225_v41  ;;  %v1232_v19 = vadd.f32 %v4203_v40, %v1226_v15  ;;  %vm1237_vm9 = vcmp.ge.s32.totalorder %v1235_v53, 0 }
 0x5fd   : > { %v1261_v33 = vstv %s4338_s19  ;;  %v1252_v2 = vsel %vm1251_vm1, %v1248_v25, %v1250_v47  ;;  %v1253_v0 = vsel %vm1251_vm1, %v1250_v47, %v1248_v25  ;;  %v5383_v5 = vmov %v5381_v45  ;;  %s4813_s19 = sld [smem:[#allocation7 + $0x2a]] }
 0x5fe   : > { %v1439_v10 = vmul.f32 %v5383_v5, %v3469_v43  ;;  %v1067_v46 = vadd.f32 %v4211_v6, %v888_v21  ;;  %v1233_v52 = vadd.f32 %v1231_v61, %v1209_v24  ;;  %v1234_v62 = vadd.f32 %v1232_v19, %v1210_v17  ;;  %v1273_v6 = vpop.permute.xlu0 %1272 }
 0x5ff   : > { %v1444_v50 = vadd.f32 %v3739_v12, %v1438_v16  ;;  %v5384_v40 = vstv %s3982_s0  ;;  %v1066_v53 = vadd.f32 %v1064_v1, %v888_v21  ;;  %v1283_v57 = vstv %s4355_s21  ;;  %v1295_v61 = vpop.permute.xlu1 %1294  ;;  %s4547_s0 = sld [smem:[#allocation7 + $0x21]]  ;;  %s4815_s21 = sld [smem:[#allocation7 + $0x27]] }
 0x600   : > { %v1450_v8 = vmul.f32 %v5384_v40, %v3481_v31  ;;  %v1243_v41 = vsel %vm1237_vm9, %v1233_v52, 0.0  ;;  %v4413_v15 = vadd.f32 %v1234_v62, %v1067_v46  ;;  %v1262_v43 = vmul.f32 %v1261_v33, %v1253_v0 }
 0x601   : > { %v1263_v39 = vmul.f32 %v1261_v33, %v1252_v2  ;;  %v1434_v24 = vadd.f32 %v3733_v11, %v1428_v49  ;;  %v4416_v17 = vadd.f32 %v1243_v41, %v1066_v53  ;;  %v1274_v31 = vsel %vm1251_vm1, %v1271_v38, %v1273_v6  ;;  %v5386_v2 = vld [vmem:[#allocation100_spill] sm:$0xff] }
 0x602   : > { %v1275_v12 = vsel %vm1251_vm1, %v1273_v6, %v1271_v38  ;;  %v1435_v45 = vadd.f32 %v3736_v42, %v1429_v63  ;;  %v1445_v16 = vadd.f32 %v3747_v4, %v1439_v10  ;;  %v1285_v25 = vmul.f32 %v1283_v57, %v1274_v31  ;;  %v1297_v33 = vpop.permute.xlu0 %1296 }
 0x603   : > { %v1284_v21 = vmul.f32 %v1283_v57, %v1275_v12  ;;  %v1446_v7 = vadd.f32 %v1444_v50, %v1434_v24  ;;  %v5385_v1 = vmov %v5384_v40  ;;  %v1456_v49 = vadd.f32 %v3750_v13, %v1450_v8  ;;  %v5388_v13 = vld [vmem:[#allocation99_spill] sm:$0xff]  ;;  %v1343_v53 = vpop.permute.xlu1 %1342 }
 0x604   : > { %v1451_v11 = vmul.f32 %v5385_v1, %v3485_v44  ;;  %v1307_v19 = vstv %s4389_s13  ;;  %v1268_v47 = vadd.f32 %v4217_v23, %v1262_v43  ;;  %v1269_v42 = vadd.f32 %v4229_v60, %v1263_v39  ;;  %s4831_s13 = sld [smem:[#allocation7 + $0x2b]] }
 0x605   : > { %v1290_v4 = vadd.f32 %v4237_v9, %v1284_v21  ;;  %v1291_v63 = vadd.f32 %v4248_v36, %v1285_v25  ;;  %v5387_v0 = vstv %s4132_s14  ;;  %v1298_v46 = vsel %vm1251_vm1, %v1295_v61, %v1297_v33  ;;  %s4642_s14 = sld [smem:[#allocation7 + $0x5f]] }
 0x606   : > { %v1332_v44 = vmul.f32 %v5387_v0, %v5386_v2  ;;  %v5389_v5 = vmov %v5387_v0  ;;  %v1299_v23 = vsel %vm1251_vm1, %v1297_v33, %v1295_v61  ;;  %v1309_v9 = vmul.f32 %v1307_v19, %v1298_v46  ;;  %v1345_v24 = vpop.permute.xlu0 %1344  ;;  %v5397_v46 = vld [vmem:[#allocation115_spill] sm:$0xff] }
 0x607   : > { %v1333_v10 = vmul.f32 %v5389_v5, %v5388_v13  ;;  %v1292_v60 = vadd.f32 %v1290_v4, %v1268_v47  ;;  %v1293_v52 = vadd.f32 %v1291_v63, %v1269_v42  ;;  %v1308_v62 = vmul.f32 %v1307_v19, %v1299_v23  ;;  %v5393_v42 = vld [vmem:[#allocation91_spill] sm:$0xff]  ;;  %v5395_v13 = vld [vmem:[#allocation106_spill] sm:$0xff]  ;;  %v5396_v5 = vld [vmem:[#allocation114_spill] sm:$0xff] }
 0x608   : > { %v1447_v50 = vadd.f32 %v1445_v16, %v1435_v45  ;;  %v1457_v36 = vadd.f32 %v3753_v29, %v1451_v11  ;;  %v5390_v40 = vstv %s3995_s1  ;;  %v1355_v38 = vstv %s4411_s25  ;;  %s4608_s1 = sld [smem:[#allocation7 + $0x5e]]  ;;  %s4833_s25 = sld [smem:[#allocation7 + $0x28]] }
 0x609   : > { %v1474_v8 = vmul.f32 %v5390_v40, %v3497_v28  ;;  %v1458_v57 = vadd.f32 %v1456_v49, %v1446_v7  ;;  %v5391_v41 = vmov %v5390_v40  ;;  %v1314_v39 = vadd.f32 %v4258_v59, %v1308_v62 }
 0x60a   : > { %v1475_v43 = vmul.f32 %v5391_v41, %v5321_v26  ;;  %v1315_v6 = vadd.f32 %v4283_v20, %v1309_v9  ;;  %v1338_v29 = vadd.f32 %v3840_v14, %v1332_v44  ;;  %v1339_v31 = vadd.f32 %v3847_v54, %v1333_v10  ;;  %v1367_v14 = vpop.permute.xlu1 %1366  ;;  %v1369_v19 = vpop.permute.xlu0 %1368  ;;  %v5400_v9 = vld [vmem:[#allocation94_spill] sm:$0xff] }
 0x60b   : > { %v1346_v28 = vsel %vm1251_vm1, %v1343_v53, %v1345_v24  ;;  %v1347_v12 = vsel %vm1251_vm1, %v1345_v24, %v1343_v53  ;;  %v1316_v45 = vadd.f32 %v1314_v39, %v1292_v60  ;;  %v1459_v25 = vadd.f32 %v1457_v36, %v1447_v50  ;;  %v5398_v60 = vld [vmem:[#allocation93_spill] sm:$0xff] }
 0x60c   : > { %v1317_v16 = vadd.f32 %v1315_v6, %v1293_v52  ;;  %v1356_v26 = vmul.f32 %v1355_v38, %v1347_v12  ;;  %v1357_v21 = vmul.f32 %v1355_v38, %v1346_v28  ;;  %v1480_v59 = vadd.f32 %v3763_v30, %v1474_v8 }
 0x60d   : > { %v5392_v20 = vstv %s4030_s3  ;;  %v1379_v1 = vstv %s4429_s22  ;;  %v1340_v54 = vadd.f32 %v1338_v29, %v1316_v45  ;;  %v1481_v47 = vadd.f32 %v3766_v37, %v1475_v43  ;;  %s4621_s3 = sld [smem:[#allocation7 + $0x56]]  ;;  %s4863_s22 = sld [smem:[#allocation7 + $0x2c]] }
 0x60e   : > { %v1487_v7 = vmul.f32 %v5392_v20, %v5328_v27  ;;  %v1341_v11 = vadd.f32 %v1339_v31, %v1317_v16  ;;  %v1362_v49 = vadd.f32 %v4287_v55, %v1356_v26  ;;  %v1363_v61 = vadd.f32 %v4291_v56, %v1357_v21  ;;  %v1391_v56 = vpop.permute.xlu1 %1390  ;;  %v1393_v53 = vpop.permute.xlu0 %1392  ;;  %v5405_v21 = vld [vmem:[#allocation108_spill] sm:$0xff] }
 0x60f   : > { %v5394_v4 = vmov %v5392_v20  ;;  %v1370_v27 = vsel %vm1251_vm1, %v1367_v14, %v1369_v19  ;;  %v1371_v63 = vsel %vm1251_vm1, %v1369_v19, %v1367_v14  ;;  %v1403_v44 = vstv %s4450_s10  ;;  %s4887_s10 = sld [smem:[#allocation7 + $0x2e]] }
 0x610   : > { %v1486_v30 = vmul.f32 %v5394_v4, %v5393_v42  ;;  %v1364_v33 = vadd.f32 %v1362_v49, %v1340_v54  ;;  %v1365_v2 = vadd.f32 %v1363_v61, %v1341_v11  ;;  %v1380_v0 = vmul.f32 %v1379_v1, %v1371_v63  ;;  %v5408_v11 = vld [vmem:[#allocation60_spill] sm:$0xff]  ;;  %v5409_v42 = vld [vmem:[#allocation63_spill] sm:$0xff]  ;;  %v5410_v4 = vld [vmem:[#allocation62_spill] sm:$0xff] }
 0x611   : > { %v1381_v55 = vmul.f32 %v1379_v1, %v1370_v27  ;;  %v1493_v37 = vadd.f32 %v5395_v13, %v1487_v7  ;;  %v1471_v10 = vadd.f32 %v5396_v5, %v1459_v25  ;;  %v1470_v23 = vadd.f32 %v5397_v46, %v1458_v57  ;;  %v5402_v57 = vld [vmem:[#allocation105_spill] sm:$0xff]  ;;  %v5406_v1 = vld [vmem:[#allocation109_spill] sm:$0xff] }
 0x612   : > { %v5399_v52 = vstv %s4066_s26  ;;  %v1386_v40 = vadd.f32 %v4314_v32, %v1380_v0  ;;  %v1414_v38 = vadd.s32 4294967280, %v2850_v58  ;;  %v1394_v41 = vsel %vm1251_vm1, %v1391_v56, %v1393_v53  ;;  %v1511_v16 = vpop.permute.xlu1 %1510  ;;  %v1513_v14 = vpop.permute.xlu0 %1512  ;;  %s4627_s26 = sld [smem:[#allocation7 + $0x5c]] }
 0x613   : > { %v1498_v62 = vmul.f32 %v5399_v52, %v5398_v60  ;;  %v5401_v50 = vmov %v5399_v52  ;;  %v1387_v8 = vadd.f32 %v4331_v48, %v1381_v55  ;;  %v1395_v43 = vsel %vm1251_vm1, %v1393_v53, %v1391_v56 }
 0x614   : > { %v1499_v36 = vmul.f32 %v5401_v50, %v5400_v9  ;;  %v1492_v39 = vadd.f32 %v5402_v57, %v1486_v30  ;;  %v1388_v6 = vadd.f32 %v1386_v40, %v1364_v33  ;;  %v1404_v29 = vmul.f32 %v1403_v44, %v1395_v43 }
 0x615   : > { %v1389_v24 = vadd.f32 %v1387_v8, %v1365_v2  ;;  %v1405_v31 = vmul.f32 %v1403_v44, %v1394_v41  ;;  %v5403_v28 = vstv %s3791_s12  ;;  %v1483_v45 = vadd.f32 %v1481_v47, %v1471_v10  ;;  %s4530_s12 = sld [smem:[#allocation7 + $0x20]] }
 0x616   : > { %v1551_v32 = vmul.f32 %v5403_v28, %v4367_v18  ;;  %v5404_v48 = vmov %v5403_v28  ;;  %v1482_v26 = vadd.f32 %v1480_v59, %v1470_v23  ;;  %v1505_v25 = vadd.f32 %v5405_v21, %v1499_v36  ;;  %v5407_v18 = vld [vmem:[#allocation61_spill] sm:$0xff]  ;;  %v1534_v63 = vpop.permute.xlu1 %1533  ;;  %v1536_v56 = vpop.permute.xlu0 %1535 }
 0x617   : > { %v1552_v12 = vmul.f32 %v5404_v48, %v4380_v22  ;;  %v1410_v20 = vadd.f32 %v4342_v34, %v1404_v29  ;;  %v1411_v7 = vadd.f32 %v4346_v35, %v1405_v31  ;;  %v1504_v54 = vadd.f32 %v5406_v1, %v1498_v62 }
 0x618   : > { %v1567_v22 = vsel %vm1514_vm2, %v5408_v11, %v5407_v18  ;;  %vm1416_vm10 = vcmp.ge.s32.totalorder %v1414_v38, 0  ;;  %v1495_v49 = vadd.f32 %v1493_v37, %v1483_v45  ;;  %v1494_v61 = vadd.f32 %v1492_v39, %v1482_v26  ;;  %v5417_v45 = vld [vmem:[#allocation64_spill] sm:$0xff]  ;;  %v5418_v26 = vld [vmem:[#allocation101_spill] sm:$0xff] }
 0x619   : > { %v1412_v19 = vadd.f32 %v1410_v20, %v1388_v6  ;;  %v1413_v59 = vadd.f32 %v1411_v7, %v1389_v24  ;;  %v1524_v47 = vstv %s4478_s18  ;;  %v1515_v34 = vsel %vm1514_vm2, %v1511_v16, %v1513_v14  ;;  %v5420_v20 = vld [vmem:[#allocation102_spill] sm:$0xff]  ;;  %s4889_s18 = sld [smem:[#allocation7 + $0x29]] }
 0x61a   : > { %v1568_v35 = vsel %vm1514_vm2, %v5407_v18, %v5408_v11  ;;  %v1615_v30 = vsel %vm1514_vm2, %v5410_v4, %v5409_v42  ;;  %v1516_v27 = vsel %vm1514_vm2, %v1513_v14, %v1511_v16  ;;  %v1546_v33 = vstv %s4483_s30  ;;  %v1560_v39 = vpop.permute.xlu0 %1559  ;;  %s4897_s30 = sld [smem:[#allocation7 + $0x2f]] }
 0x61b   : > { %v1422_v2 = vsel %vm1416_vm10, %v1412_v19, 0.0  ;;  %v1425_v0 = vadd.f32 %v1413_v59, %v4413_v15  ;;  %v1507_v55 = vadd.f32 %v1505_v25, %v1495_v49  ;;  %v1506_v44 = vadd.f32 %v1504_v54, %v1494_v61 }
 0x61c   : > { %v1424_v13 = vadd.f32 %v1422_v2, %v4416_v17  ;;  %v1525_v37 = vmul.f32 %v1524_v47, %v1515_v34  ;;  %v1537_v5 = vsel %vm1514_vm2, %v1534_v63, %v1536_v56  ;;  %v1538_v10 = vsel %vm1514_vm2, %v1536_v56, %v1534_v63  ;;  %v1558_v17 = vpop.permute.xlu1 %1557  ;;  %v5424_v2 = vld [vmem:[#allocation110_spill] sm:$0xff] }
 0x61d   : > { %v4538_v46 = vadd.f32 %v1507_v55, %v1425_v0  ;;  %v1526_v23 = vmul.f32 %v1524_v47, %v1516_v27  ;;  %v1547_v60 = vmul.f32 %v1546_v33, %v1537_v5  ;;  %v1548_v15 = vmul.f32 %v1546_v33, %v1538_v10  ;;  %v5425_v55 = vld [vmem:[#allocation111_spill] sm:$0xff]  ;;  %v5427_v10 = vld [vmem:[#allocation67_spill] sm:$0xff] }
 0x61e   : > { %v5411_v52 = vstv %s3772_s24  ;;  %v1570_v36 = vstv %s4506_s23  ;;  %v4549_v40 = vadd.f32 %v1506_v44, %v1424_v13  ;;  %v5413_v8 = vstv %s3793_s8  ;;  %s4576_s8 = sld [smem:[#allocation7 + $0x22]]  ;;  %v1608_v61 = vpop.permute.xlu0 %1607  ;;  %s4588_s24 = sld [smem:[#allocation7 + $0x57]] }
 0x61f   : > { %v1529_v62 = vmul.f32 %v5411_v52, %v4352_v3  ;;  %v5412_v9 = vmov %v5411_v52  ;;  %v1575_v53 = vmul.f32 %v5413_v8, %v1567_v22  ;;  %v5414_v38 = vmov %v5413_v8  ;;  %s4947_s23 = sld [smem:[#allocation7 + $0x30]] }
 0x620   : > { %v1530_v50 = vmul.f32 %v5412_v9, %v4361_v51  ;;  %v1576_v41 = vmul.f32 %v5414_v38, %v1568_v35  ;;  %v1553_v43 = vadd.f32 %v1551_v32, %v1547_v60  ;;  %v1554_v57 = vadd.f32 %v1552_v12, %v1548_v15  ;;  %v5416_v12 = vld [vmem:[#allocation65_spill] sm:$0xff]  ;;  %v1606_v1 = vpop.permute.xlu1 %1605 }
 0x621   : > { %v1616_v3 = vsel %vm1514_vm2, %v5409_v42, %v5410_v4  ;;  %v5415_v51 = vstv %s3807_s29  ;;  %v1561_v24 = vsel %vm1514_vm2, %v1558_v17, %v1560_v39  ;;  %v1562_v29 = vsel %vm1514_vm2, %v1560_v39, %v1558_v17  ;;  %s5429_s29 = sld [smem:[#allocation107_spill]] }
 0x622   : > { %v1623_v6 = vmul.f32 %v5415_v51, %v1615_v30  ;;  %v1531_v31 = vadd.f32 %v1529_v62, %v1525_v37  ;;  %v1532_v28 = vadd.f32 %v1530_v50, %v1526_v23  ;;  %v1571_v48 = vmul.f32 %v1570_v36, %v1561_v24  ;;  %v5428_v23 = vld [vmem:[#allocation66_spill] sm:$0xff]  ;;  %v1632_v52 = vpop.permute.xlu0 %1631 }
 0x623   : > { %v1572_v32 = vmul.f32 %v1570_v36, %v1562_v29  ;;  %v1639_v16 = vsel %vm1514_vm2, %v5417_v45, %v5416_v12  ;;  %v5419_v21 = vstv %s4155_s27  ;;  %v1618_v54 = vstv %s4530_s12  ;;  %s4648_s27 = sld [smem:[#allocation7 + $0x60]]  ;;  %s4949_s12 = sld [smem:[#allocation7 + $0x61]] }
 0x624   : > { %v1595_v25 = vmul.f32 %v5419_v21, %v5418_v26  ;;  %v5421_v7 = vmov %v5419_v21  ;;  %v1555_v18 = vadd.f32 %v1553_v43, %v1531_v31  ;;  %v1556_v11 = vadd.f32 %v1554_v57, %v1532_v28  ;;  %v1630_v44 = vpop.permute.xlu1 %1629 }
 0x625   : > { %v1596_v14 = vmul.f32 %v5421_v7, %v5420_v20  ;;  %v1577_v22 = vadd.f32 %v1575_v53, %v1571_v48  ;;  %v1578_v49 = vadd.f32 %v1576_v41, %v1572_v32  ;;  %v5422_v19 = vmov %v5415_v51 }
 0x626   : > { %v1624_v59 = vmul.f32 %v5422_v19, %v1616_v3  ;;  %v1640_v47 = vsel %vm1514_vm2, %v5416_v12, %v5417_v45  ;;  %v1609_v34 = vsel %vm1514_vm2, %v1606_v1, %v1608_v61  ;;  %v1610_v35 = vsel %vm1514_vm2, %v1608_v61, %v1606_v1  ;;  %v1656_v29 = vpop.permute.xlu0 %1655  ;;  %v5434_v19 = vld [vmem:[#allocation32_spill] sm:$0xff] }
 0x627   : > { %v1579_v42 = vadd.f32 %v1577_v22, %v1555_v18  ;;  %v1580_v4 = vadd.f32 %v1578_v49, %v1556_v11  ;;  %v1619_v30 = vmul.f32 %v1618_v54, %v1609_v34  ;;  %v1620_v27 = vmul.f32 %v1618_v54, %v1610_v35  ;;  %v5432_v18 = vld [vmem:[#allocation30_spill] sm:$0xff]  ;;  %v5433_v11 = vld [vmem:[#allocation31_spill] sm:$0xff] }
 0x628   : > { %v5423_v63 = vstv %s3817_s15  ;;  %v1601_v0 = vadd.f32 %v5424_v2, %v1595_v25  ;;  %v1602_v56 = vadd.f32 %v5425_v55, %v1596_v14  ;;  %v1642_v13 = vstv %s4547_s0  ;;  %s4614_s15 = sld [smem:[#allocation7 + $0x54]]  ;;  %v1654_v43 = vpop.permute.xlu1 %1653  ;;  %s5462_s0 = sld [smem:[#allocation16_spill]] }
 0x629   : > { %v1647_v33 = vmul.f32 %v5423_v63, %v1639_v16  ;;  %v5426_v37 = vmov %v5423_v63  ;;  %v1663_v60 = vsel %vm1514_vm2, %v5428_v23, %v5427_v10  ;;  %v1664_v15 = vsel %vm1514_vm2, %v5427_v10, %v5428_v23  ;;  %v5437_v23 = vld [vmem:[#allocation68_spill] sm:$0xff] }
 0x62a   : > { %v1648_v5 = vmul.f32 %v5426_v37, %v1640_v47  ;;  %v4606_v62 = vadd.s32 128, %v2850_v58  ;;  %v1603_v9 = vadd.f32 %v1601_v0, %v1579_v42  ;;  %v1604_v50 = vadd.f32 %v1602_v56, %v1580_v4  ;;  %v4650_v54 = vpop.permute.xlu0 %1691 }
 0x62b   : > { %v1633_v17 = vsel %vm1514_vm2, %v1630_v44, %v1632_v52  ;;  %v1634_v36 = vsel %vm1514_vm2, %v1632_v52, %v1630_v44  ;;  %v1625_v8 = vadd.f32 %v1623_v6, %v1619_v30  ;;  %v1626_v53 = vadd.f32 %v1624_v59, %v1620_v27  ;;  %v5435_v59 = vld [vmem:[#allocation33_spill] sm:$0xff] }
 0x62c   : > { %v1643_v38 = vmul.f32 %v1642_v13, %v1633_v17  ;;  %v1644_v41 = vmul.f32 %v1642_v13, %v1634_v36  ;;  %v1666_v57 = vstv %s4576_s8  ;;  %v5430_v39 = vstv %s5429_s29  ;;  %v4644_v25 = vpop.permute.xlu1 %1689  ;;  %v5438_v17 = vld [vmem:[#allocation71_spill] sm:$0xff]  ;;  %v5439_v36 = vld [vmem:[#allocation70_spill] sm:$0xff]  ;;  %s5463_s8 = sld [smem:[#allocation21_spill]] }
 0x62d   : > { %v1671_v3 = vmul.f32 %v5430_v39, %v1663_v60  ;;  %v5431_v31 = vmov %v5430_v39  ;;  %v1657_v6 = vsel %vm1514_vm2, %v1654_v43, %v1656_v29  ;;  %v1658_v48 = vsel %vm1514_vm2, %v1656_v29, %v1654_v43  ;;  %v5441_v29 = vld [vmem:[#allocation72_spill] sm:$0xff] }
 0x62e   : > { %v1649_v51 = vadd.f32 %v1647_v33, %v1643_v38  ;;  %v1650_v24 = vadd.f32 %v1648_v5, %v1644_v41  ;;  %v1672_v28 = vmul.f32 %v5431_v31, %v1664_v15  ;;  %v1678_v32 = vadd.s32 16, %v4606_v62  ;;  %v1715_v2 = vpop.permute.xlu0 %1714 }
 0x62f   : > { %v1627_v12 = vadd.f32 %v1625_v8, %v1603_v9  ;;  %v1628_v45 = vadd.f32 %v1626_v53, %v1604_v50  ;;  %v1667_v16 = vmul.f32 %v1666_v57, %v1657_v6  ;;  %v1668_v26 = vmul.f32 %v1666_v57, %v1658_v48  ;;  %v5442_v6 = vld [vmem:[#allocation75_spill] sm:$0xff]  ;;  %v5443_v48 = vld [vmem:[#allocation74_spill] sm:$0xff] }
 0x630   : > { %v1777_v21 = vstv %s4588_s24  ;;  %v1770_v22 = vsel %vm1693_vm5, %v5433_v11, %v5432_v18  ;;  %v1771_v49 = vsel %vm1693_vm5, %v5432_v18, %v5433_v11  ;;  %v1956_v61 = vstv %s4608_s1  ;;  %v1713_v4 = vpop.permute.xlu1 %1712  ;;  %v5446_v18 = vld [vmem:[#allocation79_spill] sm:$0xff]  ;;  %v5447_v11 = vld [vmem:[#allocation78_spill] sm:$0xff]  ;;  %s2309_s24 = sshll.u32 %s5462_s0, 10 }
 0x631   : > { %v1651_v20 = vadd.f32 %v1649_v51, %v1627_v12  ;;  %v1652_v7 = vadd.f32 %v1650_v24, %v1628_v45  ;;  %v1673_v14 = vadd.f32 %v1671_v3, %v1667_v16  ;;  %v1674_v1 = vadd.f32 %v1672_v28, %v1668_v26  ;;  %v5440_v24 = vld [vmem:[#allocation73_spill] sm:$0xff] }
 0x632   : > { %vm1682_vm12 = vcmp.lt.s32.totalorder %v1678_v32, 256  ;;  %v1949_v47 = vsel %vm1872_vm11, %v5435_v59, %v5434_v19  ;;  %v1950_v34 = vsel %vm1872_vm11, %v5434_v19, %v5435_v59  ;;  %v4673_v30 = vmul.f32 %v1777_v21, %v1770_v22  ;;  %v1739_v41 = vpop.permute.xlu0 %1738  ;;  %s5465_s29 = sshll.u32 %s5463_s8, 6 }
 0x633   : > { %v1675_v35 = vadd.f32 %v1673_v14, %v1651_v20  ;;  %v1676_v42 = vadd.f32 %v1674_v1, %v1652_v7  ;;  %v4675_v27 = vmul.f32 %v1777_v21, %v1771_v49  ;;  %v4680_v0 = vmul.f32 %v1956_v61, %v1949_v47  ;;  %v5444_v20 = vld [vmem:[#allocation77_spill] sm:$0xff]  ;;  %v5445_v7 = vld [vmem:[#allocation76_spill] sm:$0xff]  ;;  %s311_s1 = scalar_lea.vmem [#allocation8], %s5465_s29 }
 0x634   : > { %v4682_v55 = vmul.f32 %v1956_v61, %v1950_v34  ;;  %v1707_v56 = vstv %s4614_s15  ;;  %v1729_v13 = vstv %s4619_s2  ;;  %v1753_v37 = vstv %s4621_s3  ;;  %v1737_v50 = vpop.permute.xlu1 %1736  ;;  %v5448_v34 = vld [vmem:[#allocation81_spill] sm:$0xff]  ;;  %s2097_s15 = sshll.u32 %s311_s1, 4  ;;  %s5011_s15 = int_to_ptr.vmem [resolvable:$true] %s2097_s15 }
 0x635   : > { %v1686_v63 = vsel %vm1682_vm12, %v1676_v42, 0.0  ;;  %v4678_v33 = vadd.f32 %v1675_v35, %v4549_v40  ;;  %v1886_v5 = vstv %s4625_s4  ;;  %v1908_v10 = vstv %s4627_s26  ;;  %v5436_v40 = vld [vmem:[#allocation69_spill] sm:$0xff]  ;;  %v5449_v35 = vld [vmem:[#allocation80_spill] sm:$0xff]  ;;  %s5470_s4 = sld [smem:[#allocation122_spill]] }
 0x636   : > { %v4686_v44 = vadd.f32 %v1686_v63, %v4538_v46  ;;  %v1700_v60 = vsel %vm1693_vm5, %v5437_v23, %v5436_v40  ;;  %v1932_v15 = vstv %s4634_s6  ;;  %v1801_v52 = vstv %s4636_s5  ;;  %v4760_v61 = vpop.permute.xlu0 %1870  ;;  %s5473_s6 = sld [smem:[#allocation19_spill]]  ;;  %s2084_s5 = scalar_lea.sflag [#allocation5], %s5463_s8 }
 0x637   : > { %v1825_v9 = vstv %s4640_s11  ;;  %v1701_v46 = vsel %vm1693_vm5, %v5436_v40, %v5437_v23  ;;  %v1722_v8 = vsel %vm1693_vm5, %v5439_v36, %v5438_v17  ;;  %v1723_v53 = vsel %vm1693_vm5, %v5438_v17, %v5439_v36  ;;  %v5451_v40 = vld [vmem:[#allocation82_spill] sm:$0xff]  ;;  %s2502_s11 = scalar_lea.vmem %s5011_s15, 1024 }
 0x638   : > { %v1980_v38 = vstv %s4642_s14  ;;  %v1849_v43 = vstv %s4646_s16  ;;  %v2004_v57 = vstv %s4648_s27  ;;  %v1773_v39 = vstv %s4661_s28  ;;  %v4742_v21 = vpop.permute.xlu1 %1868  ;;  %p2503_p5 = scmp.ne.s32.totalorder %s5011_s15, %s2502_s11  ;;  %s2596_s14 = smov [#allocation8]  }
 0x639   : > { %v1952_v3 = vstv %s4663_s9  ;;  %v4718_v51 = vmul.f32 %v1707_v56, %v1700_v60  ;;  %v1746_v31 = vsel %vm1693_vm5, %v5441_v29, %v5440_v24  ;;  %v1747_v28 = vsel %vm1693_vm5, %v5440_v24, %v5441_v29  ;;  %s2506_s16 = sshll.u32 %s2596_s14, 4  ;;  %s2507_s16 = int_to_ptr.vmem [resolvable:$false] %s2506_s16 }
 0x63a   : > { %v1879_v32 = vsel %vm1872_vm11, %v5443_v48, %v5442_v6  ;;  %v4736_v12 = vmul.f32 %v1707_v56, %v1701_v46  ;;  %v1730_v45 = vmul.f32 %v1729_v13, %v1722_v8  ;;  %v1731_v16 = vmul.f32 %v1729_v13, %v1723_v53  ;;  %v5450_v13 = vld [vmem:[#allocation83_spill] sm:$0xff]  ;;  %s2508_s27 = scalar_lea.vmem %s2507_s16, 2048  ;;  %p2509_p10 = scmp.lt.s32.totalorder %s5011_s15, %s2507_s16 }
 0x63b   : > { %v1880_v26 = vsel %vm1872_vm11, %v5442_v6, %v5443_v48  ;;  %v1901_v14 = vsel %vm1872_vm11, %v5445_v7, %v5444_v20  ;;  %v1902_v1 = vsel %vm1872_vm11, %v5444_v20, %v5445_v7  ;;  %v1925_v22 = vsel %vm1872_vm11, %v5447_v11, %v5446_v18  ;;  %v5453_v48 = vld [vmem:[#allocation84_spill] sm:$0xff]  ;;  %s5005_s26 = scalar_lea.hbm %s5470_s4, %s2309_s24  ;;  %p2510_p1 = scmp.lt.s32.totalorder %s2508_s27, %s2502_s11 }
 0x63c   : > { %v1926_v49 = vsel %vm1872_vm11, %v5446_v18, %v5447_v11  ;;  %v4762_v19 = vmul.f32 %v1753_v37, %v1746_v31  ;;  %v4764_v59 = vmul.f32 %v1753_v37, %v1747_v28  ;;  %v4766_v47 = vmul.f32 %v1886_v5, %v1879_v32  ;;  %v4794_v36 = vpop.permute.xlu1 %1891  ;;  %v1894_v31 = vpop.permute.xlu0 %1893  ;;  %v5454_v18 = vld [vmem:[#allocation87_spill] sm:$0xff]  ;;  %v5455_v11 = vld [vmem:[#allocation86_spill] sm:$0xff]  ;;  %p5476_p12 = scmp.ne.s32.totalorder %s5473_s6, 0 }
 0x63d   : > { %v1794_v42 = vsel %vm1693_vm5, %v5449_v35, %v5448_v34  ;;  %v4772_v63 = vmul.f32 %v1886_v5, %v1880_v26  ;;  %v1795_v56 = vsel %vm1693_vm5, %v5448_v34, %v5449_v35  ;;  %v1818_v37 = vsel %vm1693_vm5, %v5451_v40, %v5450_v13  ;;  %v5458_v35 = vld [vmem:[#allocation113_spill] sm:$0xff]  ;;  %p2511_p4 = por %p2510_p1, %p2509_p10 }
 0x63e   : > { %v1819_v23 = vsel %vm1693_vm5, %v5450_v13, %v5451_v40  ;;  %v4786_v60 = vmul.f32 %v1908_v10, %v1901_v14  ;;  %v4788_v5 = vmul.f32 %v1908_v10, %v1902_v1  ;;  %v4790_v46 = vmul.f32 %v1932_v15, %v1925_v22  ;;  %v5456_v22 = vld [vmem:[#allocation103_spill] sm:$0xff]  ;;  %p2504_p8 = pnand %p2503_p5, %p5476_p12 }
 0x63f   : > { %v4792_v17 = vmul.f32 %v1932_v15, %v1926_v49  ;;  %v4796_v8 = vmul.f32 %v1801_v52, %v1794_v42  ;;  %v1725_v53 = vstv %s4712_s17  ;;  %v1716_v24 = vsel %vm1693_vm5, %v1713_v4, %v1715_v2  ;;  %v5452_v15 = vld [vmem:[#allocation85_spill] sm:$0xff]  ;;  %v5459_v42 = vld [vmem:[#allocation112_spill] sm:$0xff] }
 0x640   : > { %v1717_v29 = vsel %vm1693_vm5, %v1715_v2, %v1713_v4  ;;  %v4803_v28 = vmul.f32 %v1801_v52, %v1795_v56  ;;  %v4805_v10 = vmul.f32 %v1825_v9, %v1818_v37  ;;  %v4807_v6 = vmul.f32 %v1825_v9, %v1819_v23  ;;  %v1916_v1 = vpop.permute.xlu1 %1915  ;;  %v1918_v34 = vpop.permute.xlu0 %1917  ;;  %p2505_p9 = pneg %p2504_p8 }
 0x641   : > { %v1973_v32 = vsel %vm1872_vm11, %v5453_v48, %v5452_v15  ;;  %v1703_v26 = vstv %s4732_s7  ;;  %v1694_v4 = vsel %vm1693_vm5, %v4644_v25, %v4650_v54  ;;  %v1695_v2 = vsel %vm1693_vm5, %v4650_v54, %v4644_v25 }
 0x642   : > { %v1749_v52 = vstv %s4734_s20  ;;  %v1726_v9 = vmul.f32 %v1725_v53, %v1716_v24  ;;  %v1727_v20 = vmul.f32 %v1725_v53, %v1717_v29  ;;  %v1740_v7 = vsel %vm1693_vm5, %v1737_v50, %v1739_v41  ;;  %p2512_p11 = pnand %p2511_p4, %p2505_p9 }
 0x643   : > { %v1741_v14 = vsel %vm1693_vm5, %v1739_v41, %v1737_v50  ;;  %v1842_v25 = vsel %vm1693_vm5, %v5455_v11, %v5454_v18  ;;  %v1843_v54 = vsel %vm1693_vm5, %v5454_v18, %v5455_v11  ;;  %v1774_v49 = vmul.f32 %v1773_v39, %v5456_v22  ;;  %v5457_v50 = vld [vmem:[#allocation104_spill] sm:$0xff] }
 0x644   : > { %v1775_v41 = vmul.f32 %v1773_v39, %v5457_v50  ;;  %v1943_v56 = vsel %vm1872_vm11, %v5459_v42, %v5458_v35  ;;  %v1944_v13 = vsel %vm1872_vm11, %v5458_v35, %v5459_v42  ;;  %v1704_v40 = vmul.f32 %v1703_v26, %v1694_v4  ;;  %v1785_v18 = vpop.permute.xlu1 %1784 }
 0x645   : > { %v1705_v37 = vmul.f32 %v1703_v26, %v1695_v2  ;;  %v4857_v39 = vsel %vm1872_vm11, %v5452_v15, %v5453_v48  ;;  %v4861_v23 = vmul.f32 %v1980_v38, %v1973_v32  ;;  %v1750_v53 = vmul.f32 %v1749_v52, %v1740_v7  ;;  %v1787_v7 = vpop.permute.xlu0 %1786 }
 0x646   : > { %v1751_v24 = vmul.f32 %v1749_v52, %v1741_v14  ;;  %v4867_v29 = vmul.f32 %v1849_v43, %v1842_v25  ;;  %v4871_v26 = vmul.f32 %v1849_v43, %v1843_v54  ;;  %v1732_v4 = vadd.f32 %v1730_v45, %v1726_v9 }
 0x647   : > { %v1733_v2 = vadd.f32 %v1731_v16, %v1727_v20  ;;  %v1780_v15 = vadd.f32 %v4673_v30, %v1774_v49  ;;  %v1781_v48 = vadd.f32 %v4675_v27, %v1775_v41  ;;  %v4877_v32 = vmul.f32 %v1952_v3, %v1943_v56 }
 0x648   : > { %v4881_v52 = vmul.f32 %v1952_v3, %v1944_v13  ;;  %v1710_v14 = vadd.f32 %v4718_v51, %v1704_v40  ;;  %v1711_v43 = vadd.f32 %v4736_v12, %v1705_v37  ;;  %v1882_v45 = vstv %s4813_s19  ;;  %v1809_v11 = vpop.permute.xlu1 %1808 }
 0x649   : > { %v1797_v16 = vstv %s4815_s21  ;;  %v1756_v30 = vadd.f32 %v4762_v19, %v1750_v53  ;;  %v1757_v27 = vadd.f32 %v4764_v59, %v1751_v24  ;;  %v1788_v3 = vsel %vm1693_vm5, %v1785_v18, %v1787_v7  ;;  %v1811_v49 = vpop.permute.xlu0 %1810 }
 0x64a   : > { %v1789_v9 = vsel %vm1693_vm5, %v1787_v7, %v1785_v18  ;;  %v1734_v51 = vadd.f32 %v1732_v4, %v1710_v14  ;;  %v1735_v12 = vadd.f32 %v1733_v2, %v1711_v43  ;;  %v1904_v20 = vstv %s4831_s13 }
 0x64b   : > { %v1821_v25 = vstv %s4833_s25  ;;  %v1873_v19 = vsel %vm1872_vm11, %v4742_v21, %v4760_v61  ;;  %v1874_v59 = vsel %vm1872_vm11, %v4760_v61, %v4742_v21  ;;  %v1895_v54 = vsel %vm1872_vm11, %v4794_v36, %v1894_v31 }
 0x64c   : > { %v1896_v22 = vsel %vm1872_vm11, %v1894_v31, %v4794_v36  ;;  %v1798_v50 = vmul.f32 %v1797_v16, %v1788_v3  ;;  %v1799_v41 = vmul.f32 %v1797_v16, %v1789_v9  ;;  %v1812_v35 = vsel %vm1693_vm5, %v1809_v11, %v1811_v49  ;;  %v1964_v53 = vpop.permute.xlu1 %1963 }
 0x64d   : > { %v1813_v42 = vsel %vm1693_vm5, %v1811_v49, %v1809_v11  ;;  %v1758_v56 = vadd.f32 %v1756_v30, %v1734_v51  ;;  %v1759_v21 = vadd.f32 %v1757_v27, %v1735_v12  ;;  %v1928_v61 = vstv %s4863_s22  ;;  %v1966_v7 = vpop.permute.xlu0 %1965 }
 0x64e   : > { %v4921_v13 = vadd.s32 32, %v4606_v62  ;;  %v1883_v40 = vmul.f32 %v1882_v45, %v1873_v19  ;;  %v1884_v37 = vmul.f32 %v1882_v45, %v1874_v59  ;;  %v1905_v36 = vmul.f32 %v1904_v20, %v1895_v54 }
 0x64f   : > { %v1906_v31 = vmul.f32 %v1904_v20, %v1896_v22  ;;  %v1919_v24 = vsel %vm1872_vm11, %v1916_v1, %v1918_v34  ;;  %v1920_v4 = vsel %vm1872_vm11, %v1918_v34, %v1916_v1  ;;  %v1822_v2 = vmul.f32 %v1821_v25, %v1812_v35 }
 0x650   : > { %v1823_v18 = vmul.f32 %v1821_v25, %v1813_v42  ;;  %v1804_v14 = vadd.f32 %v4796_v8, %v1798_v50  ;;  %v1805_v43 = vadd.f32 %v4803_v28, %v1799_v41  ;;  %v1976_v16 = vstv %s4887_s10  ;;  %v1833_v34 = vpop.permute.xlu1 %1832 }
 0x651   : > { %v1845_v30 = vstv %s4889_s18  ;;  %v1782_v45 = vadd.f32 %v1780_v15, %v1758_v56  ;;  %v1783_v27 = vadd.f32 %v1781_v48, %v1759_v21  ;;  %vm1861_vm15 = vcmp.lt.s32.totalorder %v4921_v13, 256  ;;  %v1835_v15 = vpop.permute.xlu0 %1834 }
 0x652   : > { %v2000_v3 = vstv %s4897_s30  ;;  %v1911_v9 = vadd.f32 %v4786_v60, %v1905_v36  ;;  %v1912_v51 = vadd.f32 %v4788_v5, %v1906_v31  ;;  %v1929_v12 = vmul.f32 %v1928_v61, %v1919_v24  ;;  %v5461_v36 = vld [vmem:[#allocation88_spill] sm:$0xff] }
 0x653   : > { %v1930_v1 = vmul.f32 %v1928_v61, %v1920_v4  ;;  %v1889_v20 = vadd.f32 %v4766_v47, %v1883_v40  ;;  %v1890_v8 = vadd.f32 %v4772_v63, %v1884_v37  ;;  %v1828_v28 = vadd.f32 %v4805_v10, %v1822_v2 }
 0x654   : > { %v1829_v11 = vadd.f32 %v4807_v6, %v1823_v18  ;;  %v1806_v48 = vadd.f32 %v1804_v14, %v1782_v45  ;;  %v1807_v25 = vadd.f32 %v1805_v43, %v1783_v27  ;;  %v1836_v19 = vsel %vm1693_vm5, %v1833_v34, %v1835_v15  ;;  %v1988_v49 = vpop.permute.xlu1 %1987 }
 0x655   : > { %v1837_v60 = vsel %vm1693_vm5, %v1835_v15, %v1833_v34  ;;  %v1967_v5 = vsel %vm1872_vm11, %v1964_v53, %v1966_v7  ;;  %v1968_v47 = vsel %vm1872_vm11, %v1966_v7, %v1964_v53  ;;  %v1846_v63 = vmul.f32 %v1845_v30, %v1836_v19  ;;  %v1990_v56 = vpop.permute.xlu0 %1989 }
 0x656   : > { %v1847_v59 = vmul.f32 %v1845_v30, %v1837_v60  ;;  %v1913_v10 = vadd.f32 %v1911_v9, %v1889_v20  ;;  %v1914_v6 = vadd.f32 %v1912_v51, %v1890_v8  ;;  %v1935_v54 = vadd.f32 %v4790_v46, %v1929_v12 }
 0x657   : > { %v1936_v22 = vadd.f32 %v4792_v17, %v1930_v1  ;;  %v1830_v50 = vadd.f32 %v1828_v28, %v1806_v48  ;;  %v1831_v41 = vadd.f32 %v1829_v11, %v1807_v25  ;;  %v1852_v35 = vadd.f32 %v4867_v29, %v1846_v63  ;;  %v5460_v17 = vld [vmem:[#allocation89_spill] sm:$0xff] }
 0x658   : > { %v1853_v42 = vadd.f32 %v4871_v26, %v1847_v59  ;;  %v1977_v21 = vmul.f32 %v1976_v16, %v1967_v5  ;;  %v1978_v61 = vmul.f32 %v1976_v16, %v1968_v47  ;;  %v1991_v40 = vsel %vm1872_vm11, %v1988_v49, %v1990_v56  ;;  %v2012_v4 = vpop.permute.xlu1 %2011 }
 0x659   : > { %v1992_v37 = vsel %vm1872_vm11, %v1990_v56, %v1988_v49  ;;  %v1982_v46 = vmul.f32 %v1980_v38, %v4857_v39  ;;  %v1997_v31 = vsel %vm1872_vm11, %v5461_v36, %v5460_v17  ;;  %v1854_v29 = vadd.f32 %v1852_v35, %v1830_v50  ;;  %v2014_v43 = vpop.permute.xlu0 %2013 }
 0x65a   : > { %v1855_v26 = vadd.f32 %v1853_v42, %v1831_v41  ;;  %v1998_v53 = vsel %vm1872_vm11, %v5460_v17, %v5461_v36  ;;  %v1959_v24 = vadd.f32 %v4680_v0, %v4877_v32  ;;  %v1937_v38 = vadd.f32 %v1935_v54, %v1913_v10  ;;  %v5467_v17 = vld [vmem:[#allocation22_spill] sm:$0xff] }
 0x65b   : > { %v1938_v39 = vadd.f32 %v1936_v22, %v1914_v6  ;;  %v1866_v18 = vadd.f32 %v1854_v29, %v4678_v33  ;;  %v2001_v7 = vmul.f32 %v2000_v3, %v1991_v40  ;;  %v2002_v14 = vmul.f32 %v2000_v3, %v1992_v37  ;;  %v5466_v37 = vld [vmem:[#allocation24_spill] sm:$0xff] }
 0x65c   : > { %v1865_v2 = vsel %vm1861_vm15, %v1855_v26, 0.0  ;;  %v1960_v16 = vadd.f32 %v4682_v55, %v4881_v52  ;;  %v1983_v30 = vadd.f32 %v4861_v23, %v1977_v21  ;;  %v1984_v45 = vadd.f32 %v1982_v46, %v1978_v61  ;;  %v2018_v55 = vpop.permute.xlu1 %2017  ;;  %v5469_v26 = vld [vmem:[#allocation28_spill] sm:$0xff] }
 0x65d   : > { %v1867_v0 = vadd.f32 %v1865_v2, %v4686_v44  ;;  %v2005_v32 = vmul.f32 %v2004_v57, %v1997_v31  ;;  %v2006_v27 = vmul.f32 %v2004_v57, %v1998_v53  ;;  %v2024_v9 = vstv %s4947_s23  ;;  %v2020_v1 = vpop.permute.xlu0 %2019  ;;  %v5468_v31 = vld [vmem:[#allocation26_spill] sm:$0xff]  ;;  %v5474_v2 = vld [vmem:[#allocation27_spill] sm:$0xff] }
 0x65e   : > { %v2028_v13 = vstv %s4949_s12  ;;  %v1961_v51 = vadd.f32 %v1959_v24, %v1937_v38  ;;  %v1962_v12 = vadd.f32 %v1960_v16, %v1938_v39  ;;  %v2015_v33 = vsel %vm1872_vm11, %v2012_v4, %v2014_v43  ;;  %v5471_v24 = vld [vmem:[#allocation25_spill] sm:$0xff]  ;;  %v5472_v39 = vld [vmem:[#allocation23_spill] sm:$0xff] }
 0x65f   : > { %v2016_v3 = vsel %vm1872_vm11, %v2014_v43, %v2012_v4  ;;  %v2007_v52 = vadd.f32 %v2005_v32, %v2001_v7  ;;  %v2008_v23 = vadd.f32 %v2006_v27, %v2002_v14  ;;  %v2036_v44 = vadd.s32 48, %v4606_v62  ;;  %v5475_v7 = vld [vmem:[#allocation29_spill] sm:$0xff] }
 0x660   : > { %v1985_v34 = vadd.f32 %v1983_v30, %v1961_v51  ;;  %v1986_v20 = vadd.f32 %v1984_v45, %v1962_v12  ;;  %v2021_v57 = vsel %vm1872_vm11, %v2018_v55, %v2020_v1  ;;  %v2022_v8 = vsel %vm1872_vm11, %v2020_v1, %v2018_v55 }
 0x661   : > { %v2025_v28 = vmul.f32 %v2024_v9, %v2015_v33  ;;  %v2026_v11 = vmul.f32 %v2024_v9, %v2016_v3  ;;  %v2029_v15 = vmul.f32 %v2028_v13, %v2021_v57  ;;  %v2030_v48 = vmul.f32 %v2028_v13, %v2022_v8 }
 0x662   : > { %v2009_v25 = vadd.f32 %v2007_v52, %v1985_v34  ;;  %v2010_v19 = vadd.f32 %v2008_v23, %v1986_v20  ;;  %vm2040_vm0 = vcmp.lt.s32.totalorder %v2036_v44, 256  ;;  %v5464_v41 = vlaneseq }
 0x663   : > { %v2031_v60 = vadd.f32 %v2029_v15, %v2025_v28  ;;  %v2032_v5 = vadd.f32 %v2030_v48, %v2026_v11 }
 0x664   : > { %v2060_v35 = vshrl.u32 %v5464_v41, 7 }
 0x665   : > { %v2033_v47 = vadd.f32 %v2031_v60, %v2009_v25  ;;  %v2034_v63 = vadd.f32 %v2032_v5, %v2010_v19 }
 0x666   : > { %v2061_v42 = vsub.s32 0, %v2060_v35 }
 0x667   : > { %v2044_v62 = vsel %vm2040_vm0, %v2034_v63, 0.0  ;;  %v2045_v59 = vadd.f32 %v2033_v47, %v1866_v18 }
 0x668   : > { %v2046_v10 = vadd.f32 %v2044_v62, %v1867_v0 }
 0x669   : > { %v2301_v6 = vmul.f32 -1.442695, %v2045_v59 }
 0x66a   : > { %v2302_v54 = vmul.f32 -1.442695, %v2046_v10 }
 0x66b   : > { %2449 = vpow2.f32 %v2301_v6 }
 0x66c   : > { %2451 = vpow2.f32 %v2302_v54 }
 0x675   : > { %v2450_v58 = vpop.eup %2449 }
 0x676   : > { %v2452_v22 = vpop.eup %2451  ;;  %v2053_v49 = vadd.f32 1.0, %v2450_v58 }
 0x677   : > { %v2054_v50 = vadd.f32 1.0, %v2452_v22 }
 0x678   : > { %2453 = vrcp.f32 %v2053_v49 }
 0x679   : > { %2455 = vrcp.f32 %v2054_v50 }
 0x682   : > { %v2454_v56 = vpop.eup %2453 }
 0x683   : > { %v2456_v21 = vpop.eup %2455  ;;  %v2062_v61 = vrot.slane %v2454_v56, %v2061_v42 }
 0x684   : > { %v2066_v40 = vrot.slane %v2456_v21, %v2061_v42 }
 0x685   : > { %v2067_v46 = vmul.f32 %v2062_v61, %v5466_v37  ;;  %v2069_v36 = vmul.f32 %v2062_v61, %v5467_v17  ;;  %v2071_v29 = vmul.f32 %v2062_v61, %v5468_v31  ;;  %v2073_v53 = vmul.f32 %v2062_v61, %v5469_v26 }
 0x686   : > { %v2068_v38 = vmul.f32 %v2066_v40, %v5471_v24  ;;  %v2070_v4 = vmul.f32 %v2066_v40, %v5472_v39  ;;  %v2072_v18 = vmul.f32 %v2066_v40, %v5474_v2  ;;  %v2074_v14 = vmul.f32 %v2066_v40, %v5475_v7 }
 0x687   : > { %2075 = vst [vmem:[%s311_s1] sm:$0xff] %v2067_v46  ;;  %2077 = vst [vmem:[%s311_s1 + $0x10] sm:$0xff] %v2069_v36 }
 0x688   : > { %2079 = vst [vmem:[%s311_s1 + $0x20] sm:$0xff] %v2071_v29  ;;  %2081 = vst [vmem:[%s311_s1 + $0x30] sm:$0xff] %v2073_v53 }
 0x689   : > { %2076 = vst [vmem:[%s311_s1 + $0x8] sm:$0xff] %v2068_v38  ;;  %2078 = vst [vmem:[%s311_s1 + $0x18] sm:$0xff] %v2070_v4 }
 0x68a   : > { %2080 = vst [vmem:[%s311_s1 + $0x28] sm:$0xff] %v2072_v18  ;;  %2082 = vst [vmem:[%s311_s1 + $0x38] sm:$0xff] %v2074_v14 }
 0x68b   : > { %2515 = shalt.err (!%p2512_p11)
}
 0x68c   : > { %s2516_s28 = scalar_lea.hbm %s5005_s26, 1024  ;;  %s2520_s7 = scalar_lea.hbm %s5470_s4, 2048 }
 0x68d   : > { %p2517_p0 = scmp.ne.s32.totalorder %s5005_s26, %s2516_s28  ;;  %p2521_p6 = scmp.lt.u32.totalorder %s5005_s26, %s5470_s4 }
 0x68e   : > { %p2522_p3 = scmp.lt.u32.totalorder %s2520_s7, %s2516_s28  ;;  %p2524_p5 = scmp.lt.u32.totalorder %s2516_s28, %s5005_s26 }
 0x68f   : > { %p2518_p2 = pnand %p2517_p0, %p5476_p12 }
 0x690   : > { %p2523_p13 = por %p2522_p3, %p2521_p6 }
 0x691   : > { %p2519_p7 = pneg %p2518_p2 }
 0x692   : > { %p2525_p8 = por %p2524_p5, %p2523_p13 }
 0x694   : > { %p2526_p9 = pnand %p2525_p8, %p2519_p7 }
 0x696   : > { %2529 = shalt.err (!%p2526_p9)
}
 0x697   : > { %s2597_s21 = smov 256   ;;  %s5477_s13 = smov 16  }
 0x698   : > { %2359 = dma.vmem_to_hbm [thread:$0]  (%p5476_p12), %s5011_s15, 1024, %s5005_s26, %s2084_s5, %s2597_s21, %s2597_s21, %s5477_s13  }
 0x699 PF: > { %s5478_s25 = sld [smem:[#allocation12_spill]]  ;;  %s5479_s22 = sld [smem:[#allocation20_spill]] }
 0x69a   : > { %s5480_s10 = sld [smem:[#allocation15_spill]] }
 0x69f   : > { %s2112_s18 = sand.u32 1, %s5478_s25   ;;  %p5481_p10 = scmp.ne.s32.totalorder %s5479_s22, 0 }
 0x6a0   : > { %p5482_p1 = scmp.ge.s32.totalorder %s5480_s10, 2  ;;  %s2113_s30 = scalar_lea.sflag [#allocation5], %s2112_s18 }
 0x6a2   : > { %p2370_p4 = pnand %p5482_p1, %p5481_p10 }
 0x6a4   : > { %2555 = dma.done.wait (!%p2370_p4), %s2113_s30, 1024  }
 0x6a5   : > { %2557 = vsyncadd (!%p2370_p4), %s2113_s30, 4294966272  ;;  %s5483_s29 = sld [smem:[#allocation17_spill]]  ;;  %s5484_s26 = sld [smem:[#allocation13_spill]] }
 0x6a6   : > { %s5485_s27 = sld [smem:[#allocation14_spill]]  ;;  %s5486_s28 = sld [smem:[#allocation18_spill]] }
 0x6ab   : > { %p22_p11 = scmp.ge.s32.totalorder %s5483_s29, 4  }
 0x6ad   :  { %24 = sbr.rel (!%p22_p11) target bundleno = 15 (0xf), region = 98 }
 0x6b4   :  { %2118 = vsyncpa [#allocation4], 1 }
 0x6b5   :  { %2120 = vsyncpa [#allocation4 + $0x1], 1 }
 0x6b6   :  { %2121 = vsyncpa [#allocation5], 1 }
 0x6b7   :  { %2123 = vsyncpa [#allocation5 + $0x1], 1 }
 0x6b8   :  { %2124 = vsyncpa [#allocation6], 1 }
 0x6b9   :  { %2126 = vsyncpa [#allocation6 + $0x1], 1 }

</bundles_post_ra>
